<compile_context>
chip_gen: v7x
topology: tpu7x:2x2x1
jax: 0.10.0
libtpu: 0.0.40
codegen_flags: <defaults>
</compile_context>

<pallas_src>
import numpy as np
import jax
import jax.numpy as jnp
from jax.experimental import pallas as pl
from jax.experimental.pallas import tpu as pltpu

SENT_HIDDEN = 100
WORD_HIDDEN = 100
NUM_CLASSES = 2
FEAT = 2 * WORD_HIDDEN        # 200
H = SENT_HIDDEN               # 100 (real hidden size)

# Padded (lane-aligned) sizes used inside the kernels.
HP = 128                      # hidden padded to one lane tile
DP = 256                      # input feature 200 -> 256
G4 = 4 * HP                   # 512: 4 gates, each in its own 128-lane slot
COUT = 128                    # fc output 2 -> 128 (lane-dense store)


def _round_up(x, m):
    return ((x + m - 1) // m) * m


def _vmem():
    return pl.BlockSpec(memory_space=pltpu.MemorySpace.VMEM)


def _stacked(*blk):
    """BlockSpec for a (2, *blk) array indexed by the 1-D grid axis (leading dim squeezed)."""
    n = len(blk)
    return pl.BlockSpec((None,) + tuple(blk),
                        lambda g, _n=n: (g,) + (0,) * _n)


# ----------------------------- Pallas kernels ------------------------------

def _bilstm_fc_body(x, wih_ref, b_ref, whh_f_ref, whh_b_ref, wfc_ref, bfc_ref,
                    h_out_ref, y_out_ref):
    """Shared body: bidirectional LSTM over x (L, B, DP) + fc epilogue.

    wih_ref : (DP, 2*G4)  input->gate weights, fwd gates in lanes [0,512), bwd in [512,1024)
    b_ref   : (1, 2*G4)   combined bias (bias_ih + bias_hh), same layout
    whh_*   : (HP, G4)    hidden->gate weights per direction
    wfc_ref : (2*HP, COUT), bfc_ref: (1, COUT)
    h_out_ref: (L, B, 2*HP)   fwd hidden -> lanes [0,128), bwd -> [128,256)
    y_out_ref: (L, B, COUT)
    """
    L, B, DPx = x.shape
    HPv = whh_f_ref.shape[0]
    G4v = whh_f_ref.shape[1]

    # One lane-dense matmul for BOTH directions' input projections, bias folded in.
    # This hoists 8 small per-step matmuls off the serial recurrence critical path.
    xg = (jnp.dot(x.reshape(L * B, DPx), wih_ref[...],
                  preferred_element_type=jnp.float32) + b_ref[...])
    xg = xg.reshape(L, B, 2 * G4v)

    whh_f = whh_f_ref[...]
    whh_b = whh_b_ref[...]

    def cell(gates, c):
        # PyTorch gate order: i, f, g, o; each gate sits in its own 128-lane slot.
        i_g = jax.nn.sigmoid(gates[:, 0 * HPv:1 * HPv])
        f_g = jax.nn.sigmoid(gates[:, 1 * HPv:2 * HPv])
        g_g = jnp.tanh(gates[:, 2 * HPv:3 * HPv])
        o_g = jax.nn.sigmoid(gates[:, 3 * HPv:4 * HPv])
        c_new = f_g * c + i_g * g_g
        return o_g * jnp.tanh(c_new), c_new

    hf = jnp.zeros((B, HPv), jnp.float32)
    cf = jnp.zeros((B, HPv), jnp.float32)
    hb = jnp.zeros((B, HPv), jnp.float32)
    cb = jnp.zeros((B, HPv), jnp.float32)

    # Fully unrolled (L is small & static); fwd step t and bwd step L-1-t interleaved.
    for t in range(L):
        tb = L - 1 - t
        gates_f = xg[t, :, :G4v] + jnp.dot(hf, whh_f,
                                           preferred_element_type=jnp.float32)
        gates_b = xg[tb, :, G4v:] + jnp.dot(hb, whh_b,
                                            preferred_element_type=jnp.float32)
        hf, cf = cell(gates_f, cf)
        hb, cb = cell(gates_b, cb)
        h_out_ref[t, :, :HPv] = hf
        h_out_ref[tb, :, HPv:] = hb

    # FC epilogue on the padded hidden block: lane-dense 128-wide output store.
    h_flat = h_out_ref[...].reshape(L * B, 2 * HPv)
    y = jnp.dot(h_flat, wfc_ref[...], preferred_element_type=jnp.float32) + bfc_ref[...]
    y_out_ref[...] = y.reshape(L, B, y_out_ref.shape[-1])


def bilstm_fc_kernel(x_ref, wih_ref, b_ref, whh_f_ref, whh_b_ref, wfc_ref, bfc_ref,
                     h_out_ref, y_out_ref):
    _bilstm_fc_body(x_ref[...], wih_ref, b_ref, whh_f_ref, whh_b_ref,
                    wfc_ref, bfc_ref, h_out_ref, y_out_ref)


def attn_bilstm_fc_kernel(att_ref, f_ref, wih_ref, b_ref, whh_f_ref, whh_b_ref,
                          wfc_ref, bfc_ref, y_out_ref, h_scr_ref):
    # torch: weight = softmax(bmm(att.permute(1,0,2), f.permute(1,2,0)), 2).permute(2,0,1)
    #        f = f * weight   (softmax over the window axis; zero-padded window slots
    #        participate, matching the original's zero-padding behaviour).
    att = att_ref[...]                                     # (Np, DP), zero in pads
    f = f_ref[...]                                         # (Wn, Np, DP)
    scores = jnp.sum(f * att[None, :, :], axis=-1)         # (Wn, Np)
    m = jnp.max(scores, axis=0, keepdims=True)
    e = jnp.exp(scores - m)
    w = e / jnp.sum(e, axis=0, keepdims=True)
    f_w = f * w[:, :, None]
    # Hidden states are never read outside this kernel -> VMEM scratch (no HBM writeback).
    _bilstm_fc_body(f_w, wih_ref, b_ref, whh_f_ref, whh_b_ref,
                    wfc_ref, bfc_ref, h_scr_ref, y_out_ref)


# ----------------------------- kernel wrappers ------------------------------

@jax.jit
def _main_jit(x1, x2, mp):
    """lstm1+fc1 on x1 and lstm2+fc2 on x2 as two parallel grid points of one call.

    Padding, stacking, the pallas_call, un-padding and the output permutes are all
    inside one jitted executable (single dispatch for the whole main path).
    """
    L, B, Din = x1.shape
    Bp = _round_up(max(B, 8), 8)

    def prep(x):
        return jnp.pad(x, ((0, 0), (0, Bp - B), (0, DP - Din)))

    xs = jnp.stack([prep(x1), prep(x2)], axis=0)           # (2, L, Bp, DP)

    h, y = pl.pallas_call(
        bilstm_fc_kernel,
        out_shape=(jax.ShapeDtypeStruct((2, L, Bp, 2 * HP), jnp.float32),
                   jax.ShapeDtypeStruct((2, L, Bp, COUT), jnp.float32)),
        grid=(2,),
        in_specs=[
            _stacked(L, Bp, DP),           # x
            _stacked(DP, 2 * G4),          # wih (both directions)
            _stacked(1, 2 * G4),           # bias (both directions)
            _stacked(HP, G4),              # whh fwd
            _stacked(HP, G4),              # whh bwd
            _stacked(2 * HP, COUT),        # fc weight
            _stacked(1, COUT),             # fc bias
        ],
        out_specs=(_stacked(L, Bp, 2 * HP), _stacked(L, Bp, COUT)),
        compiler_params=pltpu.CompilerParams(
            dimension_semantics=("parallel",)),
    )(xs, mp['wih'], mp['b'], mp['whh_f'], mp['whh_b'], mp['wfc'], mp['bfc'])

    def unpad_h(hg):
        return jnp.concatenate([hg[:, :B, :H], hg[:, :B, HP:HP + H]], axis=-1)

    f_1 = unpad_h(h[0])
    f_3 = unpad_h(h[1])
    output1 = y[0, :, :B, :NUM_CLASSES]
    output2 = y[1, :, :B, :NUM_CLASSES]
    out1_p = jnp.transpose(output1, (1, 0, 2))
    out2_p = jnp.transpose(output2, (1, 0, 2))
    return f_1, output1, f_3, output2, out1_p, out2_p


@jax.jit
def _pair_jit(att_p, f_p, packed):
    Wn, Np, _ = f_p.shape
    y = pl.pallas_call(
        attn_bilstm_fc_kernel,
        out_shape=jax.ShapeDtypeStruct((Wn, Np, COUT), jnp.float32),
        in_specs=[_vmem()] * 8,
        out_specs=_vmem(),
        scratch_shapes=[pltpu.VMEM((Wn, Np, 2 * HP), jnp.float32)],
    )(att_p, f_p, packed['wih'], packed['b'],
      packed['whh_f'], packed['whh_b'], packed['wfc'], packed['bfc'])
    return y


def pair_branch(f_np, att_np, packed):
    """attention + bilstm(3/4) + fc(4/6) fused; returns (Wn, N, NUM_CLASSES) lazily."""
    Wn, N, Din = f_np.shape
    Np = _round_up(max(N, 8), 8)
    f_p = np.zeros((Wn, Np, DP), np.float32)
    f_p[:, :N, :Din] = f_np
    att_p = np.zeros((Np, DP), np.float32)
    att_p[:N, :Din] = att_np
    y = _pair_jit(jnp.asarray(att_p), jnp.asarray(f_p), packed)
    return y[:, :N, :NUM_CLASSES]


# ----------------------------- parameters ------------------------------

def init_params(key):
    """Original PyTorch-shaped parameters (gate order i,f,g,o; two biases per gate)."""
    std = 0.05
    keys = jax.random.split(key, 48)
    it = iter(keys)

    def nrm(shape):
        return std * jax.random.normal(next(it), shape, jnp.float32)

    def lstm(din):
        d = {}
        for suf in ('', '_reverse'):
            d['weight_ih' + suf] = nrm((4 * H, din))
            d['weight_hh' + suf] = nrm((4 * H, H))
            d['bias_ih' + suf] = nrm((4 * H,))
            d['bias_hh' + suf] = nrm((4 * H,))
        return d

    def fc(din, dout):
        return {'weight': nrm((dout, din)), 'bias': nrm((dout,))}

    return {
        'lstm1': lstm(FEAT), 'lstm2': lstm(FEAT),
        'lstm3': lstm(200), 'lstm4': lstm(200),
        'fc1': fc(2 * H, NUM_CLASSES), 'fc2': fc(2 * H, NUM_CLASSES),
        'fc4': fc(200, NUM_CLASSES), 'fc6': fc(200, NUM_CLASSES),
        'bias1': nrm((1,)),   # present in the module but unused by forward
        'bias2': nrm((1,)),
    }


def _pack_lstm_np(p, din_real):
    """Pack one bidirectional LSTM into lane-padded kernel layout (zeros in pads)."""
    def one_dir(suf):
        wih_t = np.asarray(p['weight_ih' + suf]).T          # (din, 4H)
        whh_t = np.asarray(p['weight_hh' + suf]).T          # (H, 4H)
        bias = np.asarray(p['bias_ih' + suf]) + np.asarray(p['bias_hh' + suf])
        wih_p = np.zeros((DP, G4), np.float32)
        whh_p = np.zeros((HP, G4), np.float32)
        b_p = np.zeros((1, G4), np.float32)
        for k in range(4):
            wih_p[:din_real, k * HP:k * HP + H] = wih_t[:, k * H:(k + 1) * H]
            whh_p[:H, k * HP:k * HP + H] = whh_t[:, k * H:(k + 1) * H]
            b_p[0, k * HP:k * HP + H] = bias[k * H:(k + 1) * H]
        return wih_p, whh_p, b_p

    wih_f, whh_f, b_f = one_dir('')
    wih_b, whh_b, b_b = one_dir('_reverse')
    return {
        'wih': np.concatenate([wih_f, wih_b], axis=1),      # (DP, 2*G4)
        'b': np.concatenate([b_f, b_b], axis=1),            # (1, 2*G4)
        'whh_f': whh_f, 'whh_b': whh_b,
    }


def _pack_fc_np(p):
    w_t = np.asarray(p['weight']).T                          # (2H, num_classes)
    b = np.asarray(p['bias'])
    wfc = np.zeros((2 * HP, COUT), np.float32)
    bfc = np.zeros((1, COUT), np.float32)
    wfc[:H, :NUM_CLASSES] = w_t[:H]                          # forward hidden part
    wfc[HP:HP + H, :NUM_CLASSES] = w_t[H:2 * H]              # backward hidden part
    bfc[0, :NUM_CLASSES] = b
    return {'wfc': wfc, 'bfc': bfc}


def pack_all(params):
    def pack(lstm_key, fc_key, din):
        d = _pack_lstm_np(params[lstm_key], din)
        d.update(_pack_fc_np(params[fc_key]))
        return d

    p1 = pack('lstm1', 'fc1', FEAT)
    p2 = pack('lstm2', 'fc2', FEAT)
    main = {k: jnp.asarray(np.stack([p1[k], p2[k]], axis=0)) for k in p1}
    pe = {k: jnp.asarray(v) for k, v in pack('lstm3', 'fc4', 200).items()}
    pc = {k: jnp.asarray(v) for k, v in pack('lstm4', 'fc6', 200).items()}
    return {'main': main, 'pair_emotion': pe, 'pair_cause': pc}


# ----------------------------- forward ------------------------------

def sent_att_forward(packed, input1, input2, label, window_size, index, dis):
    # TODO(synk): dropout1/dropout2 are identity here (eval-mode); the training-time
    # Bernoulli mask has no deterministic equivalent to reproduce.
    f_1, output1, f_3, output2, out1_p, out2_p = _main_jit(input1, input2, packed['main'])

    # Single host sync for everything the selection loops need.
    out1, out2, f1_np, f3_np = jax.device_get((output1, output2, f_1, f_3))
    out1 = np.asarray(out1); out2 = np.asarray(out2)
    f1_np = np.asarray(f1_np); f3_np = np.asarray(f3_np)
    label_np = np.asarray(label)
    index_np = np.asarray(index)

    L, B, _ = out1.shape
    win = int((window_size - 1) / 2)
    Wn = 2 * win + 1
    D = f1_np.shape[-1]

    result_list_1, result_list_2 = [], []
    list_input_1, list_input_2 = [], []
    list_input_emotion, list_input_cause = [], []
    list_label_1, list_label_2 = [], []
    emotion, cause = [], []
    doc_1, doc_2 = [], []

    def window(f, i, j):
        out = np.zeros((Wn, 1, D), dtype=np.float32)
        lo, hi = max(i - win, 0), min(i + win + 1, L)
        out[lo - (i - win):hi - (i - win)] = f[lo:hi, j:j + 1, :]
        return out

    for j in range(out1.shape[1]):
        for i in range(out1.shape[0]):
            if out1[i, j, 1] > out1[i, j, 0]:
                doc_id = int(label_np[j, i, 3])
                doc_1.append(doc_id)
                list_input_emotion.append(f1_np[i:i + 1, j:j + 1])
                list_input_1.append(window(f3_np, i, j))
                lab = [1 if (0 <= c < L and index_np[doc_id][c + 1] == i + 1) else 0
                       for c in range(i - win, i + win + 1)]
                list_label_1.append(np.asarray(lab, np.int32).reshape(1, Wn, 1))
                emotion.append(i + 1)

    for j in range(out2.shape[1]):
        for i in range(out2.shape[0]):
            if out2[i, j, 1] > out2[i, j, 0]:
                doc_id = int(label_np[j, i, 3])
                doc_2.append(doc_id)
                list_input_cause.append(f3_np[i:i + 1, j:j + 1])
                list_input_2.append(window(f1_np, i, j))
                lab = [1 if (0 <= c < L and index_np[doc_id][i + 1] == c + 1) else 0
                       for c in range(i - win, i + win + 1)]
                list_label_2.append(np.asarray(lab, np.int32).reshape(1, Wn, 1))
                cause.append(i + 1)

    placeholder_a = jnp.zeros((1, 1, 1), jnp.float32)
    placeholder_b = jnp.zeros((1,), jnp.float32)

    def fill_results_1(o3):
        a = 0
        for j in range(o3.shape[1]):
            for i in range(o3.shape[0]):
                if o3[i, j, 1] > o3[i, j, 0]:
                    result_list_1.append(10000 * doc_1[a] + 100 * emotion[a]
                                         + emotion[a] + i - (o3.shape[0] - 1) / 2)
            a += 1

    def fill_results_2(o4):
        a = 0
        for j in range(o4.shape[1]):
            for i in range(o4.shape[0]):
                if o4[i, j, 1] > o4[i, j, 0]:
                    result_list_2.append(10000 * doc_2[a] + cause[a]
                                         + 100 * (cause[a] + i - (o4.shape[0] - 1) / 2))
            a += 1

    n1, n2 = len(list_input_1), len(list_input_2)
    output3 = output4 = None
    # Launch both pair branches before any host sync (overlap device work).
    if n1 > 0:
        f_out_1 = np.concatenate(list_input_1, axis=1)               # (Wn, N1, 200)
        att_1 = np.concatenate(list_input_emotion, axis=1)[0]        # (N1, 200)
        output3 = pair_branch(f_out_1, att_1, packed['pair_emotion'])
    if n2 > 0:
        f_out_2 = np.concatenate(list_input_2, axis=1)               # (Wn, N2, 200)
        att_2 = np.concatenate(list_input_cause, axis=1)[0]          # (N2, 200)
        output4 = pair_branch(f_out_2, att_2, packed['pair_cause'])

    # Single host sync for both pair-branch outputs.
    to_get = tuple(x for x in (output3, output4) if x is not None)
    got = iter(jax.device_get(to_get)) if to_get else iter(())
    if output3 is not None:
        fill_results_1(np.asarray(next(got)))
    if output4 is not None:
        fill_results_2(np.asarray(next(got)))

    if n1 == 0 and n2 == 0:
        return (out1_p, out2_p, placeholder_a, placeholder_b,
                placeholder_a, placeholder_b, result_list_1, result_list_2)
    elif n2 == 0:
        ll1 = jnp.asarray(np.concatenate(list_label_1, axis=0))
        return (out1_p, out2_p, output3, ll1, placeholder_a, placeholder_b,
                result_list_1, result_list_2)
    elif n1 == 0:
        ll2 = jnp.asarray(np.concatenate(list_label_2, axis=0))
        return (out1_p, out2_p, placeholder_a, placeholder_b, output4, ll2,
                result_list_1, result_list_2)
    else:
        ll1 = jnp.asarray(np.concatenate(list_label_1, axis=0))
        ll2 = jnp.asarray(np.concatenate(list_label_2, axis=0))
        return (out1_p, out2_p, output3, ll1, output4, ll2,
                result_list_1, result_list_2)


# ----------------------------- main ------------------------------

if __name__ == "__main__":
    key = jax.random.PRNGKey(0)
    k_param, k_in1, k_in2 = jax.random.split(key, 3)
    params = init_params(k_param)
    packed = pack_all(params)       # one-time packing into padded kernel layout

    L, B = 8, 2                     # L sentences per document, B documents (batch)
    window_size = 3
    num_docs = B

    input1 = jax.random.normal(k_in1, (L, B, FEAT), jnp.float32)
    input2 = jax.random.normal(k_in2, (L, B, FEAT), jnp.float32)

    label = np.zeros((B, L, 4), dtype=np.int32)
    for j in range(B):
        label[j, :, 3] = j                       # doc id stored at label[j, i, 3]

    # index[doc][pos]: 1-indexed emotion-position -> cause-position lookup table
    index = np.zeros((num_docs, L + 2), dtype=np.int32)
    for d in range(num_docs):
        for p in range(L + 2):
            index[d, p] = ((p + d) % L) + 1

    dis = np.zeros((B, L), dtype=np.int32)       # unused by the forward pass

    outs = sent_att_forward(packed, input1, input2, label, window_size, index, dis)
    for o in outs:
        if isinstance(o, jax.Array):
            jax.block_until_ready(o)
    print("KERNEL_OK")
</pallas_src>

<mosaic_0001>
module attributes {stable_mosaic.version = 11 : i64} {
  func.func @bilstm_fc_kernel(%arg0: i32, %arg1: memref<1x8x8x256xf32, #tpu.memory_space<vmem>>, %arg2: memref<1x256x1024xf32, #tpu.memory_space<vmem>>, %arg3: memref<1x1x1024xf32, #tpu.memory_space<vmem>>, %arg4: memref<1x128x512xf32, #tpu.memory_space<vmem>>, %arg5: memref<1x128x512xf32, #tpu.memory_space<vmem>>, %arg6: memref<1x256x128xf32, #tpu.memory_space<vmem>>, %arg7: memref<1x1x128xf32, #tpu.memory_space<vmem>>, %arg8: memref<1x8x8x256xf32, #tpu.memory_space<vmem>>, %arg9: memref<1x8x8x128xf32, #tpu.memory_space<vmem>>) attributes {dimension_semantics = [#tpu.dimension_semantics<parallel>], iteration_bounds = array<i64: 2>, scalar_prefetch = 0 : i64, scratch_operands = 0 : i64, tpu.core_type = #tpu.core_type<tc>, window_params = [{transform_indices = @transform_0, window_bounds = array<i64: 1, 8, 8, 256>}, {transform_indices = @transform_1, window_bounds = array<i64: 1, 256, 1024>}, {transform_indices = @transform_2, window_bounds = array<i64: 1, 1, 1024>}, {transform_indices = @transform_3, window_bounds = array<i64: 1, 128, 512>}, {transform_indices = @transform_4, window_bounds = array<i64: 1, 128, 512>}, {transform_indices = @transform_5, window_bounds = array<i64: 1, 256, 128>}, {transform_indices = @transform_6, window_bounds = array<i64: 1, 1, 128>}, {transform_indices = @transform_7, window_bounds = array<i64: 1, 8, 8, 256>}, {transform_indices = @transform_8, window_bounds = array<i64: 1, 8, 8, 128>}]} {
    %c0 = arith.constant 0 : index
    %c0_0 = arith.constant 0 : index
    %c0_1 = arith.constant 0 : index
    %c0_2 = arith.constant 0 : index
    %0 = vector.load %arg1[%c0, %c0_0, %c0_1, %c0_2] : memref<1x8x8x256xf32, #tpu.memory_space<vmem>>, vector<1x8x8x256xf32>
    %1 = vector.shape_cast %0 : vector<1x8x8x256xf32> to vector<8x8x256xf32>
    %2 = vector.shape_cast %1 : vector<8x8x256xf32> to vector<64x256xf32>
    %c0_3 = arith.constant 0 : index
    %c0_4 = arith.constant 0 : index
    %c0_5 = arith.constant 0 : index
    %3 = vector.load %arg2[%c0_3, %c0_4, %c0_5] : memref<1x256x1024xf32, #tpu.memory_space<vmem>>, vector<1x256x1024xf32>
    %4 = vector.shape_cast %3 : vector<1x256x1024xf32> to vector<256x1024xf32>
    %cst = arith.constant dense<0.000000e+00> : vector<64x1024xf32>
    %5 = tpu.matmul %2, %4, %cst {dimension_numbers = #tpu.dot_dimension_numbers<[1], [0], [0], [1], [0, 0, 1, 1], [], []>} : vector<64x256xf32>, vector<256x1024xf32>, vector<64x1024xf32> -> vector<64x1024xf32>
    %c0_6 = arith.constant 0 : index
    %c0_7 = arith.constant 0 : index
    %c0_8 = arith.constant 0 : index
    %6 = vector.load %arg3[%c0_6, %c0_7, %c0_8] : memref<1x1x1024xf32, #tpu.memory_space<vmem>>, vector<1x1x1024xf32>
    %7 = vector.shape_cast %6 : vector<1x1x1024xf32> to vector<1x1024xf32>
    %8 = vector.broadcast %7 : vector<1x1024xf32> to vector<64x1024xf32>
    %9 = arith.addf %5, %8 : vector<64x1024xf32>
    %10 = vector.shape_cast %9 : vector<64x1024xf32> to vector<8x8x1024xf32>
    %c0_9 = arith.constant 0 : index
    %c0_10 = arith.constant 0 : index
    %c0_11 = arith.constant 0 : index
    %11 = vector.load %arg4[%c0_9, %c0_10, %c0_11] : memref<1x128x512xf32, #tpu.memory_space<vmem>>, vector<1x128x512xf32>
    %12 = vector.shape_cast %11 : vector<1x128x512xf32> to vector<128x512xf32>
    %c0_12 = arith.constant 0 : index
    %c0_13 = arith.constant 0 : index
    %c0_14 = arith.constant 0 : index
    %13 = vector.load %arg5[%c0_12, %c0_13, %c0_14] : memref<1x128x512xf32, #tpu.memory_space<vmem>>, vector<1x128x512xf32>
    %14 = vector.shape_cast %13 : vector<1x128x512xf32> to vector<128x512xf32>
    %cst_15 = arith.constant 0.000000e+00 : f32
    %15 = vector.broadcast %cst_15 : f32 to vector<8x128xf32>
    %cst_16 = arith.constant 0.000000e+00 : f32
    %16 = vector.broadcast %cst_16 : f32 to vector<8x128xf32>
    %cst_17 = arith.constant 0.000000e+00 : f32
    %17 = vector.broadcast %cst_17 : f32 to vector<8x128xf32>
    %cst_18 = arith.constant 0.000000e+00 : f32
    %18 = vector.broadcast %cst_18 : f32 to vector<8x128xf32>
    %19 = vector.extract_strided_slice %10 {offsets = [0, 0, 0], sizes = [1, 8, 512], strides = [1, 1, 1]} : vector<8x8x1024xf32> to vector<1x8x512xf32>
    %20 = vector.shape_cast %19 : vector<1x8x512xf32> to vector<8x512xf32>
    %cst_19 = arith.constant dense<0.000000e+00> : vector<8x512xf32>
    %21 = tpu.matmul %15, %12, %cst_19 {dimension_numbers = #tpu.dot_dimension_numbers<[1], [0], [0], [1], [0, 0, 1, 1], [], []>} : vector<8x128xf32>, vector<128x512xf32>, vector<8x512xf32> -> vector<8x512xf32>
    %22 = arith.addf %20, %21 : vector<8x512xf32>
    %23 = vector.extract_strided_slice %10 {offsets = [7, 0, 512], sizes = [1, 8, 512], strides = [1, 1, 1]} : vector<8x8x1024xf32> to vector<1x8x512xf32>
    %24 = vector.shape_cast %23 : vector<1x8x512xf32> to vector<8x512xf32>
    %cst_20 = arith.constant dense<0.000000e+00> : vector<8x512xf32>
    %25 = tpu.matmul %17, %14, %cst_20 {dimension_numbers = #tpu.dot_dimension_numbers<[1], [0], [0], [1], [0, 0, 1, 1], [], []>} : vector<8x128xf32>, vector<128x512xf32>, vector<8x512xf32> -> vector<8x512xf32>
    %26 = arith.addf %24, %25 : vector<8x512xf32>
    %27 = vector.extract_strided_slice %22 {offsets = [0, 0], sizes = [8, 128], strides = [1, 1]} : vector<8x512xf32> to vector<8x128xf32>
    %28 = arith.negf %27 : vector<8x128xf32>
    %29 = math.exp %28 : vector<8x128xf32>
    %cst_21 = arith.constant 1.000000e+00 : f32
    %30 = vector.broadcast %cst_21 : f32 to vector<8x128xf32>
    %31 = arith.addf %30, %29 : vector<8x128xf32>
    %32 = arith.divf %30, %31 : vector<8x128xf32>
    %33 = vector.extract_strided_slice %22 {offsets = [0, 128], sizes = [8, 128], strides = [1, 1]} : vector<8x512xf32> to vector<8x128xf32>
    %34 = arith.negf %33 : vector<8x128xf32>
    %35 = math.exp %34 : vector<8x128xf32>
    %cst_22 = arith.constant 1.000000e+00 : f32
    %36 = vector.broadcast %cst_22 : f32 to vector<8x128xf32>
    %37 = arith.addf %36, %35 : vector<8x128xf32>
    %38 = arith.divf %36, %37 : vector<8x128xf32>
    %39 = vector.extract_strided_slice %22 {offsets = [0, 256], sizes = [8, 128], strides = [1, 1]} : vector<8x512xf32> to vector<8x128xf32>
    %40 = math.tanh %39 : vector<8x128xf32>
    %41 = vector.extract_strided_slice %22 {offsets = [0, 384], sizes = [8, 128], strides = [1, 1]} : vector<8x512xf32> to vector<8x128xf32>
    %42 = arith.negf %41 : vector<8x128xf32>
    %43 = math.exp %42 : vector<8x128xf32>
    %cst_23 = arith.constant 1.000000e+00 : f32
    %44 = vector.broadcast %cst_23 : f32 to vector<8x128xf32>
    %45 = arith.addf %44, %43 : vector<8x128xf32>
    %46 = arith.divf %44, %45 : vector<8x128xf32>
    %47 = arith.mulf %38, %16 : vector<8x128xf32>
    %48 = arith.mulf %32, %40 : vector<8x128xf32>
    %49 = arith.addf %47, %48 : vector<8x128xf32>
    %50 = math.tanh %49 : vector<8x128xf32>
    %51 = arith.mulf %46, %50 : vector<8x128xf32>
    %52 = vector.extract_strided_slice %26 {offsets = [0, 0], sizes = [8, 128], strides = [1, 1]} : vector<8x512xf32> to vector<8x128xf32>
    %53 = arith.negf %52 : vector<8x128xf32>
    %54 = math.exp %53 : vector<8x128xf32>
    %cst_24 = arith.constant 1.000000e+00 : f32
    %55 = vector.broadcast %cst_24 : f32 to vector<8x128xf32>
    %56 = arith.addf %55, %54 : vector<8x128xf32>
    %57 = arith.divf %55, %56 : vector<8x128xf32>
    %58 = vector.extract_strided_slice %26 {offsets = [0, 128], sizes = [8, 128], strides = [1, 1]} : vector<8x512xf32> to vector<8x128xf32>
    %59 = arith.negf %58 : vector<8x128xf32>
    %60 = math.exp %59 : vector<8x128xf32>
    %cst_25 = arith.constant 1.000000e+00 : f32
    %61 = vector.broadcast %cst_25 : f32 to vector<8x128xf32>
    %62 = arith.addf %61, %60 : vector<8x128xf32>
    %63 = arith.divf %61, %62 : vector<8x128xf32>
    %64 = vector.extract_strided_slice %26 {offsets = [0, 256], sizes = [8, 128], strides = [1, 1]} : vector<8x512xf32> to vector<8x128xf32>
    %65 = math.tanh %64 : vector<8x128xf32>
    %66 = vector.extract_strided_slice %26 {offsets = [0, 384], sizes = [8, 128], strides = [1, 1]} : vector<8x512xf32> to vector<8x128xf32>
    %67 = arith.negf %66 : vector<8x128xf32>
    %68 = math.exp %67 : vector<8x128xf32>
    %cst_26 = arith.constant 1.000000e+00 : f32
    %69 = vector.broadcast %cst_26 : f32 to vector<8x128xf32>
    %70 = arith.addf %69, %68 : vector<8x128xf32>
    %71 = arith.divf %69, %70 : vector<8x128xf32>
    %72 = arith.mulf %63, %18 : vector<8x128xf32>
    %73 = arith.mulf %57, %65 : vector<8x128xf32>
    %74 = arith.addf %72, %73 : vector<8x128xf32>
    %75 = math.tanh %74 : vector<8x128xf32>
    %76 = arith.mulf %71, %75 : vector<8x128xf32>
    %c0_27 = arith.constant 0 : index
    %c0_28 = arith.constant 0 : index
    %c0_29 = arith.constant 0 : index
    %c0_30 = arith.constant 0 : index
    %77 = vector.load %arg8[%c0_27, %c0_28, %c0_29, %c0_30] : memref<1x8x8x256xf32, #tpu.memory_space<vmem>>, vector<1x1x8x128xf32>
    %78 = vector.shape_cast %77 : vector<1x1x8x128xf32> to vector<8x128xf32>
    %79 = vector.shape_cast %51 : vector<8x128xf32> to vector<1x1x8x128xf32>
    tpu.vector_store %arg8[%c0_27, %c0_28, %c0_29, %c0_30], %79 {strides = array<i32>} : memref<1x8x8x256xf32, #tpu.memory_space<vmem>>, vector<1x1x8x128xf32>,
    %c0_31 = arith.constant 0 : index
    %c7 = arith.constant 7 : index
    %c0_32 = arith.constant 0 : index
    %c128 = arith.constant 128 : index
    %80 = vector.load %arg8[%c0_31, %c7, %c0_32, %c128] : memref<1x8x8x256xf32, #tpu.memory_space<vmem>>, vector<1x1x8x128xf32>
    %81 = vector.shape_cast %80 : vector<1x1x8x128xf32> to vector<8x128xf32>
    %82 = vector.shape_cast %76 : vector<8x128xf32> to vector<1x1x8x128xf32>
    tpu.vector_store %arg8[%c0_31, %c7, %c0_32, %c128], %82 {strides = array<i32>} : memref<1x8x8x256xf32, #tpu.memory_space<vmem>>, vector<1x1x8x128xf32>,
    %83 = vector.extract_strided_slice %10 {offsets = [1, 0, 0], sizes = [1, 8, 512], strides = [1, 1, 1]} : vector<8x8x1024xf32> to vector<1x8x512xf32>
    %84 = vector.shape_cast %83 : vector<1x8x512xf32> to vector<8x512xf32>
    %cst_33 = arith.constant dense<0.000000e+00> : vector<8x512xf32>
    %85 = tpu.matmul %51, %12, %cst_33 {dimension_numbers = #tpu.dot_dimension_numbers<[1], [0], [0], [1], [0, 0, 1, 1], [], []>} : vector<8x128xf32>, vector<128x512xf32>, vector<8x512xf32> -> vector<8x512xf32>
    %86 = arith.addf %84, %85 : vector<8x512xf32>
    %87 = vector.extract_strided_slice %10 {offsets = [6, 0, 512], sizes = [1, 8, 512], strides = [1, 1, 1]} : vector<8x8x1024xf32> to vector<1x8x512xf32>
    %88 = vector.shape_cast %87 : vector<1x8x512xf32> to vector<8x512xf32>
    %cst_34 = arith.constant dense<0.000000e+00> : vector<8x512xf32>
    %89 = tpu.matmul %76, %14, %cst_34 {dimension_numbers = #tpu.dot_dimension_numbers<[1], [0], [0], [1], [0, 0, 1, 1], [], []>} : vector<8x128xf32>, vector<128x512xf32>, vector<8x512xf32> -> vector<8x512xf32>
    %90 = arith.addf %88, %89 : vector<8x512xf32>
    %91 = vector.extract_strided_slice %86 {offsets = [0, 0], sizes = [8, 128], strides = [1, 1]} : vector<8x512xf32> to vector<8x128xf32>
    %92 = arith.negf %91 : vector<8x128xf32>
    %93 = math.exp %92 : vector<8x128xf32>
    %cst_35 = arith.constant 1.000000e+00 : f32
    %94 = vector.broadcast %cst_35 : f32 to vector<8x128xf32>
    %95 = arith.addf %94, %93 : vector<8x128xf32>
    %96 = arith.divf %94, %95 : vector<8x128xf32>
    %97 = vector.extract_strided_slice %86 {offsets = [0, 128], sizes = [8, 128], strides = [1, 1]} : vector<8x512xf32> to vector<8x128xf32>
    %98 = arith.negf %97 : vector<8x128xf32>
    %99 = math.exp %98 : vector<8x128xf32>
    %cst_36 = arith.constant 1.000000e+00 : f32
    %100 = vector.broadcast %cst_36 : f32 to vector<8x128xf32>
    %101 = arith.addf %100, %99 : vector<8x128xf32>
    %102 = arith.divf %100, %101 : vector<8x128xf32>
    %103 = vector.extract_strided_slice %86 {offsets = [0, 256], sizes = [8, 128], strides = [1, 1]} : vector<8x512xf32> to vector<8x128xf32>
    %104 = math.tanh %103 : vector<8x128xf32>
    %105 = vector.extract_strided_slice %86 {offsets = [0, 384], sizes = [8, 128], strides = [1, 1]} : vector<8x512xf32> to vector<8x128xf32>
    %106 = arith.negf %105 : vector<8x128xf32>
    %107 = math.exp %106 : vector<8x128xf32>
    %cst_37 = arith.constant 1.000000e+00 : f32
    %108 = vector.broadcast %cst_37 : f32 to vector<8x128xf32>
    %109 = arith.addf %108, %107 : vector<8x128xf32>
    %110 = arith.divf %108, %109 : vector<8x128xf32>
    %111 = arith.mulf %102, %49 : vector<8x128xf32>
    %112 = arith.mulf %96, %104 : vector<8x128xf32>
    %113 = arith.addf %111, %112 : vector<8x128xf32>
    %114 = math.tanh %113 : vector<8x128xf32>
    %115 = arith.mulf %110, %114 : vector<8x128xf32>
    %116 = vector.extract_strided_slice %90 {offsets = [0, 0], sizes = [8, 128], strides = [1, 1]} : vector<8x512xf32> to vector<8x128xf32>
    %117 = arith.negf %116 : vector<8x128xf32>
    %118 = math.exp %117 : vector<8x128xf32>
    %cst_38 = arith.constant 1.000000e+00 : f32
    %119 = vector.broadcast %cst_38 : f32 to vector<8x128xf32>
    %120 = arith.addf %119, %118 : vector<8x128xf32>
    %121 = arith.divf %119, %120 : vector<8x128xf32>
    %122 = vector.extract_strided_slice %90 {offsets = [0, 128], sizes = [8, 128], strides = [1, 1]} : vector<8x512xf32> to vector<8x128xf32>
    %123 = arith.negf %122 : vector<8x128xf32>
    %124 = math.exp %123 : vector<8x128xf32>
    %cst_39 = arith.constant 1.000000e+00 : f32
    %125 = vector.broadcast %cst_39 : f32 to vector<8x128xf32>
    %126 = arith.addf %125, %124 : vector<8x128xf32>
    %127 = arith.divf %125, %126 : vector<8x128xf32>
    %128 = vector.extract_strided_slice %90 {offsets = [0, 256], sizes = [8, 128], strides = [1, 1]} : vector<8x512xf32> to vector<8x128xf32>
    %129 = math.tanh %128 : vector<8x128xf32>
    %130 = vector.extract_strided_slice %90 {offsets = [0, 384], sizes = [8, 128], strides = [1, 1]} : vector<8x512xf32> to vector<8x128xf32>
    %131 = arith.negf %130 : vector<8x128xf32>
    %132 = math.exp %131 : vector<8x128xf32>
    %cst_40 = arith.constant 1.000000e+00 : f32
    %133 = vector.broadcast %cst_40 : f32 to vector<8x128xf32>
    %134 = arith.addf %133, %132 : vector<8x128xf32>
    %135 = arith.divf %133, %134 : vector<8x128xf32>
    %136 = arith.mulf %127, %74 : vector<8x128xf32>
    %137 = arith.mulf %121, %129 : vector<8x128xf32>
    %138 = arith.addf %136, %137 : vector<8x128xf32>
    %139 = math.tanh %138 : vector<8x128xf32>
    %140 = arith.mulf %135, %139 : vector<8x128xf32>
    %c0_41 = arith.constant 0 : index
    %c1 = arith.constant 1 : index
    %c0_42 = arith.constant 0 : index
    %c0_43 = arith.constant 0 : index
    %141 = vector.load %arg8[%c0_41, %c1, %c0_42, %c0_43] : memref<1x8x8x256xf32, #tpu.memory_space<vmem>>, vector<1x1x8x128xf32>
    %142 = vector.shape_cast %141 : vector<1x1x8x128xf32> to vector<8x128xf32>
    %143 = vector.shape_cast %115 : vector<8x128xf32> to vector<1x1x8x128xf32>
    tpu.vector_store %arg8[%c0_41, %c1, %c0_42, %c0_43], %143 {strides = array<i32>} : memref<1x8x8x256xf32, #tpu.memory_space<vmem>>, vector<1x1x8x128xf32>,
    %c0_44 = arith.constant 0 : index
    %c6 = arith.constant 6 : index
    %c0_45 = arith.constant 0 : index
    %c128_46 = arith.constant 128 : index
    %144 = vector.load %arg8[%c0_44, %c6, %c0_45, %c128_46] : memref<1x8x8x256xf32, #tpu.memory_space<vmem>>, vector<1x1x8x128xf32>
    %145 = vector.shape_cast %144 : vector<1x1x8x128xf32> to vector<8x128xf32>
    %146 = vector.shape_cast %140 : vector<8x128xf32> to vector<1x1x8x128xf32>
    tpu.vector_store %arg8[%c0_44, %c6, %c0_45, %c128_46], %146 {strides = array<i32>} : memref<1x8x8x256xf32, #tpu.memory_space<vmem>>, vector<1x1x8x128xf32>,
    %147 = vector.extract_strided_slice %10 {offsets = [2, 0, 0], sizes = [1, 8, 512], strides = [1, 1, 1]} : vector<8x8x1024xf32> to vector<1x8x512xf32>
    %148 = vector.shape_cast %147 : vector<1x8x512xf32> to vector<8x512xf32>
    %cst_47 = arith.constant dense<0.000000e+00> : vector<8x512xf32>
    %149 = tpu.matmul %115, %12, %cst_47 {dimension_numbers = #tpu.dot_dimension_numbers<[1], [0], [0], [1], [0, 0, 1, 1], [], []>} : vector<8x128xf32>, vector<128x512xf32>, vector<8x512xf32> -> vector<8x512xf32>
    %150 = arith.addf %148, %149 : vector<8x512xf32>
    %151 = vector.extract_strided_slice %10 {offsets = [5, 0, 512], sizes = [1, 8, 512], strides = [1, 1, 1]} : vector<8x8x1024xf32> to vector<1x8x512xf32>
    %152 = vector.shape_cast %151 : vector<1x8x512xf32> to vector<8x512xf32>
    %cst_48 = arith.constant dense<0.000000e+00> : vector<8x512xf32>
    %153 = tpu.matmul %140, %14, %cst_48 {dimension_numbers = #tpu.dot_dimension_numbers<[1], [0], [0], [1], [0, 0, 1, 1], [], []>} : vector<8x128xf32>, vector<128x512xf32>, vector<8x512xf32> -> vector<8x512xf32>
    %154 = arith.addf %152, %153 : vector<8x512xf32>
    %155 = vector.extract_strided_slice %150 {offsets = [0, 0], sizes = [8, 128], strides = [1, 1]} : vector<8x512xf32> to vector<8x128xf32>
    %156 = arith.negf %155 : vector<8x128xf32>
    %157 = math.exp %156 : vector<8x128xf32>
    %cst_49 = arith.constant 1.000000e+00 : f32
    %158 = vector.broadcast %cst_49 : f32 to vector<8x128xf32>
    %159 = arith.addf %158, %157 : vector<8x128xf32>
    %160 = arith.divf %158, %159 : vector<8x128xf32>
    %161 = vector.extract_strided_slice %150 {offsets = [0, 128], sizes = [8, 128], strides = [1, 1]} : vector<8x512xf32> to vector<8x128xf32>
    %162 = arith.negf %161 : vector<8x128xf32>
    %163 = math.exp %162 : vector<8x128xf32>
    %cst_50 = arith.constant 1.000000e+00 : f32
    %164 = vector.broadcast %cst_50 : f32 to vector<8x128xf32>
    %165 = arith.addf %164, %163 : vector<8x128xf32>
    %166 = arith.divf %164, %165 : vector<8x128xf32>
    %167 = vector.extract_strided_slice %150 {offsets = [0, 256], sizes = [8, 128], strides = [1, 1]} : vector<8x512xf32> to vector<8x128xf32>
    %168 = math.tanh %167 : vector<8x128xf32>
    %169 = vector.extract_strided_slice %150 {offsets = [0, 384], sizes = [8, 128], strides = [1, 1]} : vector<8x512xf32> to vector<8x128xf32>
    %170 = arith.negf %169 : vector<8x128xf32>
    %171 = math.exp %170 : vector<8x128xf32>
    %cst_51 = arith.constant 1.000000e+00 : f32
    %172 = vector.broadcast %cst_51 : f32 to vector<8x128xf32>
    %173 = arith.addf %172, %171 : vector<8x128xf32>
    %174 = arith.divf %172, %173 : vector<8x128xf32>
    %175 = arith.mulf %166, %113 : vector<8x128xf32>
    %176 = arith.mulf %160, %168 : vector<8x128xf32>
    %177 = arith.addf %175, %176 : vector<8x128xf32>
    %178 = math.tanh %177 : vector<8x128xf32>
    %179 = arith.mulf %174, %178 : vector<8x128xf32>
    %180 = vector.extract_strided_slice %154 {offsets = [0, 0], sizes = [8, 128], strides = [1, 1]} : vector<8x512xf32> to vector<8x128xf32>
    %181 = arith.negf %180 : vector<8x128xf32>
    %182 = math.exp %181 : vector<8x128xf32>
    %cst_52 = arith.constant 1.000000e+00 : f32
    %183 = vector.broadcast %cst_52 : f32 to vector<8x128xf32>
    %184 = arith.addf %183, %182 : vector<8x128xf32>
    %185 = arith.divf %183, %184 : vector<8x128xf32>
    %186 = vector.extract_strided_slice %154 {offsets = [0, 128], sizes = [8, 128], strides = [1, 1]} : vector<8x512xf32> to vector<8x128xf32>
    %187 = arith.negf %186 : vector<8x128xf32>
    %188 = math.exp %187 : vector<8x128xf32>
    %cst_53 = arith.constant 1.000000e+00 : f32
    %189 = vector.broadcast %cst_53 : f32 to vector<8x128xf32>
    %190 = arith.addf %189, %188 : vector<8x128xf32>
    %191 = arith.divf %189, %190 : vector<8x128xf32>
    %192 = vector.extract_strided_slice %154 {offsets = [0, 256], sizes = [8, 128], strides = [1, 1]} : vector<8x512xf32> to vector<8x128xf32>
    %193 = math.tanh %192 : vector<8x128xf32>
    %194 = vector.extract_strided_slice %154 {offsets = [0, 384], sizes = [8, 128], strides = [1, 1]} : vector<8x512xf32> to vector<8x128xf32>
    %195 = arith.negf %194 : vector<8x128xf32>
    %196 = math.exp %195 : vector<8x128xf32>
    %cst_54 = arith.constant 1.000000e+00 : f32
    %197 = vector.broadcast %cst_54 : f32 to vector<8x128xf32>
    %198 = arith.addf %197, %196 : vector<8x128xf32>
    %199 = arith.divf %197, %198 : vector<8x128xf32>
    %200 = arith.mulf %191, %138 : vector<8x128xf32>
    %201 = arith.mulf %185, %193 : vector<8x128xf32>
    %202 = arith.addf %200, %201 : vector<8x128xf32>
    %203 = math.tanh %202 : vector<8x128xf32>
    %204 = arith.mulf %199, %203 : vector<8x128xf32>
    %c0_55 = arith.constant 0 : index
    %c2 = arith.constant 2 : index
    %c0_56 = arith.constant 0 : index
    %c0_57 = arith.constant 0 : index
    %205 = vector.load %arg8[%c0_55, %c2, %c0_56, %c0_57] : memref<1x8x8x256xf32, #tpu.memory_space<vmem>>, vector<1x1x8x128xf32>
    %206 = vector.shape_cast %205 : vector<1x1x8x128xf32> to vector<8x128xf32>
    %207 = vector.shape_cast %179 : vector<8x128xf32> to vector<1x1x8x128xf32>
    tpu.vector_store %arg8[%c0_55, %c2, %c0_56, %c0_57], %207 {strides = array<i32>} : memref<1x8x8x256xf32, #tpu.memory_space<vmem>>, vector<1x1x8x128xf32>,
    %c0_58 = arith.constant 0 : index
    %c5 = arith.constant 5 : index
    %c0_59 = arith.constant 0 : index
    %c128_60 = arith.constant 128 : index
    %208 = vector.load %arg8[%c0_58, %c5, %c0_59, %c128_60] : memref<1x8x8x256xf32, #tpu.memory_space<vmem>>, vector<1x1x8x128xf32>
    %209 = vector.shape_cast %208 : vector<1x1x8x128xf32> to vector<8x128xf32>
    %210 = vector.shape_cast %204 : vector<8x128xf32> to vector<1x1x8x128xf32>
    tpu.vector_store %arg8[%c0_58, %c5, %c0_59, %c128_60], %210 {strides = array<i32>} : memref<1x8x8x256xf32, #tpu.memory_space<vmem>>, vector<1x1x8x128xf32>,
    %211 = vector.extract_strided_slice %10 {offsets = [3, 0, 0], sizes = [1, 8, 512], strides = [1, 1, 1]} : vector<8x8x1024xf32> to vector<1x8x512xf32>
    %212 = vector.shape_cast %211 : vector<1x8x512xf32> to vector<8x512xf32>
    %cst_61 = arith.constant dense<0.000000e+00> : vector<8x512xf32>
    %213 = tpu.matmul %179, %12, %cst_61 {dimension_numbers = #tpu.dot_dimension_numbers<[1], [0], [0], [1], [0, 0, 1, 1], [], []>} : vector<8x128xf32>, vector<128x512xf32>, vector<8x512xf32> -> vector<8x512xf32>
    %214 = arith.addf %212, %213 : vector<8x512xf32>
    %215 = vector.extract_strided_slice %10 {offsets = [4, 0, 512], sizes = [1, 8, 512], strides = [1, 1, 1]} : vector<8x8x1024xf32> to vector<1x8x512xf32>
    %216 = vector.shape_cast %215 : vector<1x8x512xf32> to vector<8x512xf32>
    %cst_62 = arith.constant dense<0.000000e+00> : vector<8x512xf32>
    %217 = tpu.matmul %204, %14, %cst_62 {dimension_numbers = #tpu.dot_dimension_numbers<[1], [0], [0], [1], [0, 0, 1, 1], [], []>} : vector<8x128xf32>, vector<128x512xf32>, vector<8x512xf32> -> vector<8x512xf32>
    %218 = arith.addf %216, %217 : vector<8x512xf32>
    %219 = vector.extract_strided_slice %214 {offsets = [0, 0], sizes = [8, 128], strides = [1, 1]} : vector<8x512xf32> to vector<8x128xf32>
    %220 = arith.negf %219 : vector<8x128xf32>
    %221 = math.exp %220 : vector<8x128xf32>
    %cst_63 = arith.constant 1.000000e+00 : f32
    %222 = vector.broadcast %cst_63 : f32 to vector<8x128xf32>
    %223 = arith.addf %222, %221 : vector<8x128xf32>
    %224 = arith.divf %222, %223 : vector<8x128xf32>
    %225 = vector.extract_strided_slice %214 {offsets = [0, 128], sizes = [8, 128], strides = [1, 1]} : vector<8x512xf32> to vector<8x128xf32>
    %226 = arith.negf %225 : vector<8x128xf32>
    %227 = math.exp %226 : vector<8x128xf32>
    %cst_64 = arith.constant 1.000000e+00 : f32
    %228 = vector.broadcast %cst_64 : f32 to vector<8x128xf32>
    %229 = arith.addf %228, %227 : vector<8x128xf32>
    %230 = arith.divf %228, %229 : vector<8x128xf32>
    %231 = vector.extract_strided_slice %214 {offsets = [0, 256], sizes = [8, 128], strides = [1, 1]} : vector<8x512xf32> to vector<8x128xf32>
    %232 = math.tanh %231 : vector<8x128xf32>
    %233 = vector.extract_strided_slice %214 {offsets = [0, 384], sizes = [8, 128], strides = [1, 1]} : vector<8x512xf32> to vector<8x128xf32>
    %234 = arith.negf %233 : vector<8x128xf32>
    %235 = math.exp %234 : vector<8x128xf32>
    %cst_65 = arith.constant 1.000000e+00 : f32
    %236 = vector.broadcast %cst_65 : f32 to vector<8x128xf32>
    %237 = arith.addf %236, %235 : vector<8x128xf32>
    %238 = arith.divf %236, %237 : vector<8x128xf32>
    %239 = arith.mulf %230, %177 : vector<8x128xf32>
    %240 = arith.mulf %224, %232 : vector<8x128xf32>
    %241 = arith.addf %239, %240 : vector<8x128xf32>
    %242 = math.tanh %241 : vector<8x128xf32>
    %243 = arith.mulf %238, %242 : vector<8x128xf32>
    %244 = vector.extract_strided_slice %218 {offsets = [0, 0], sizes = [8, 128], strides = [1, 1]} : vector<8x512xf32> to vector<8x128xf32>
    %245 = arith.negf %244 : vector<8x128xf32>
    %246 = math.exp %245 : vector<8x128xf32>
    %cst_66 = arith.constant 1.000000e+00 : f32
    %247 = vector.broadcast %cst_66 : f32 to vector<8x128xf32>
    %248 = arith.addf %247, %246 : vector<8x128xf32>
    %249 = arith.divf %247, %248 : vector<8x128xf32>
    %250 = vector.extract_strided_slice %218 {offsets = [0, 128], sizes = [8, 128], strides = [1, 1]} : vector<8x512xf32> to vector<8x128xf32>
    %251 = arith.negf %250 : vector<8x128xf32>
    %252 = math.exp %251 : vector<8x128xf32>
    %cst_67 = arith.constant 1.000000e+00 : f32
    %253 = vector.broadcast %cst_67 : f32 to vector<8x128xf32>
    %254 = arith.addf %253, %252 : vector<8x128xf32>
    %255 = arith.divf %253, %254 : vector<8x128xf32>
    %256 = vector.extract_strided_slice %218 {offsets = [0, 256], sizes = [8, 128], strides = [1, 1]} : vector<8x512xf32> to vector<8x128xf32>
    %257 = math.tanh %256 : vector<8x128xf32>
    %258 = vector.extract_strided_slice %218 {offsets = [0, 384], sizes = [8, 128], strides = [1, 1]} : vector<8x512xf32> to vector<8x128xf32>
    %259 = arith.negf %258 : vector<8x128xf32>
    %260 = math.exp %259 : vector<8x128xf32>
    %cst_68 = arith.constant 1.000000e+00 : f32
    %261 = vector.broadcast %cst_68 : f32 to vector<8x128xf32>
    %262 = arith.addf %261, %260 : vector<8x128xf32>
    %263 = arith.divf %261, %262 : vector<8x128xf32>
    %264 = arith.mulf %255, %202 : vector<8x128xf32>
    %265 = arith.mulf %249, %257 : vector<8x128xf32>
    %266 = arith.addf %264, %265 : vector<8x128xf32>
    %267 = math.tanh %266 : vector<8x128xf32>
    %268 = arith.mulf %263, %267 : vector<8x128xf32>
    %c0_69 = arith.constant 0 : index
    %c3 = arith.constant 3 : index
    %c0_70 = arith.constant 0 : index
    %c0_71 = arith.constant 0 : index
    %269 = vector.load %arg8[%c0_69, %c3, %c0_70, %c0_71] : memref<1x8x8x256xf32, #tpu.memory_space<vmem>>, vector<1x1x8x128xf32>
    %270 = vector.shape_cast %269 : vector<1x1x8x128xf32> to vector<8x128xf32>
    %271 = vector.shape_cast %243 : vector<8x128xf32> to vector<1x1x8x128xf32>
    tpu.vector_store %arg8[%c0_69, %c3, %c0_70, %c0_71], %271 {strides = array<i32>} : memref<1x8x8x256xf32, #tpu.memory_space<vmem>>, vector<1x1x8x128xf32>,
    %c0_72 = arith.constant 0 : index
    %c4 = arith.constant 4 : index
    %c0_73 = arith.constant 0 : index
    %c128_74 = arith.constant 128 : index
    %272 = vector.load %arg8[%c0_72, %c4, %c0_73, %c128_74] : memref<1x8x8x256xf32, #tpu.memory_space<vmem>>, vector<1x1x8x128xf32>
    %273 = vector.shape_cast %272 : vector<1x1x8x128xf32> to vector<8x128xf32>
    %274 = vector.shape_cast %268 : vector<8x128xf32> to vector<1x1x8x128xf32>
    tpu.vector_store %arg8[%c0_72, %c4, %c0_73, %c128_74], %274 {strides = array<i32>} : memref<1x8x8x256xf32, #tpu.memory_space<vmem>>, vector<1x1x8x128xf32>,
    %275 = vector.extract_strided_slice %10 {offsets = [4, 0, 0], sizes = [1, 8, 512], strides = [1, 1, 1]} : vector<8x8x1024xf32> to vector<1x8x512xf32>
    %276 = vector.shape_cast %275 : vector<1x8x512xf32> to vector<8x512xf32>
    %cst_75 = arith.constant dense<0.000000e+00> : vector<8x512xf32>
    %277 = tpu.matmul %243, %12, %cst_75 {dimension_numbers = #tpu.dot_dimension_numbers<[1], [0], [0], [1], [0, 0, 1, 1], [], []>} : vector<8x128xf32>, vector<128x512xf32>, vector<8x512xf32> -> vector<8x512xf32>
    %278 = arith.addf %276, %277 : vector<8x512xf32>
    %279 = vector.extract_strided_slice %10 {offsets = [3, 0, 512], sizes = [1, 8, 512], strides = [1, 1, 1]} : vector<8x8x1024xf32> to vector<1x8x512xf32>
    %280 = vector.shape_cast %279 : vector<1x8x512xf32> to vector<8x512xf32>
    %cst_76 = arith.constant dense<0.000000e+00> : vector<8x512xf32>
    %281 = tpu.matmul %268, %14, %cst_76 {dimension_numbers = #tpu.dot_dimension_numbers<[1], [0], [0], [1], [0, 0, 1, 1], [], []>} : vector<8x128xf32>, vector<128x512xf32>, vector<8x512xf32> -> vector<8x512xf32>
    %282 = arith.addf %280, %281 : vector<8x512xf32>
    %283 = vector.extract_strided_slice %278 {offsets = [0, 0], sizes = [8, 128], strides = [1, 1]} : vector<8x512xf32> to vector<8x128xf32>
    %284 = arith.negf %283 : vector<8x128xf32>
    %285 = math.exp %284 : vector<8x128xf32>
    %cst_77 = arith.constant 1.000000e+00 : f32
    %286 = vector.broadcast %cst_77 : f32 to vector<8x128xf32>
    %287 = arith.addf %286, %285 : vector<8x128xf32>
    %288 = arith.divf %286, %287 : vector<8x128xf32>
    %289 = vector.extract_strided_slice %278 {offsets = [0, 128], sizes = [8, 128], strides = [1, 1]} : vector<8x512xf32> to vector<8x128xf32>
    %290 = arith.negf %289 : vector<8x128xf32>
    %291 = math.exp %290 : vector<8x128xf32>
    %cst_78 = arith.constant 1.000000e+00 : f32
    %292 = vector.broadcast %cst_78 : f32 to vector<8x128xf32>
    %293 = arith.addf %292, %291 : vector<8x128xf32>
    %294 = arith.divf %292, %293 : vector<8x128xf32>
    %295 = vector.extract_strided_slice %278 {offsets = [0, 256], sizes = [8, 128], strides = [1, 1]} : vector<8x512xf32> to vector<8x128xf32>
    %296 = math.tanh %295 : vector<8x128xf32>
    %297 = vector.extract_strided_slice %278 {offsets = [0, 384], sizes = [8, 128], strides = [1, 1]} : vector<8x512xf32> to vector<8x128xf32>
    %298 = arith.negf %297 : vector<8x128xf32>
    %299 = math.exp %298 : vector<8x128xf32>
    %cst_79 = arith.constant 1.000000e+00 : f32
    %300 = vector.broadcast %cst_79 : f32 to vector<8x128xf32>
    %301 = arith.addf %300, %299 : vector<8x128xf32>
    %302 = arith.divf %300, %301 : vector<8x128xf32>
    %303 = arith.mulf %294, %241 : vector<8x128xf32>
    %304 = arith.mulf %288, %296 : vector<8x128xf32>
    %305 = arith.addf %303, %304 : vector<8x128xf32>
    %306 = math.tanh %305 : vector<8x128xf32>
    %307 = arith.mulf %302, %306 : vector<8x128xf32>
    %308 = vector.extract_strided_slice %282 {offsets = [0, 0], sizes = [8, 128], strides = [1, 1]} : vector<8x512xf32> to vector<8x128xf32>
    %309 = arith.negf %308 : vector<8x128xf32>
    %310 = math.exp %309 : vector<8x128xf32>
    %cst_80 = arith.constant 1.000000e+00 : f32
    %311 = vector.broadcast %cst_80 : f32 to vector<8x128xf32>
    %312 = arith.addf %311, %310 : vector<8x128xf32>
    %313 = arith.divf %311, %312 : vector<8x128xf32>
    %314 = vector.extract_strided_slice %282 {offsets = [0, 128], sizes = [8, 128], strides = [1, 1]} : vector<8x512xf32> to vector<8x128xf32>
    %315 = arith.negf %314 : vector<8x128xf32>
    %316 = math.exp %315 : vector<8x128xf32>
    %cst_81 = arith.constant 1.000000e+00 : f32
    %317 = vector.broadcast %cst_81 : f32 to vector<8x128xf32>
    %318 = arith.addf %317, %316 : vector<8x128xf32>
    %319 = arith.divf %317, %318 : vector<8x128xf32>
    %320 = vector.extract_strided_slice %282 {offsets = [0, 256], sizes = [8, 128], strides = [1, 1]} : vector<8x512xf32> to vector<8x128xf32>
    %321 = math.tanh %320 : vector<8x128xf32>
    %322 = vector.extract_strided_slice %282 {offsets = [0, 384], sizes = [8, 128], strides = [1, 1]} : vector<8x512xf32> to vector<8x128xf32>
    %323 = arith.negf %322 : vector<8x128xf32>
    %324 = math.exp %323 : vector<8x128xf32>
    %cst_82 = arith.constant 1.000000e+00 : f32
    %325 = vector.broadcast %cst_82 : f32 to vector<8x128xf32>
    %326 = arith.addf %325, %324 : vector<8x128xf32>
    %327 = arith.divf %325, %326 : vector<8x128xf32>
    %328 = arith.mulf %319, %266 : vector<8x128xf32>
    %329 = arith.mulf %313, %321 : vector<8x128xf32>
    %330 = arith.addf %328, %329 : vector<8x128xf32>
    %331 = math.tanh %330 : vector<8x128xf32>
    %332 = arith.mulf %327, %331 : vector<8x128xf32>
    %c0_83 = arith.constant 0 : index
    %c4_84 = arith.constant 4 : index
    %c0_85 = arith.constant 0 : index
    %c0_86 = arith.constant 0 : index
    %333 = vector.load %arg8[%c0_83, %c4_84, %c0_85, %c0_86] : memref<1x8x8x256xf32, #tpu.memory_space<vmem>>, vector<1x1x8x128xf32>
    %334 = vector.shape_cast %333 : vector<1x1x8x128xf32> to vector<8x128xf32>
    %335 = vector.shape_cast %307 : vector<8x128xf32> to vector<1x1x8x128xf32>
    tpu.vector_store %arg8[%c0_83, %c4_84, %c0_85, %c0_86], %335 {strides = array<i32>} : memref<1x8x8x256xf32, #tpu.memory_space<vmem>>, vector<1x1x8x128xf32>,
    %c0_87 = arith.constant 0 : index
    %c3_88 = arith.constant 3 : index
    %c0_89 = arith.constant 0 : index
    %c128_90 = arith.constant 128 : index
    %336 = vector.load %arg8[%c0_87, %c3_88, %c0_89, %c128_90] : memref<1x8x8x256xf32, #tpu.memory_space<vmem>>, vector<1x1x8x128xf32>
    %337 = vector.shape_cast %336 : vector<1x1x8x128xf32> to vector<8x128xf32>
    %338 = vector.shape_cast %332 : vector<8x128xf32> to vector<1x1x8x128xf32>
    tpu.vector_store %arg8[%c0_87, %c3_88, %c0_89, %c128_90], %338 {strides = array<i32>} : memref<1x8x8x256xf32, #tpu.memory_space<vmem>>, vector<1x1x8x128xf32>,
    %339 = vector.extract_strided_slice %10 {offsets = [5, 0, 0], sizes = [1, 8, 512], strides = [1, 1, 1]} : vector<8x8x1024xf32> to vector<1x8x512xf32>
    %340 = vector.shape_cast %339 : vector<1x8x512xf32> to vector<8x512xf32>
    %cst_91 = arith.constant dense<0.000000e+00> : vector<8x512xf32>
    %341 = tpu.matmul %307, %12, %cst_91 {dimension_numbers = #tpu.dot_dimension_numbers<[1], [0], [0], [1], [0, 0, 1, 1], [], []>} : vector<8x128xf32>, vector<128x512xf32>, vector<8x512xf32> -> vector<8x512xf32>
    %342 = arith.addf %340, %341 : vector<8x512xf32>
    %343 = vector.extract_strided_slice %10 {offsets = [2, 0, 512], sizes = [1, 8, 512], strides = [1, 1, 1]} : vector<8x8x1024xf32> to vector<1x8x512xf32>
    %344 = vector.shape_cast %343 : vector<1x8x512xf32> to vector<8x512xf32>
    %cst_92 = arith.constant dense<0.000000e+00> : vector<8x512xf32>
    %345 = tpu.matmul %332, %14, %cst_92 {dimension_numbers = #tpu.dot_dimension_numbers<[1], [0], [0], [1], [0, 0, 1, 1], [], []>} : vector<8x128xf32>, vector<128x512xf32>, vector<8x512xf32> -> vector<8x512xf32>
    %346 = arith.addf %344, %345 : vector<8x512xf32>
    %347 = vector.extract_strided_slice %342 {offsets = [0, 0], sizes = [8, 128], strides = [1, 1]} : vector<8x512xf32> to vector<8x128xf32>
    %348 = arith.negf %347 : vector<8x128xf32>
    %349 = math.exp %348 : vector<8x128xf32>
    %cst_93 = arith.constant 1.000000e+00 : f32
    %350 = vector.broadcast %cst_93 : f32 to vector<8x128xf32>
    %351 = arith.addf %350, %349 : vector<8x128xf32>
    %352 = arith.divf %350, %351 : vector<8x128xf32>
    %353 = vector.extract_strided_slice %342 {offsets = [0, 128], sizes = [8, 128], strides = [1, 1]} : vector<8x512xf32> to vector<8x128xf32>
    %354 = arith.negf %353 : vector<8x128xf32>
    %355 = math.exp %354 : vector<8x128xf32>
    %cst_94 = arith.constant 1.000000e+00 : f32
    %356 = vector.broadcast %cst_94 : f32 to vector<8x128xf32>
    %357 = arith.addf %356, %355 : vector<8x128xf32>
    %358 = arith.divf %356, %357 : vector<8x128xf32>
    %359 = vector.extract_strided_slice %342 {offsets = [0, 256], sizes = [8, 128], strides = [1, 1]} : vector<8x512xf32> to vector<8x128xf32>
    %360 = math.tanh %359 : vector<8x128xf32>
    %361 = vector.extract_strided_slice %342 {offsets = [0, 384], sizes = [8, 128], strides = [1, 1]} : vector<8x512xf32> to vector<8x128xf32>
    %362 = arith.negf %361 : vector<8x128xf32>
    %363 = math.exp %362 : vector<8x128xf32>
    %cst_95 = arith.constant 1.000000e+00 : f32
    %364 = vector.broadcast %cst_95 : f32 to vector<8x128xf32>
    %365 = arith.addf %364, %363 : vector<8x128xf32>
    %366 = arith.divf %364, %365 : vector<8x128xf32>
    %367 = arith.mulf %358, %305 : vector<8x128xf32>
    %368 = arith.mulf %352, %360 : vector<8x128xf32>
    %369 = arith.addf %367, %368 : vector<8x128xf32>
    %370 = math.tanh %369 : vector<8x128xf32>
    %371 = arith.mulf %366, %370 : vector<8x128xf32>
    %372 = vector.extract_strided_slice %346 {offsets = [0, 0], sizes = [8, 128], strides = [1, 1]} : vector<8x512xf32> to vector<8x128xf32>
    %373 = arith.negf %372 : vector<8x128xf32>
    %374 = math.exp %373 : vector<8x128xf32>
    %cst_96 = arith.constant 1.000000e+00 : f32
    %375 = vector.broadcast %cst_96 : f32 to vector<8x128xf32>
    %376 = arith.addf %375, %374 : vector<8x128xf32>
    %377 = arith.divf %375, %376 : vector<8x128xf32>
    %378 = vector.extract_strided_slice %346 {offsets = [0, 128], sizes = [8, 128], strides = [1, 1]} : vector<8x512xf32> to vector<8x128xf32>
    %379 = arith.negf %378 : vector<8x128xf32>
    %380 = math.exp %379 : vector<8x128xf32>
    %cst_97 = arith.constant 1.000000e+00 : f32
    %381 = vector.broadcast %cst_97 : f32 to vector<8x128xf32>
    %382 = arith.addf %381, %380 : vector<8x128xf32>
    %383 = arith.divf %381, %382 : vector<8x128xf32>
    %384 = vector.extract_strided_slice %346 {offsets = [0, 256], sizes = [8, 128], strides = [1, 1]} : vector<8x512xf32> to vector<8x128xf32>
    %385 = math.tanh %384 : vector<8x128xf32>
    %386 = vector.extract_strided_slice %346 {offsets = [0, 384], sizes = [8, 128], strides = [1, 1]} : vector<8x512xf32> to vector<8x128xf32>
    %387 = arith.negf %386 : vector<8x128xf32>
    %388 = math.exp %387 : vector<8x128xf32>
    %cst_98 = arith.constant 1.000000e+00 : f32
    %389 = vector.broadcast %cst_98 : f32 to vector<8x128xf32>
    %390 = arith.addf %389, %388 : vector<8x128xf32>
    %391 = arith.divf %389, %390 : vector<8x128xf32>
    %392 = arith.mulf %383, %330 : vector<8x128xf32>
    %393 = arith.mulf %377, %385 : vector<8x128xf32>
    %394 = arith.addf %392, %393 : vector<8x128xf32>
    %395 = math.tanh %394 : vector<8x128xf32>
    %396 = arith.mulf %391, %395 : vector<8x128xf32>
    %c0_99 = arith.constant 0 : index
    %c5_100 = arith.constant 5 : index
    %c0_101 = arith.constant 0 : index
    %c0_102 = arith.constant 0 : index
    %397 = vector.load %arg8[%c0_99, %c5_100, %c0_101, %c0_102] : memref<1x8x8x256xf32, #tpu.memory_space<vmem>>, vector<1x1x8x128xf32>
    %398 = vector.shape_cast %397 : vector<1x1x8x128xf32> to vector<8x128xf32>
    %399 = vector.shape_cast %371 : vector<8x128xf32> to vector<1x1x8x128xf32>
    tpu.vector_store %arg8[%c0_99, %c5_100, %c0_101, %c0_102], %399 {strides = array<i32>} : memref<1x8x8x256xf32, #tpu.memory_space<vmem>>, vector<1x1x8x128xf32>,
    %c0_103 = arith.constant 0 : index
    %c2_104 = arith.constant 2 : index
    %c0_105 = arith.constant 0 : index
    %c128_106 = arith.constant 128 : index
    %400 = vector.load %arg8[%c0_103, %c2_104, %c0_105, %c128_106] : memref<1x8x8x256xf32, #tpu.memory_space<vmem>>, vector<1x1x8x128xf32>
    %401 = vector.shape_cast %400 : vector<1x1x8x128xf32> to vector<8x128xf32>
    %402 = vector.shape_cast %396 : vector<8x128xf32> to vector<1x1x8x128xf32>
    tpu.vector_store %arg8[%c0_103, %c2_104, %c0_105, %c128_106], %402 {strides = array<i32>} : memref<1x8x8x256xf32, #tpu.memory_space<vmem>>, vector<1x1x8x128xf32>,
    %403 = vector.extract_strided_slice %10 {offsets = [6, 0, 0], sizes = [1, 8, 512], strides = [1, 1, 1]} : vector<8x8x1024xf32> to vector<1x8x512xf32>
    %404 = vector.shape_cast %403 : vector<1x8x512xf32> to vector<8x512xf32>
    %cst_107 = arith.constant dense<0.000000e+00> : vector<8x512xf32>
    %405 = tpu.matmul %371, %12, %cst_107 {dimension_numbers = #tpu.dot_dimension_numbers<[1], [0], [0], [1], [0, 0, 1, 1], [], []>} : vector<8x128xf32>, vector<128x512xf32>, vector<8x512xf32> -> vector<8x512xf32>
    %406 = arith.addf %404, %405 : vector<8x512xf32>
    %407 = vector.extract_strided_slice %10 {offsets = [1, 0, 512], sizes = [1, 8, 512], strides = [1, 1, 1]} : vector<8x8x1024xf32> to vector<1x8x512xf32>
    %408 = vector.shape_cast %407 : vector<1x8x512xf32> to vector<8x512xf32>
    %cst_108 = arith.constant dense<0.000000e+00> : vector<8x512xf32>
    %409 = tpu.matmul %396, %14, %cst_108 {dimension_numbers = #tpu.dot_dimension_numbers<[1], [0], [0], [1], [0, 0, 1, 1], [], []>} : vector<8x128xf32>, vector<128x512xf32>, vector<8x512xf32> -> vector<8x512xf32>
    %410 = arith.addf %408, %409 : vector<8x512xf32>
    %411 = vector.extract_strided_slice %406 {offsets = [0, 0], sizes = [8, 128], strides = [1, 1]} : vector<8x512xf32> to vector<8x128xf32>
    %412 = arith.negf %411 : vector<8x128xf32>
    %413 = math.exp %412 : vector<8x128xf32>
    %cst_109 = arith.constant 1.000000e+00 : f32
    %414 = vector.broadcast %cst_109 : f32 to vector<8x128xf32>
    %415 = arith.addf %414, %413 : vector<8x128xf32>
    %416 = arith.divf %414, %415 : vector<8x128xf32>
    %417 = vector.extract_strided_slice %406 {offsets = [0, 128], sizes = [8, 128], strides = [1, 1]} : vector<8x512xf32> to vector<8x128xf32>
    %418 = arith.negf %417 : vector<8x128xf32>
    %419 = math.exp %418 : vector<8x128xf32>
    %cst_110 = arith.constant 1.000000e+00 : f32
    %420 = vector.broadcast %cst_110 : f32 to vector<8x128xf32>
    %421 = arith.addf %420, %419 : vector<8x128xf32>
    %422 = arith.divf %420, %421 : vector<8x128xf32>
    %423 = vector.extract_strided_slice %406 {offsets = [0, 256], sizes = [8, 128], strides = [1, 1]} : vector<8x512xf32> to vector<8x128xf32>
    %424 = math.tanh %423 : vector<8x128xf32>
    %425 = vector.extract_strided_slice %406 {offsets = [0, 384], sizes = [8, 128], strides = [1, 1]} : vector<8x512xf32> to vector<8x128xf32>
    %426 = arith.negf %425 : vector<8x128xf32>
    %427 = math.exp %426 : vector<8x128xf32>
    %cst_111 = arith.constant 1.000000e+00 : f32
    %428 = vector.broadcast %cst_111 : f32 to vector<8x128xf32>
    %429 = arith.addf %428, %427 : vector<8x128xf32>
    %430 = arith.divf %428, %429 : vector<8x128xf32>
    %431 = arith.mulf %422, %369 : vector<8x128xf32>
    %432 = arith.mulf %416, %424 : vector<8x128xf32>
    %433 = arith.addf %431, %432 : vector<8x128xf32>
    %434 = math.tanh %433 : vector<8x128xf32>
    %435 = arith.mulf %430, %434 : vector<8x128xf32>
    %436 = vector.extract_strided_slice %410 {offsets = [0, 0], sizes = [8, 128], strides = [1, 1]} : vector<8x512xf32> to vector<8x128xf32>
    %437 = arith.negf %436 : vector<8x128xf32>
    %438 = math.exp %437 : vector<8x128xf32>
    %cst_112 = arith.constant 1.000000e+00 : f32
    %439 = vector.broadcast %cst_112 : f32 to vector<8x128xf32>
    %440 = arith.addf %439, %438 : vector<8x128xf32>
    %441 = arith.divf %439, %440 : vector<8x128xf32>
    %442 = vector.extract_strided_slice %410 {offsets = [0, 128], sizes = [8, 128], strides = [1, 1]} : vector<8x512xf32> to vector<8x128xf32>
    %443 = arith.negf %442 : vector<8x128xf32>
    %444 = math.exp %443 : vector<8x128xf32>
    %cst_113 = arith.constant 1.000000e+00 : f32
    %445 = vector.broadcast %cst_113 : f32 to vector<8x128xf32>
    %446 = arith.addf %445, %444 : vector<8x128xf32>
    %447 = arith.divf %445, %446 : vector<8x128xf32>
    %448 = vector.extract_strided_slice %410 {offsets = [0, 256], sizes = [8, 128], strides = [1, 1]} : vector<8x512xf32> to vector<8x128xf32>
    %449 = math.tanh %448 : vector<8x128xf32>
    %450 = vector.extract_strided_slice %410 {offsets = [0, 384], sizes = [8, 128], strides = [1, 1]} : vector<8x512xf32> to vector<8x128xf32>
    %451 = arith.negf %450 : vector<8x128xf32>
    %452 = math.exp %451 : vector<8x128xf32>
    %cst_114 = arith.constant 1.000000e+00 : f32
    %453 = vector.broadcast %cst_114 : f32 to vector<8x128xf32>
    %454 = arith.addf %453, %452 : vector<8x128xf32>
    %455 = arith.divf %453, %454 : vector<8x128xf32>
    %456 = arith.mulf %447, %394 : vector<8x128xf32>
    %457 = arith.mulf %441, %449 : vector<8x128xf32>
    %458 = arith.addf %456, %457 : vector<8x128xf32>
    %459 = math.tanh %458 : vector<8x128xf32>
    %460 = arith.mulf %455, %459 : vector<8x128xf32>
    %c0_115 = arith.constant 0 : index
    %c6_116 = arith.constant 6 : index
    %c0_117 = arith.constant 0 : index
    %c0_118 = arith.constant 0 : index
    %461 = vector.load %arg8[%c0_115, %c6_116, %c0_117, %c0_118] : memref<1x8x8x256xf32, #tpu.memory_space<vmem>>, vector<1x1x8x128xf32>
    %462 = vector.shape_cast %461 : vector<1x1x8x128xf32> to vector<8x128xf32>
    %463 = vector.shape_cast %435 : vector<8x128xf32> to vector<1x1x8x128xf32>
    tpu.vector_store %arg8[%c0_115, %c6_116, %c0_117, %c0_118], %463 {strides = array<i32>} : memref<1x8x8x256xf32, #tpu.memory_space<vmem>>, vector<1x1x8x128xf32>,
    %c0_119 = arith.constant 0 : index
    %c1_120 = arith.constant 1 : index
    %c0_121 = arith.constant 0 : index
    %c128_122 = arith.constant 128 : index
    %464 = vector.load %arg8[%c0_119, %c1_120, %c0_121, %c128_122] : memref<1x8x8x256xf32, #tpu.memory_space<vmem>>, vector<1x1x8x128xf32>
    %465 = vector.shape_cast %464 : vector<1x1x8x128xf32> to vector<8x128xf32>
    %466 = vector.shape_cast %460 : vector<8x128xf32> to vector<1x1x8x128xf32>
    tpu.vector_store %arg8[%c0_119, %c1_120, %c0_121, %c128_122], %466 {strides = array<i32>} : memref<1x8x8x256xf32, #tpu.memory_space<vmem>>, vector<1x1x8x128xf32>,
    %467 = vector.extract_strided_slice %10 {offsets = [7, 0, 0], sizes = [1, 8, 512], strides = [1, 1, 1]} : vector<8x8x1024xf32> to vector<1x8x512xf32>
    %468 = vector.shape_cast %467 : vector<1x8x512xf32> to vector<8x512xf32>
    %cst_123 = arith.constant dense<0.000000e+00> : vector<8x512xf32>
    %469 = tpu.matmul %435, %12, %cst_123 {dimension_numbers = #tpu.dot_dimension_numbers<[1], [0], [0], [1], [0, 0, 1, 1], [], []>} : vector<8x128xf32>, vector<128x512xf32>, vector<8x512xf32> -> vector<8x512xf32>
    %470 = arith.addf %468, %469 : vector<8x512xf32>
    %471 = vector.extract_strided_slice %10 {offsets = [0, 0, 512], sizes = [1, 8, 512], strides = [1, 1, 1]} : vector<8x8x1024xf32> to vector<1x8x512xf32>
    %472 = vector.shape_cast %471 : vector<1x8x512xf32> to vector<8x512xf32>
    %cst_124 = arith.constant dense<0.000000e+00> : vector<8x512xf32>
    %473 = tpu.matmul %460, %14, %cst_124 {dimension_numbers = #tpu.dot_dimension_numbers<[1], [0], [0], [1], [0, 0, 1, 1], [], []>} : vector<8x128xf32>, vector<128x512xf32>, vector<8x512xf32> -> vector<8x512xf32>
    %474 = arith.addf %472, %473 : vector<8x512xf32>
    %475 = vector.extract_strided_slice %470 {offsets = [0, 0], sizes = [8, 128], strides = [1, 1]} : vector<8x512xf32> to vector<8x128xf32>
    %476 = arith.negf %475 : vector<8x128xf32>
    %477 = math.exp %476 : vector<8x128xf32>
    %cst_125 = arith.constant 1.000000e+00 : f32
    %478 = vector.broadcast %cst_125 : f32 to vector<8x128xf32>
    %479 = arith.addf %478, %477 : vector<8x128xf32>
    %480 = arith.divf %478, %479 : vector<8x128xf32>
    %481 = vector.extract_strided_slice %470 {offsets = [0, 128], sizes = [8, 128], strides = [1, 1]} : vector<8x512xf32> to vector<8x128xf32>
    %482 = arith.negf %481 : vector<8x128xf32>
    %483 = math.exp %482 : vector<8x128xf32>
    %cst_126 = arith.constant 1.000000e+00 : f32
    %484 = vector.broadcast %cst_126 : f32 to vector<8x128xf32>
    %485 = arith.addf %484, %483 : vector<8x128xf32>
    %486 = arith.divf %484, %485 : vector<8x128xf32>
    %487 = vector.extract_strided_slice %470 {offsets = [0, 256], sizes = [8, 128], strides = [1, 1]} : vector<8x512xf32> to vector<8x128xf32>
    %488 = math.tanh %487 : vector<8x128xf32>
    %489 = vector.extract_strided_slice %470 {offsets = [0, 384], sizes = [8, 128], strides = [1, 1]} : vector<8x512xf32> to vector<8x128xf32>
    %490 = arith.negf %489 : vector<8x128xf32>
    %491 = math.exp %490 : vector<8x128xf32>
    %cst_127 = arith.constant 1.000000e+00 : f32
    %492 = vector.broadcast %cst_127 : f32 to vector<8x128xf32>
    %493 = arith.addf %492, %491 : vector<8x128xf32>
    %494 = arith.divf %492, %493 : vector<8x128xf32>
    %495 = arith.mulf %486, %433 : vector<8x128xf32>
    %496 = arith.mulf %480, %488 : vector<8x128xf32>
    %497 = arith.addf %495, %496 : vector<8x128xf32>
    %498 = math.tanh %497 : vector<8x128xf32>
    %499 = arith.mulf %494, %498 : vector<8x128xf32>
    %500 = vector.extract_strided_slice %474 {offsets = [0, 0], sizes = [8, 128], strides = [1, 1]} : vector<8x512xf32> to vector<8x128xf32>
    %501 = arith.negf %500 : vector<8x128xf32>
    %502 = math.exp %501 : vector<8x128xf32>
    %cst_128 = arith.constant 1.000000e+00 : f32
    %503 = vector.broadcast %cst_128 : f32 to vector<8x128xf32>
    %504 = arith.addf %503, %502 : vector<8x128xf32>
    %505 = arith.divf %503, %504 : vector<8x128xf32>
    %506 = vector.extract_strided_slice %474 {offsets = [0, 128], sizes = [8, 128], strides = [1, 1]} : vector<8x512xf32> to vector<8x128xf32>
    %507 = arith.negf %506 : vector<8x128xf32>
    %508 = math.exp %507 : vector<8x128xf32>
    %cst_129 = arith.constant 1.000000e+00 : f32
    %509 = vector.broadcast %cst_129 : f32 to vector<8x128xf32>
    %510 = arith.addf %509, %508 : vector<8x128xf32>
    %511 = arith.divf %509, %510 : vector<8x128xf32>
    %512 = vector.extract_strided_slice %474 {offsets = [0, 256], sizes = [8, 128], strides = [1, 1]} : vector<8x512xf32> to vector<8x128xf32>
    %513 = math.tanh %512 : vector<8x128xf32>
    %514 = vector.extract_strided_slice %474 {offsets = [0, 384], sizes = [8, 128], strides = [1, 1]} : vector<8x512xf32> to vector<8x128xf32>
    %515 = arith.negf %514 : vector<8x128xf32>
    %516 = math.exp %515 : vector<8x128xf32>
    %cst_130 = arith.constant 1.000000e+00 : f32
    %517 = vector.broadcast %cst_130 : f32 to vector<8x128xf32>
    %518 = arith.addf %517, %516 : vector<8x128xf32>
    %519 = arith.divf %517, %518 : vector<8x128xf32>
    %520 = arith.mulf %511, %458 : vector<8x128xf32>
    %521 = arith.mulf %505, %513 : vector<8x128xf32>
    %522 = arith.addf %520, %521 : vector<8x128xf32>
    %523 = math.tanh %522 : vector<8x128xf32>
    %524 = arith.mulf %519, %523 : vector<8x128xf32>
    %c0_131 = arith.constant 0 : index
    %c7_132 = arith.constant 7 : index
    %c0_133 = arith.constant 0 : index
    %c0_134 = arith.constant 0 : index
    %525 = vector.load %arg8[%c0_131, %c7_132, %c0_133, %c0_134] : memref<1x8x8x256xf32, #tpu.memory_space<vmem>>, vector<1x1x8x128xf32>
    %526 = vector.shape_cast %525 : vector<1x1x8x128xf32> to vector<8x128xf32>
    %527 = vector.shape_cast %499 : vector<8x128xf32> to vector<1x1x8x128xf32>
    tpu.vector_store %arg8[%c0_131, %c7_132, %c0_133, %c0_134], %527 {strides = array<i32>} : memref<1x8x8x256xf32, #tpu.memory_space<vmem>>, vector<1x1x8x128xf32>,
    %c0_135 = arith.constant 0 : index
    %c0_136 = arith.constant 0 : index
    %c0_137 = arith.constant 0 : index
    %c128_138 = arith.constant 128 : index
    %528 = vector.load %arg8[%c0_135, %c0_136, %c0_137, %c128_138] : memref<1x8x8x256xf32, #tpu.memory_space<vmem>>, vector<1x1x8x128xf32>
    %529 = vector.shape_cast %528 : vector<1x1x8x128xf32> to vector<8x128xf32>
    %530 = vector.shape_cast %524 : vector<8x128xf32> to vector<1x1x8x128xf32>
    tpu.vector_store %arg8[%c0_135, %c0_136, %c0_137, %c128_138], %530 {strides = array<i32>} : memref<1x8x8x256xf32, #tpu.memory_space<vmem>>, vector<1x1x8x128xf32>,
    %c0_139 = arith.constant 0 : index
    %c0_140 = arith.constant 0 : index
    %c0_141 = arith.constant 0 : index
    %c0_142 = arith.constant 0 : index
    %531 = vector.load %arg8[%c0_139, %c0_140, %c0_141, %c0_142] : memref<1x8x8x256xf32, #tpu.memory_space<vmem>>, vector<1x8x8x256xf32>
    %532 = vector.shape_cast %531 : vector<1x8x8x256xf32> to vector<8x8x256xf32>
    %533 = vector.shape_cast %532 : vector<8x8x256xf32> to vector<64x256xf32>
    %c0_143 = arith.constant 0 : index
    %c0_144 = arith.constant 0 : index
    %c0_145 = arith.constant 0 : index
    %534 = vector.load %arg6[%c0_143, %c0_144, %c0_145] : memref<1x256x128xf32, #tpu.memory_space<vmem>>, vector<1x256x128xf32>
    %535 = vector.shape_cast %534 : vector<1x256x128xf32> to vector<256x128xf32>
    %cst_146 = arith.constant dense<0.000000e+00> : vector<64x128xf32>
    %536 = tpu.matmul %533, %535, %cst_146 {dimension_numbers = #tpu.dot_dimension_numbers<[1], [0], [0], [1], [0, 0, 1, 1], [], []>} : vector<64x256xf32>, vector<256x128xf32>, vector<64x128xf32> -> vector<64x128xf32>
    %c0_147 = arith.constant 0 : index
    %c0_148 = arith.constant 0 : index
    %c0_149 = arith.constant 0 : index
    %537 = vector.load %arg7[%c0_147, %c0_148, %c0_149] : memref<1x1x128xf32, #tpu.memory_space<vmem>>, vector<1x1x128xf32>
    %538 = vector.shape_cast %537 : vector<1x1x128xf32> to vector<1x128xf32>
    %539 = vector.broadcast %538 : vector<1x128xf32> to vector<64x128xf32>
    %540 = arith.addf %536, %539 : vector<64x128xf32>
    %541 = vector.shape_cast %540 : vector<64x128xf32> to vector<8x8x128xf32>
    %c0_150 = arith.constant 0 : index
    %c0_151 = arith.constant 0 : index
    %c0_152 = arith.constant 0 : index
    %c0_153 = arith.constant 0 : index
    %542 = vector.load %arg9[%c0_150, %c0_151, %c0_152, %c0_153] : memref<1x8x8x128xf32, #tpu.memory_space<vmem>>, vector<1x8x8x128xf32>
    %543 = vector.shape_cast %542 : vector<1x8x8x128xf32> to vector<8x8x128xf32>
    %544 = vector.shape_cast %541 : vector<8x8x128xf32> to vector<1x8x8x128xf32>
    tpu.vector_store %arg9[%c0_150, %c0_151, %c0_152, %c0_153], %544 {strides = array<i32>} : memref<1x8x8x128xf32, #tpu.memory_space<vmem>>, vector<1x8x8x128xf32>,
    return
  }
  func.func @transform_0(%arg0: i32) -> (i32, i32, i32, i32) {
    %c0_i32 = arith.constant 0 : i32
    %c0_i32_0 = arith.constant 0 : i32
    %c0_i32_1 = arith.constant 0 : i32
    %c0_i32_2 = arith.constant 0 : i32
    return %arg0, %c0_i32, %c0_i32_0, %c0_i32_1 : i32, i32, i32, i32
  }
  func.func @transform_1(%arg0: i32) -> (i32, i32, i32) {
    %c0_i32 = arith.constant 0 : i32
    %c0_i32_0 = arith.constant 0 : i32
    %c0_i32_1 = arith.constant 0 : i32
    return %arg0, %c0_i32, %c0_i32_0 : i32, i32, i32
  }
  func.func @transform_2(%arg0: i32) -> (i32, i32, i32) {
    %c0_i32 = arith.constant 0 : i32
    %c0_i32_0 = arith.constant 0 : i32
    %c0_i32_1 = arith.constant 0 : i32
    return %arg0, %c0_i32, %c0_i32_0 : i32, i32, i32
  }
  func.func @transform_3(%arg0: i32) -> (i32, i32, i32) {
    %c0_i32 = arith.constant 0 : i32
    %c0_i32_0 = arith.constant 0 : i32
    %c0_i32_1 = arith.constant 0 : i32
    return %arg0, %c0_i32, %c0_i32_0 : i32, i32, i32
  }
  func.func @transform_4(%arg0: i32) -> (i32, i32, i32) {
    %c0_i32 = arith.constant 0 : i32
    %c0_i32_0 = arith.constant 0 : i32
    %c0_i32_1 = arith.constant 0 : i32
    return %arg0, %c0_i32, %c0_i32_0 : i32, i32, i32
  }
  func.func @transform_5(%arg0: i32) -> (i32, i32, i32) {
    %c0_i32 = arith.constant 0 : i32
    %c0_i32_0 = arith.constant 0 : i32
    %c0_i32_1 = arith.constant 0 : i32
    return %arg0, %c0_i32, %c0_i32_0 : i32, i32, i32
  }
  func.func @transform_6(%arg0: i32) -> (i32, i32, i32) {
    %c0_i32 = arith.constant 0 : i32
    %c0_i32_0 = arith.constant 0 : i32
    %c0_i32_1 = arith.constant 0 : i32
    return %arg0, %c0_i32, %c0_i32_0 : i32, i32, i32
  }
  func.func @transform_7(%arg0: i32) -> (i32, i32, i32, i32) {
    %c0_i32 = arith.constant 0 : i32
    %c0_i32_0 = arith.constant 0 : i32
    %c0_i32_1 = arith.constant 0 : i32
    %c0_i32_2 = arith.constant 0 : i32
    return %arg0, %c0_i32, %c0_i32_0, %c0_i32_1 : i32, i32, i32, i32
  }
  func.func @transform_8(%arg0: i32) -> (i32, i32, i32, i32) {
    %c0_i32 = arith.constant 0 : i32
    %c0_i32_0 = arith.constant 0 : i32
    %c0_i32_1 = arith.constant 0 : i32
    %c0_i32_2 = arith.constant 0 : i32
    return %arg0, %c0_i32, %c0_i32_0, %c0_i32_1 : i32, i32, i32, i32
  }
}

</mosaic_0001>

<bundles_post_ra>
// kernel: _main_jit.1
= control target key start
LH: loop header
LB: loop body
LE: loop exit
PB: predicated region body
PF: predicated region fallthrough
CT: control target
= control target key end

     0   :  { %s8549_s0 = inlined_call_operand.vmem [shape: f32[2,8,8,256], index: 0, kind: input, shape index: {}]   ;;  %s8550_s1 = inlined_call_operand.hbm [shape: f32[2,256,1024], index: 1, kind: input, shape index: {}]   ;;  %s8551_s2 = inlined_call_operand.hbm [shape: f32[2,1,1024], index: 2, kind: input, shape index: {}]   ;;  %s8552_s3 = inlined_call_operand.hbm [shape: f32[2,128,512], index: 3, kind: input, shape index: {}]   ;;  %s8553_s4 = inlined_call_operand.hbm [shape: f32[2,128,512], index: 4, kind: input, shape index: {}]   ;;  %s8554_s5 = inlined_call_operand.hbm [shape: f32[2,256,128], index: 5, kind: input, shape index: {}]   ;;  %s8555_s6 = inlined_call_operand.hbm [shape: f32[2,1,128], index: 6, kind: input, shape index: {}]   ;;  %s8556_s7 = inlined_call_operand.vmem [shape: f32[2,8,8,256], index: 7, kind: output, shape index: {0}]   ;;  %s8557_s8 = inlined_call_operand.vmem [shape: f32[2,8,8,128], index: 8, kind: output, shape index: {1}]  }
   0x1   :  { %8628 = sst [smem:[#allocation49_spill]] %s8551_s2 }
   0x2   :  { %8629 = sst [smem:[#allocation50_spill]] %s8553_s4 }
   0x3   :  { %8630 = sst [smem:[#allocation51_spill]] %s8556_s7 }
   0x4   :  { %8631 = sst [smem:[#allocation52_spill]] %s8557_s8 }
   0x5   :  { %14 = vsyncpa [#allocation3], 0 }
   0x6   :  { %16 = vsyncpa [#allocation3 + $0x1], 0 }
   0x7   :  { %17 = vsyncpa [#allocation5], 0 }
   0x8   :  { %19 = vsyncpa [#allocation5 + $0x1], 0 }
   0x9   :  { %20 = vsyncpa [#allocation8], 0 }
   0xa   :  { %22 = vsyncpa [#allocation8 + $0x1], 0 }
   0xb   :  { %23 = vsyncpa [#allocation11], 0 }
   0xc   :  { %25 = vsyncpa [#allocation11 + $0x1], 0  ;;  %s6781_s27 = smov 0   ;;  %s6783_s28 = smov 0  }
   0xd   :  { %s6785_s29 = smov 0   ;;  %s6787_s30 = smov 0  }
   0xe LB: > { %8632 = sst [smem:[#allocation16_spill]] %s6717_s29  ;;  %s6800_s9 = sadd.s32 4294967295, %s6721_s30   ;;  %s6721_s30 = sphi %s6787_s30, %s8842_s30   ;;  %s6717_s29 = sphi %s6785_s29, %s8844_s29   ;;  %s6713_s28 = sphi %s6783_s28, %s8846_s28   ;;  %s6709_s27 = sphi %s6781_s27, %s8845_s27  }
   0xf   : > { %s6803_s10 = sadd.s32 1, %s6721_s30   ;;  %s64_s12 = sadd.s32 1, %s6717_s29 }
  0x10   : > { %8633 = sst [smem:[#allocation17_spill]] %s6803_s10  ;;  %s61_s11 = ssub.s32 %s6721_s30, %s6803_s10 }
  0x11   : > { %p62_p0 = scmp.eq.s32.totalorder %s61_s11, 0  ;;  %p71_p1 = scmp.ne.s32.totalorder %s6717_s29, %s6713_s28 }
  0x12   : > { %p72_p2 = scmp.eq.s32.totalorder %s6721_s30, 0  ;;  %p77_p3 = scmp.ne.s32.totalorder %s6713_s28, %s6709_s27 }
  0x13   : > { %s6813_s13 = scalar_select %p62_p0, %s6717_s29, %s64_s12  }
  0x14   : > { %p73_p4 = por %p72_p2, %p71_p1  ;;  %p78_p5 = scmp.eq.s32.totalorder %s6800_s9, 0 }
  0x15   : > { %8634 = sst [smem:[#allocation18_spill]] %s6813_s13  ;;  %p6199_p6 = scmp.lt.s32.totalorder %s6721_s30, 2 }
  0x16   : > { %p6817_p7 = por %p78_p5, %p77_p3  ;;  %s6822_s15 = sand.u32 1, %s6717_s29  }
  0x17   : > { %p6824_p8 = pnand %p6199_p6, %p73_p4  ;;  %s8559_s17 = sand.u32 1, %s6721_s30  }
  0x18   : > { %s8635_s14 = scalar_select %p6817_p7, 1, 0 }
  0x19   : > { %s8636_s16 = scalar_select %p6824_p8, 1, 0 }
  0x1a   : > { %s4574_s18 = sshll.u32 %s6822_s15, 3  ;;  %s4665_s19 = sshll.u32 %s6721_s30, 7 }
  0x1b   : > { %s316_s20 = scalar_lea.vmem [#allocation4], %s4574_s18  ;;  %s8637_s2 = sld [smem:[#allocation49_spill]] }
  0x1c   : > { %s324_s21 = sshll.u32 %s316_s20, 4  ;;  %s6840_s25 = scalar_lea.sflag [#allocation5], %s8559_s17  ;;  %s6836_s21 = int_to_ptr.vmem [resolvable:$true] %s324_s21 }
  0x1d   : > { %p6846_p10 = pneg %p6824_p8 }
  0x21   : > { %s6834_s24 = scalar_lea.hbm %s8637_s2, %s4665_s19  ;;  %s6500_s18 = scalar_lea.hbm %s8637_s2, 256 }
  0x22   : > { %s6495_s26 = scalar_lea.hbm %s6834_s24, 128  ;;  %p6501_p13 = scmp.lt.u32.totalorder %s6834_s24, %s8637_s2 }
  0x23   : > { %p6496_p9 = scmp.ne.s32.totalorder %s6834_s24, %s6495_s26  ;;  %p6502_p0 = scmp.lt.u32.totalorder %s6500_s18, %s6495_s26 }
  0x24   : > { %p6504_p2 = scmp.lt.u32.totalorder %s6495_s26, %s6834_s24 }
  0x25   : > { %p6498_p11 = pnand %p6846_p10, %p6496_p9  ;;  %p6503_p1 = por %p6502_p0, %p6501_p13 }
  0x27   : > { %p6499_p12 = pneg %p6498_p11  ;;  %p6505_p3 = por %p6504_p2, %p6503_p1 }
  0x29   : > { %p6506_p4 = pnand %p6505_p3, %p6499_p12 }
  0x2b   : > { %6509 = shalt.err (!%p6506_p4)
}
  0x2c   : > { %s6510_s22 = scalar_lea.vmem %s6836_s21, 128  ;;  %s6723_s23 = smov [#allocation4]  }
  0x2d   : > { %p6511_p5 = scmp.ne.s32.totalorder %s6836_s21, %s6510_s22  ;;  %s6515_s11 = sshll.u32 %s6723_s23, 4  ;;  %s6516_s11 = int_to_ptr.vmem [resolvable:$false] %s6515_s11 }
  0x2e   : > { %s6517_s12 = scalar_lea.vmem %s6516_s11, 256  ;;  %p6518_p11 = scmp.lt.s32.totalorder %s6836_s21, %s6516_s11 }
  0x2f   : > { %p6513_p6 = pnand %p6511_p5, %p6846_p10  ;;  %p6519_p7 = scmp.lt.s32.totalorder %s6517_s12, %s6510_s22 }
  0x31   : > { %p6514_p9 = pneg %p6513_p6  ;;  %p6520_p13 = por %p6519_p7, %p6518_p11 }
  0x33   : > { %p6521_p0 = pnand %p6520_p13, %p6514_p9 }
  0x35   : > { %6524 = shalt.err (!%p6521_p0)
}
  0x36   : > { %6186 = dma.hbm_to_vmem [thread:$0]  (!%p6824_p8), %s6834_s24, 128, %s6836_s21, %s6840_s25  }
  0x37   : > { %p4587_p12 = scmp.ge.s32.totalorder %s6721_s30, 1  ;;  %p409_p1 = scmp.lt.s32.totalorder %s6721_s30, 3 }
  0x38   : > { %s4577_s26 = sshll.u32 %s6822_s15, 9  ;;  %s4666_s18 = sshll.u32 %s6721_s30, 13 }
  0x39   : > { %p6874_p7 = pnand %p4587_p12, %p409_p1  ;;  %s6881_s23 = scalar_lea.hbm %s8552_s3, %s4666_s18 }
  0x3a   : > { %s335_s11 = scalar_lea.vmem [#allocation6], %s4577_s26  ;;  %s8640_s4 = sld [smem:[#allocation50_spill]] }
  0x3b   : > { %s8639_s19 = scalar_select %p6874_p7, 1, 0 }
  0x3c   : > { %s342_s12 = sshll.u32 %s335_s11, 4  ;;  %s356_s2 = scalar_lea.vmem [#allocation7], %s4577_s26  ;;  %s6883_s12 = int_to_ptr.vmem [resolvable:$true] %s342_s12 }
  0x3d   : > { %s363_s13 = sshll.u32 %s356_s2, 4  ;;  %s4571_s20 = sshll.u32 %s6822_s15, 11  ;;  %s6890_s13 = int_to_ptr.vmem [resolvable:$true] %s363_s13 }
  0x3e   : > { %s8641_s22 = sand.u32 1, %s6721_s30  }
  0x3f   : > { %s6895_s29 = scalar_lea.sflag [#allocation8], %s8641_s22 }
  0x40   : > { %s6888_s24 = scalar_lea.hbm %s8640_s4, %s4666_s18  ;;  %s6530_s21 = scalar_lea.hbm %s8640_s4, 16384 }
  0x41   : > { %s6525_s11 = scalar_lea.hbm %s6888_s24, 8192  ;;  %p6531_p5 = scmp.lt.u32.totalorder %s6888_s24, %s8640_s4 }
  0x42   : > { %p6526_p2 = scmp.ne.s32.totalorder %s6888_s24, %s6525_s11  ;;  %p6532_p6 = scmp.lt.u32.totalorder %s6530_s21, %s6525_s11 }
  0x43   : > { %p6534_p11 = scmp.lt.u32.totalorder %s6525_s11, %s6888_s24 }
  0x44   : > { %p6528_p3 = pnand %p6526_p2, %p6846_p10  ;;  %p6533_p9 = por %p6532_p6, %p6531_p5 }
  0x46   : > { %p6529_p4 = pneg %p6528_p3  ;;  %p6535_p13 = por %p6534_p11, %p6533_p9 }
  0x48   : > { %p6536_p0 = pnand %p6535_p13, %p6529_p4 }
  0x4a   : > { %6539 = shalt.err (!%p6536_p0)
}
  0x4b   : > { %s6540_s2 = scalar_lea.vmem %s6890_s13, 8192  ;;  %s6724_s26 = smov [#allocation7]  }
  0x4c   : > { %p6541_p12 = scmp.ne.s32.totalorder %s6890_s13, %s6540_s2  ;;  %s6545_s22 = sshll.u32 %s6724_s26, 4  ;;  %s6546_s22 = int_to_ptr.vmem [resolvable:$false] %s6545_s22 }
  0x4d   : > { %s6547_s8 = scalar_lea.vmem %s6546_s22, 16384  ;;  %p6548_p3 = scmp.lt.s32.totalorder %s6890_s13, %s6546_s22 }
  0x4e   : > { %p6543_p1 = pnand %p6541_p12, %p6846_p10  ;;  %p6549_p7 = scmp.lt.s32.totalorder %s6547_s8, %s6540_s2 }
  0x50   : > { %p6544_p2 = pneg %p6543_p1  ;;  %p6550_p5 = por %p6549_p7, %p6548_p3 }
  0x52   : > { %p6551_p6 = pnand %p6550_p5, %p6544_p2 }
  0x54   : > { %6554 = shalt.err (!%p6551_p6)
}
  0x55   : > { %s6725_s10 = smov 512   ;;  %s6726_s11 = smov 32  }
  0x56   : > { %6192 = dma.hbm_to_vmem [thread:$0]  (!%p6824_p8), %s6888_s24, 8192, %s6890_s13, %s6895_s29, %s6725_s10, %s6725_s10, %s6726_s11  }
  0x57   : > { %s4664_s17 = sshll.u32 %s6721_s30, 15  ;;  %s295_s26 = scalar_lea.vmem [#allocation2], %s4571_s20 }
  0x58   : > { %s6926_s2 = scalar_lea.hbm %s8550_s1, %s4664_s17  ;;  %s302_s22 = sshll.u32 %s295_s26, 4  ;;  %s6930_s22 = int_to_ptr.vmem [resolvable:$true] %s302_s22 }
  0x59   : > { %s4583_s8 = sshll.u32 %s6822_s15, 8  ;;  %s292_s4 = scalar_lea.sflag [#allocation3], %s6822_s15 }
  0x5a   : > { %s6555_s7 = scalar_lea.hbm %s6926_s2, 32768  ;;  %s6560_s17 = scalar_lea.hbm %s8550_s1, 65536 }
  0x5b   : > { %p6556_p7 = scmp.ne.s32.totalorder %s6926_s2, %s6555_s7  ;;  %p6561_p11 = scmp.lt.u32.totalorder %s6926_s2, %s8550_s1 }
  0x5c   : > { %p6562_p13 = scmp.lt.u32.totalorder %s6560_s17, %s6555_s7  ;;  %p6564_p12 = scmp.lt.u32.totalorder %s6555_s7, %s6926_s2 }
  0x5d   : > { %p6558_p4 = pnand %p6556_p7, %p6846_p10 }
  0x5e   : > { %p6563_p0 = por %p6562_p13, %p6561_p11 }
  0x5f   : > { %p6559_p9 = pneg %p6558_p4 }
  0x60   : > { %p6565_p1 = por %p6564_p12, %p6563_p0 }
  0x62   : > { %p6566_p2 = pnand %p6565_p1, %p6559_p9 }
  0x64   : > { %6569 = shalt.err (!%p6566_p2)
}
  0x65   : > { %s6570_s20 = scalar_lea.vmem %s6930_s22, 32768  ;;  %s6727_s26 = smov [#allocation2]  }
  0x66   : > { %p6571_p3 = scmp.ne.s32.totalorder %s6930_s22, %s6570_s20  ;;  %s6575_s13 = sshll.u32 %s6727_s26, 4  ;;  %s6576_s13 = int_to_ptr.vmem [resolvable:$false] %s6575_s13 }
  0x67   : > { %s6577_s24 = scalar_lea.vmem %s6576_s13, 65536  ;;  %p6578_p7 = scmp.lt.s32.totalorder %s6930_s22, %s6576_s13 }
  0x68   : > { %p6573_p5 = pnand %p6571_p3, %p6846_p10  ;;  %p6579_p4 = scmp.lt.s32.totalorder %s6577_s24, %s6570_s20 }
  0x6a   : > { %p6574_p6 = pneg %p6573_p5  ;;  %p6580_p11 = por %p6579_p4, %p6578_p7 }
  0x6c   : > { %p6581_p13 = pnand %p6580_p11, %p6574_p6 }
  0x6e   : > { %6584 = shalt.err (!%p6581_p13)
}
  0x6f   : > { %s6728_s7 = smov 1024   ;;  %s6729_s17 = smov 64  }
  0x70   : > { %6183 = dma.hbm_to_vmem [thread:$0]  (!%p6824_p8), %s6926_s2, 32768, %s6930_s22, %s292_s4, %s6728_s7, %s6728_s7, %s6729_s17  }
  0x71   : > { %s6585_s18 = scalar_lea.hbm %s6881_s23, 8192  ;;  %s6590_s26 = scalar_lea.hbm %s8552_s3, 16384 }
  0x72   : > { %p6586_p9 = scmp.ne.s32.totalorder %s6881_s23, %s6585_s18  ;;  %p6591_p1 = scmp.lt.u32.totalorder %s6881_s23, %s8552_s3 }
  0x73   : > { %p6592_p2 = scmp.lt.u32.totalorder %s6590_s26, %s6585_s18  ;;  %p6594_p5 = scmp.lt.u32.totalorder %s6585_s18, %s6881_s23 }
  0x74   : > { %p6588_p0 = pnand %p6586_p9, %p6846_p10 }
  0x75   : > { %p6593_p3 = por %p6592_p2, %p6591_p1 }
  0x76   : > { %p6589_p12 = pneg %p6588_p0 }
  0x77   : > { %p6595_p6 = por %p6594_p5, %p6593_p3 }
  0x79   : > { %p6596_p7 = pnand %p6595_p6, %p6589_p12 }
  0x7b   : > { %6599 = shalt.err (!%p6596_p7)
}
  0x7c   : > { %s6600_s4 = scalar_lea.vmem %s6883_s12, 8192  ;;  %s6730_s2 = smov [#allocation6]  }
  0x7d   : > { %p6601_p4 = scmp.ne.s32.totalorder %s6883_s12, %s6600_s4  ;;  %s6605_s22 = sshll.u32 %s6730_s2, 4  ;;  %s6606_s22 = int_to_ptr.vmem [resolvable:$false] %s6605_s22 }
  0x7e   : > { %s6607_s7 = scalar_lea.vmem %s6606_s22, 16384  ;;  %p6608_p9 = scmp.lt.s32.totalorder %s6883_s12, %s6606_s22 }
  0x7f   : > { %p6603_p11 = pnand %p6601_p4, %p6846_p10  ;;  %p6609_p0 = scmp.lt.s32.totalorder %s6607_s7, %s6600_s4 }
  0x81   : > { %p6604_p13 = pneg %p6603_p11  ;;  %p6610_p1 = por %p6609_p0, %p6608_p9 }
  0x83   : > { %p6611_p2 = pnand %p6610_p1, %p6604_p13 }
  0x85   : > { %6614 = shalt.err (!%p6611_p2)
}
  0x86   : > { %6189 = dma.hbm_to_vmem [thread:$0]  (!%p6824_p8), %s6881_s23, 8192, %s6883_s12, %s6840_s25, %s6725_s10, %s6725_s10, %s6726_s11  }
  0x87   : > { %s4668_s17 = sshll.u32 %s6721_s30, 12  ;;  %s377_s26 = scalar_lea.vmem [#allocation9], %s4583_s8 }
  0x88   : > { %s6986_s20 = scalar_lea.hbm %s8554_s5, %s4668_s17  ;;  %s384_s13 = sshll.u32 %s377_s26, 4  ;;  %s6990_s13 = int_to_ptr.vmem [resolvable:$true] %s384_s13 }
  0x89   : > { %s6615_s24 = scalar_lea.hbm %s6986_s20, 4096  ;;  %s6620_s12 = scalar_lea.hbm %s8554_s5, 8192 }
  0x8a   : > { %p6616_p12 = scmp.ne.s32.totalorder %s6986_s20, %s6615_s24  ;;  %p6621_p6 = scmp.lt.u32.totalorder %s6986_s20, %s8554_s5 }
  0x8b   : > { %p6622_p7 = scmp.lt.u32.totalorder %s6620_s12, %s6615_s24  ;;  %p6624_p11 = scmp.lt.u32.totalorder %s6615_s24, %s6986_s20 }
  0x8c   : > { %p6618_p3 = pnand %p6616_p12, %p6846_p10 }
  0x8d   : > { %p6623_p4 = por %p6622_p7, %p6621_p6 }
  0x8e   : > { %p6619_p5 = pneg %p6618_p3 }
  0x8f   : > { %p6625_p13 = por %p6624_p11, %p6623_p4 }
  0x91   : > { %p6626_p9 = pnand %p6625_p13, %p6619_p5 }
  0x93   : > { %6629 = shalt.err (!%p6626_p9)
}
  0x94   : > { %s6630_s8 = scalar_lea.vmem %s6990_s13, 4096  ;;  %s6731_s4 = smov [#allocation9]  }
  0x95   : > { %p6631_p0 = scmp.ne.s32.totalorder %s6990_s13, %s6630_s8  ;;  %s6635_s2 = sshll.u32 %s6731_s4, 4  ;;  %s6636_s2 = int_to_ptr.vmem [resolvable:$false] %s6635_s2 }
  0x96   : > { %s6637_s22 = scalar_lea.vmem %s6636_s2, 8192  ;;  %p6638_p12 = scmp.lt.s32.totalorder %s6990_s13, %s6636_s2 }
  0x97   : > { %p6633_p1 = pnand %p6631_p0, %p6846_p10  ;;  %p6639_p3 = scmp.lt.s32.totalorder %s6637_s22, %s6630_s8 }
  0x99   : > { %p6634_p2 = pneg %p6633_p1  ;;  %p6640_p6 = por %p6639_p3, %p6638_p12 }
  0x9b   : > { %p6641_p7 = pnand %p6640_p6, %p6634_p2 }
  0x9d   : > { %6644 = shalt.err (!%p6641_p7)
}
  0x9e   : > { %s6732_s7 = smov 128   ;;  %s6733_s17 = smov 8  }
  0x9f   : > { %6195 = dma.hbm_to_vmem [thread:$0]  (!%p6824_p8), %s6986_s20, 4096, %s6990_s13, %s6895_s29, %s6732_s7, %s6732_s7, %s6733_s17  }
  0xa0   : > { %s4586_s18 = sshll.u32 %s6721_s30, 4  ;;  %s397_s25 = scalar_lea.vmem [#allocation10], %s6822_s15 }
  0xa1   : > { %s7018_s24 = scalar_lea.hbm %s8555_s6, %s4586_s18  ;;  %s404_s23 = sshll.u32 %s397_s25, 4  ;;  %s405_s23 = int_to_ptr.vmem [resolvable:$true] %s404_s23 }
  0xa2   : > { %s395_s12 = scalar_lea.sflag [#allocation11], %s6822_s15  ;;  %s6645_s10 = scalar_lea.hbm %s7018_s24, 16 }
  0xa3   : > { %p6646_p5 = scmp.ne.s32.totalorder %s7018_s24, %s6645_s10  ;;  %s6650_s20 = scalar_lea.hbm %s8555_s6, 32 }
  0xa4   : > { %p6651_p13 = scmp.lt.u32.totalorder %s7018_s24, %s8555_s6  ;;  %p6652_p9 = scmp.lt.u32.totalorder %s6650_s20, %s6645_s10 }
  0xa5   : > { %p6648_p4 = pnand %p6646_p5, %p6846_p10  ;;  %p6654_p1 = scmp.lt.u32.totalorder %s6645_s10, %s7018_s24 }
  0xa6   : > { %p6653_p0 = por %p6652_p9, %p6651_p13 }
  0xa7   : > { %p6649_p11 = pneg %p6648_p4 }
  0xa8   : > { %p6655_p2 = por %p6654_p1, %p6653_p0 }
  0xaa   : > { %p6656_p12 = pnand %p6655_p2, %p6649_p11 }
  0xac   : > { %6659 = shalt.err (!%p6656_p12)
}
  0xad   : > { %s6660_s15 = scalar_lea.vmem %s405_s23, 16  ;;  %s6734_s8 = smov [#allocation10]  }
  0xae   : > { %p6661_p3 = scmp.ne.s32.totalorder %s405_s23, %s6660_s15  ;;  %s6665_s4 = sshll.u32 %s6734_s8, 4  ;;  %s6666_s4 = int_to_ptr.vmem [resolvable:$false] %s6665_s4 }
  0xaf   : > { %s6667_s2 = scalar_lea.vmem %s6666_s4, 32  ;;  %p6668_p5 = scmp.lt.s32.totalorder %s405_s23, %s6666_s4 }
  0xb0   : > { %p6663_p6 = pnand %p6661_p3, %p6846_p10  ;;  %p6669_p4 = scmp.lt.s32.totalorder %s6667_s2, %s6660_s15 }
  0xb2   : > { %p6664_p7 = pneg %p6663_p6  ;;  %p6670_p8 = por %p6669_p4, %p6668_p5 }
  0xb4   : > { %p6671_p9 = pnand %p6670_p8, %p6664_p7 }
  0xb6   : > { %6674 = shalt.err (!%p6671_p9)
}
  0xb7   : > { %p8642_p13 = scmp.ne.s32.totalorder %s8636_s16, 0  ;;  %p8643_p11 = scmp.ne.s32.totalorder %s8639_s19, 0 }
  0xb9   : > { %6198 = dma.hbm_to_vmem [thread:$0]  (!%p8642_p13), %s7018_s24, 16, %s405_s23, %s395_s12  }
  0xba   : > { %413 = sbr.rel (%p8643_p11) target bundleno = 2730 (0xaaa), region = 48 }
  0xc1   : > { %s7042_s27 = sand.u32 1, %s6713_s28   ;;  %p8644_p10 = scmp.ne.s32.totalorder %s8635_s14, 0 }
  0xc2   : > { %s4588_s22 = sshll.u32 %s7042_s27, 11  ;;  %s416_s7 = scalar_lea.sflag [#allocation3], %s7042_s27 }
  0xc3   : > { %s7046_s17 = scalar_lea.vmem [#allocation2], %s4588_s22 }
  0xc4   : > { %6692 = dma.done.wait (%p8644_p10), %s416_s7, 32768  }
  0xc5   : > { %6694 = vsyncadd (%p8644_p10), %s416_s7, 4294934528  ;;  %s424_s16 = sand.u32 1, %s6800_s9   ;;  %s4589_s19 = sshll.u32 %s7042_s27, 3 }
  0xc6   : > { %s425_s18 = scalar_lea.sflag [#allocation5], %s424_s16  ;;  %s7054_s21 = scalar_lea.vmem [#allocation4], %s4589_s19 }
  0xc7   : > { %6696 = dma.done.wait (%p8644_p10), %s425_s18, 8320  }
  0xc8   : > { %6698 = vsyncadd (%p8644_p10), %s425_s18, 4294958976  ;;  %s4590_s26 = sshll.u32 %s7042_s27, 9  ;;  %s443_s25 = scalar_lea.sflag [#allocation8], %s424_s16 }
  0xc9   : > { %s7061_s24 = scalar_lea.vmem [#allocation6], %s4590_s26  ;;  %s7063_s23 = scalar_lea.vmem [#allocation7], %s4590_s26 }
  0xca   : > { %6700 = dma.done.wait (%p8644_p10), %s443_s25, 12288  }
  0xcb   : > { %6702 = vsyncadd (%p8644_p10), %s443_s25, 4294955008  ;;  %s4592_s12 = sshll.u32 %s7042_s27, 8  ;;  %s461_s29 = scalar_lea.sflag [#allocation11], %s7042_s27 }
  0xcc   : > { %s7070_s10 = scalar_lea.vmem [#allocation9], %s4592_s12  ;;  %s463_s30 = scalar_lea.vmem [#allocation10], %s7042_s27 }
  0xcd   : > { %6704 = dma.done.wait (%p8644_p10), %s461_s29, 16  }
  0xce   : > { %6706 = vsyncadd (%p8644_p10), %s461_s29, 4294967280  ;;  %v564_v0 = vld [vmem:[%s7046_s17 + $0x18] sm:$0xff]  ;;  %v563_v2 = vld [vmem:[%s7046_s17 + $0x10] sm:$0xff]  ;;  %p530_p8 = scmp.lt.s32.totalorder %s6800_s9, 1  ;;  %s8676_s4 = sld [smem:[#allocation51_spill]] }
  0xcf   : > { %v572_v1 = vld [vmem:[%s7046_s17 + $0x58] sm:$0xff]  ;;  %v571_v4 = vld [vmem:[%s7046_s17 + $0x50] sm:$0xff]  ;;  %v562_v27 = vld [vmem:[%s7046_s17 + $0x8] sm:$0xff]  ;;  %s8841_s16 = sld [smem:[#allocation52_spill]] }
  0xd0   : > { %v4792_v3 = vpack.c.bf16 %v572_v1, %v564_v0  ;;  %v580_v5 = vld [vmem:[%s7046_s17 + $0x98] sm:$0xff]  ;;  %v4794_v7 = vpack.c.bf16 %v571_v4, %v563_v2  ;;  %v579_v9 = vld [vmem:[%s7046_s17 + $0x90] sm:$0xff]  ;;  %v570_v28 = vld [vmem:[%s7046_s17 + $0x48] sm:$0xff]  ;;  %s8848_s9 = smov (!%p530_p8, %s6800_s9), 1 }
  0xd1   : > { %v588_v6 = vld [vmem:[%s7046_s17 + $0xd8] sm:$0xff]  ;;  %v587_v10 = vld [vmem:[%s7046_s17 + $0xd0] sm:$0xff]  ;;  %v4728_v31 = vpack.c.bf16 %v570_v28, %v562_v27  ;;  %v561_v32 = vld [vmem:[%s7046_s17] sm:$0xff]  ;;  %s4669_s14 = sshll.u32 %s8848_s9, 7  ;;  %s4671_s22 = sshll.u32 %s8848_s9, 6 }
  0xd2   : > { %v4796_v8 = vpack.c.bf16 %v588_v6, %v580_v5  ;;  %v596_v11 = vld [vmem:[%s7046_s17 + $0x118] sm:$0xff]  ;;  %4793 = vmatprep.subr.bf16.mxu1 %v4792_v3  ;;  %v4798_v13 = vpack.c.bf16 %v587_v10, %v579_v9  ;;  %v595_v15 = vld [vmem:[%s7046_s17 + $0x110] sm:$0xff]  ;;  %v569_v33 = vld [vmem:[%s7046_s17 + $0x40] sm:$0xff]  ;;  %s7148_s11 = scalar_lea.vmem %s8549_s0, %s4669_s14 }
  0xd3   : > { %v604_v12 = vld [vmem:[%s7046_s17 + $0x158] sm:$0xff]  ;;  %4795 = vmatpush1.bf16.msra.mxu1 %v4794_v7  ;;  %v603_v16 = vld [vmem:[%s7046_s17 + $0x150] sm:$0xff]  ;;  %v4730_v36 = vpack.c.bf16 %v569_v33, %v561_v32  ;;  %v578_v37 = vld [vmem:[%s7046_s17 + $0x88] sm:$0xff]  ;;  %4729 = vmatprep.subr.bf16.mxu0 %v4728_v31 }
  0xd4   : > { %4797 = vmatprep.subr.bf16.mxu1 %v4796_v8  ;;  %v4800_v14 = vpack.c.bf16 %v604_v12, %v596_v11  ;;  %v612_v17 = vld [vmem:[%s7046_s17 + $0x198] sm:$0xff]  ;;  %v4802_v19 = vpack.c.bf16 %v603_v16, %v595_v15  ;;  %v611_v21 = vld [vmem:[%s7046_s17 + $0x190] sm:$0xff]  ;;  %v586_v38 = vld [vmem:[%s7046_s17 + $0xc8] sm:$0xff]  ;;  %s7869_s2 = scalar_lea.vmem %s8676_s4, %s4669_s14 }
  0xd5   : > { %v620_v18 = vld [vmem:[%s7046_s17 + $0x1d8] sm:$0xff]  ;;  %v619_v22 = vld [vmem:[%s7046_s17 + $0x1d0] sm:$0xff]  ;;  %4731 = vmatpush1.bf16.msra.mxu0 %v4730_v36  ;;  %v4732_v41 = vpack.c.bf16 %v586_v38, %v578_v37  ;;  %v577_v42 = vld [vmem:[%s7046_s17 + $0x80] sm:$0xff]  ;;  %s8526_s19 = scalar_lea.vmem %s8841_s16, %s4671_s22 }
  0xd6   : > { %v4804_v20 = vpack.c.bf16 %v620_v18, %v612_v17  ;;  %v628_v23 = vld [vmem:[%s7046_s17 + $0x218] sm:$0xff]  ;;  %v4806_v25 = vpack.c.bf16 %v619_v22, %v611_v21  ;;  %v627_v26 = vld [vmem:[%s7046_s17 + $0x210] sm:$0xff]  ;;  %v585_v43 = vld [vmem:[%s7046_s17 + $0xc0] sm:$0xff] }
  0xd7   : > { %4799 = vmatpush1.bf16.msra.mxu1 %v4798_v13  ;;  %v636_v24 = vld [vmem:[%s7046_s17 + $0x258] sm:$0xff]  ;;  %v635_v30 = vld [vmem:[%s7046_s17 + $0x250] sm:$0xff]  ;;  %v4734_v46 = vpack.c.bf16 %v585_v43, %v577_v42  ;;  %v594_v47 = vld [vmem:[%s7046_s17 + $0x108] sm:$0xff]  ;;  %4733 = vmatprep.subr.bf16.mxu0 %v4732_v41 }
  0xd8   : > { %4801 = vmatprep.subr.bf16.mxu1 %v4800_v14  ;;  %v4808_v29 = vpack.c.bf16 %v636_v24, %v628_v23  ;;  %v644_v34 = vld [vmem:[%s7046_s17 + $0x298] sm:$0xff]  ;;  %v4810_v39 = vpack.c.bf16 %v635_v30, %v627_v26  ;;  %v643_v40 = vld [vmem:[%s7046_s17 + $0x290] sm:$0xff]  ;;  %v602_v48 = vld [vmem:[%s7046_s17 + $0x148] sm:$0xff] }
  0xd9   : > { %v652_v35 = vld [vmem:[%s7046_s17 + $0x2d8] sm:$0xff]  ;;  %v651_v45 = vld [vmem:[%s7046_s17 + $0x2d0] sm:$0xff]  ;;  %v4736_v51 = vpack.c.bf16 %v602_v48, %v594_v47  ;;  %v593_v52 = vld [vmem:[%s7046_s17 + $0x100] sm:$0xff]  ;;  %4735 = vmatpush1.bf16.msra.mxu0 %v4734_v46 }
  0xda   : > { %v4812_v44 = vpack.c.bf16 %v652_v35, %v644_v34  ;;  %v660_v49 = vld [vmem:[%s7046_s17 + $0x318] sm:$0xff]  ;;  %v601_v53 = vld [vmem:[%s7046_s17 + $0x140] sm:$0xff]  ;;  %v4814_v54 = vpack.c.bf16 %v651_v45, %v643_v40  ;;  %v659_v55 = vld [vmem:[%s7046_s17 + $0x310] sm:$0xff] }
  0xdb   : > { %4803 = vmatpush1.bf16.msra.mxu1 %v4802_v19  ;;  %v668_v50 = vld [vmem:[%s7046_s17 + $0x358] sm:$0xff]  ;;  %v4738_v56 = vpack.c.bf16 %v601_v53, %v593_v52  ;;  %v610_v57 = vld [vmem:[%s7046_s17 + $0x188] sm:$0xff]  ;;  %v667_v60 = vld [vmem:[%s7046_s17 + $0x350] sm:$0xff]  ;;  %4737 = vmatprep.subr.bf16.mxu0 %v4736_v51 }
  0xdc   : > { %4805 = vmatprep.subr.bf16.mxu1 %v4804_v20  ;;  %v618_v58 = vld [vmem:[%s7046_s17 + $0x1c8] sm:$0xff]  ;;  %v4816_v59 = vpack.c.bf16 %v668_v50, %v660_v49  ;;  %v609_v62 = vld [vmem:[%s7046_s17 + $0x180] sm:$0xff]  ;;  %v676_v0 = vld [vmem:[%s7046_s17 + $0x398] sm:$0xff]  ;;  %v4818_v4 = vpack.c.bf16 %v667_v60, %v659_v55 }
  0xdd   : > { %v4740_v61 = vpack.c.bf16 %v618_v58, %v610_v57  ;;  %v617_v63 = vld [vmem:[%s7046_s17 + $0x1c0] sm:$0xff]  ;;  %v684_v1 = vld [vmem:[%s7046_s17 + $0x3d8] sm:$0xff]  ;;  %v626_v2 = vld [vmem:[%s7046_s17 + $0x208] sm:$0xff]  ;;  %4739 = vmatpush1.bf16.msra.mxu0 %v4738_v56 }
  0xde   : > { %v634_v3 = vld [vmem:[%s7046_s17 + $0x248] sm:$0xff]  ;;  %v675_v5 = vld [vmem:[%s7046_s17 + $0x390] sm:$0xff]  ;;  %v4742_v7 = vpack.c.bf16 %v617_v63, %v609_v62  ;;  %v4820_v8 = vpack.c.bf16 %v684_v1, %v676_v0  ;;  %v692_v9 = vld [vmem:[%s7046_s17 + $0x418] sm:$0xff] }
  0xdf   : > { %4807 = vmatpush1.bf16.msra.mxu1 %v4806_v25  ;;  %v683_v6 = vld [vmem:[%s7046_s17 + $0x3d0] sm:$0xff]  ;;  %4741 = vmatprep.subr.bf16.mxu0 %v4740_v61  ;;  %v4744_v10 = vpack.c.bf16 %v634_v3, %v626_v2  ;;  %v625_v11 = vld [vmem:[%s7046_s17 + $0x200] sm:$0xff]  ;;  %v700_v13 = vld [vmem:[%s7046_s17 + $0x458] sm:$0xff] }
  0xe0   : > { %4809 = vmatprep.subr.bf16.mxu1 %v4808_v29  ;;  %v633_v12 = vld [vmem:[%s7046_s17 + $0x240] sm:$0xff]  ;;  %v642_v14 = vld [vmem:[%s7046_s17 + $0x288] sm:$0xff]  ;;  %v4822_v16 = vpack.c.bf16 %v683_v6, %v675_v5  ;;  %v691_v17 = vld [vmem:[%s7046_s17 + $0x410] sm:$0xff]  ;;  %v4824_v20 = vpack.c.bf16 %v700_v13, %v692_v9 }
  0xe1   : > { %v650_v15 = vld [vmem:[%s7046_s17 + $0x2c8] sm:$0xff]  ;;  %v699_v18 = vld [vmem:[%s7046_s17 + $0x450] sm:$0xff]  ;;  %4743 = vmatpush1.bf16.msra.mxu0 %v4742_v7  ;;  %v4746_v19 = vpack.c.bf16 %v633_v12, %v625_v11  ;;  %v708_v21 = vld [vmem:[%s7046_s17 + $0x498] sm:$0xff] }
  0xe2   : > { %4745 = vmatprep.subr.bf16.mxu0 %v4744_v10  ;;  %v4748_v22 = vpack.c.bf16 %v650_v15, %v642_v14  ;;  %v641_v23 = vld [vmem:[%s7046_s17 + $0x280] sm:$0xff]  ;;  %v716_v25 = vld [vmem:[%s7046_s17 + $0x4d8] sm:$0xff]  ;;  %v658_v26 = vld [vmem:[%s7046_s17 + $0x308] sm:$0xff]  ;;  %v4826_v29 = vpack.c.bf16 %v699_v18, %v691_v17 }
  0xe3   : > { %4811 = vmatpush1.bf16.msra.mxu1 %v4810_v39  ;;  %v649_v24 = vld [vmem:[%s7046_s17 + $0x2c0] sm:$0xff]  ;;  %v666_v27 = vld [vmem:[%s7046_s17 + $0x348] sm:$0xff]  ;;  %v707_v30 = vld [vmem:[%s7046_s17 + $0x490] sm:$0xff]  ;;  %v4828_v33 = vpack.c.bf16 %v716_v25, %v708_v21 }
  0xe4   : > { %4813 = vmatprep.subr.bf16.mxu1 %v4812_v44  ;;  %v7157_v28 = vld [vmem:[%s7148_s11 + $0x8] sm:$0xff]  ;;  %v715_v31 = vld [vmem:[%s7046_s17 + $0x4d0] sm:$0xff]  ;;  %v4750_v32 = vpack.c.bf16 %v649_v24, %v641_v23  ;;  %v724_v34 = vld [vmem:[%s7046_s17 + $0x518] sm:$0xff]  ;;  %v4752_v35 = vpack.c.bf16 %v666_v27, %v658_v26 }
  0xe5   : > { %4747 = vmatpush1.bf16.msra.mxu0 %v4746_v19  ;;  %v657_v36 = vld [vmem:[%s7046_s17 + $0x300] sm:$0xff]  ;;  %v732_v38 = vld [vmem:[%s7046_s17 + $0x558] sm:$0xff]  ;;  %v674_v39 = vld [vmem:[%s7046_s17 + $0x388] sm:$0xff]  ;;  %1036 = vmatprep.mubr.f32.mxu1 %v7157_v28  ;;  %v4830_v41 = vpack.c.bf16 %v715_v31, %v707_v30 }
  0xe6   : > { %4749 = vmatprep.subr.bf16.mxu0 %v4748_v22  ;;  %v665_v37 = vld [vmem:[%s7046_s17 + $0x340] sm:$0xff]  ;;  %v682_v40 = vld [vmem:[%s7046_s17 + $0x3c8] sm:$0xff]  ;;  %923 = vmatprep.mubr.f32.mxu0 %v7157_v28  ;;  %v723_v42 = vld [vmem:[%s7046_s17 + $0x510] sm:$0xff]  ;;  %v4832_v45 = vpack.c.bf16 %v732_v38, %v724_v34 }
  0xe7   : > { %4815 = vmatpush1.bf16.msra.mxu1 %v4814_v54  ;;  %v731_v43 = vld [vmem:[%s7046_s17 + $0x550] sm:$0xff]  ;;  %v4754_v44 = vpack.c.bf16 %v665_v37, %v657_v36  ;;  %v740_v46 = vld [vmem:[%s7046_s17 + $0x598] sm:$0xff]  ;;  %v4756_v47 = vpack.c.bf16 %v682_v40, %v674_v39  ;;  %v673_v48 = vld [vmem:[%s7046_s17 + $0x380] sm:$0xff] }
  0xe8   : > { %4817 = vmatprep.subr.bf16.mxu1 %v4816_v59  ;;  %v681_v49 = vld [vmem:[%s7046_s17 + $0x3c0] sm:$0xff]  ;;  %v748_v50 = vld [vmem:[%s7046_s17 + $0x5d8] sm:$0xff]  ;;  %v690_v51 = vld [vmem:[%s7046_s17 + $0x408] sm:$0xff]  ;;  %v4834_v53 = vpack.c.bf16 %v731_v43, %v723_v42 }
  0xe9   : > { %4751 = vmatpush1.bf16.msra.mxu0 %v4750_v32  ;;  %v698_v52 = vld [vmem:[%s7046_s17 + $0x448] sm:$0xff]  ;;  %v739_v54 = vld [vmem:[%s7046_s17 + $0x590] sm:$0xff]  ;;  %v4758_v56 = vpack.c.bf16 %v681_v49, %v673_v48  ;;  %v4836_v57 = vpack.c.bf16 %v748_v50, %v740_v46  ;;  %v756_v58 = vld [vmem:[%s7046_s17 + $0x618] sm:$0xff] }
  0xea   : > { %4753 = vmatprep.subr.bf16.mxu0 %v4752_v35  ;;  %v747_v55 = vld [vmem:[%s7046_s17 + $0x5d0] sm:$0xff]  ;;  %v4760_v59 = vpack.c.bf16 %v698_v52, %v690_v51  ;;  %v689_v60 = vld [vmem:[%s7046_s17 + $0x400] sm:$0xff]  ;;  %v764_v62 = vld [vmem:[%s7046_s17 + $0x658] sm:$0xff] }
  0xeb   : > { %4819 = vmatpush1.bf16.msra.mxu1 %v4818_v4  ;;  %v697_v61 = vld [vmem:[%s7046_s17 + $0x440] sm:$0xff]  ;;  %v706_v63 = vld [vmem:[%s7046_s17 + $0x488] sm:$0xff]  ;;  %v4838_v1 = vpack.c.bf16 %v747_v55, %v739_v54  ;;  %v755_v2 = vld [vmem:[%s7046_s17 + $0x610] sm:$0xff]  ;;  %v4840_v5 = vpack.c.bf16 %v764_v62, %v756_v58 }
  0xec   : > { %4821 = vmatprep.subr.bf16.mxu1 %v4820_v8  ;;  %v714_v0 = vld [vmem:[%s7046_s17 + $0x4c8] sm:$0xff]  ;;  %v763_v3 = vld [vmem:[%s7046_s17 + $0x650] sm:$0xff]  ;;  %v4762_v4 = vpack.c.bf16 %v697_v61, %v689_v60  ;;  %v772_v6 = vld [vmem:[%s7046_s17 + $0x698] sm:$0xff] }
  0xed   : > { %4755 = vmatpush1.bf16.msra.mxu0 %v4754_v44  ;;  %v4764_v7 = vpack.c.bf16 %v714_v0, %v706_v63  ;;  %v705_v8 = vld [vmem:[%s7046_s17 + $0x480] sm:$0xff]  ;;  %v780_v10 = vld [vmem:[%s7046_s17 + $0x6d8] sm:$0xff]  ;;  %v722_v11 = vld [vmem:[%s7046_s17 + $0x508] sm:$0xff]  ;;  %v4842_v13 = vpack.c.bf16 %v763_v3, %v755_v2 }
  0xee   : > { %4757 = vmatprep.subr.bf16.mxu0 %v4756_v47  ;;  %v713_v9 = vld [vmem:[%s7046_s17 + $0x4c0] sm:$0xff]  ;;  %v730_v12 = vld [vmem:[%s7046_s17 + $0x548] sm:$0xff]  ;;  %v771_v14 = vld [vmem:[%s7046_s17 + $0x690] sm:$0xff]  ;;  %v4844_v17 = vpack.c.bf16 %v780_v10, %v772_v6 }
  0xef   : > { %4823 = vmatpush1.bf16.msra.mxu1 %v4822_v16  ;;  %v779_v15 = vld [vmem:[%s7046_s17 + $0x6d0] sm:$0xff]  ;;  %v4766_v16 = vpack.c.bf16 %v713_v9, %v705_v8  ;;  %v788_v18 = vld [vmem:[%s7046_s17 + $0x718] sm:$0xff]  ;;  %v4768_v19 = vpack.c.bf16 %v730_v12, %v722_v11  ;;  %v729_v21 = vld [vmem:[%s7046_s17 + $0x540] sm:$0xff] }
  0xf0   : > { %4825 = vmatprep.subr.bf16.mxu1 %v4824_v20  ;;  %v721_v20 = vld [vmem:[%s7046_s17 + $0x500] sm:$0xff]  ;;  %v796_v22 = vld [vmem:[%s7046_s17 + $0x758] sm:$0xff]  ;;  %v738_v23 = vld [vmem:[%s7046_s17 + $0x588] sm:$0xff]  ;;  %v4846_v25 = vpack.c.bf16 %v779_v15, %v771_v14 }
  0xf1   : > { %4759 = vmatpush1.bf16.msra.mxu0 %v4758_v56  ;;  %v746_v24 = vld [vmem:[%s7046_s17 + $0x5c8] sm:$0xff]  ;;  %v787_v26 = vld [vmem:[%s7046_s17 + $0x710] sm:$0xff]  ;;  %v4848_v30 = vpack.c.bf16 %v796_v22, %v788_v18  ;;  %v804_v31 = vld [vmem:[%s7046_s17 + $0x798] sm:$0xff] }
  0xf2   : > { %4761 = vmatprep.subr.bf16.mxu0 %v4760_v59  ;;  %v795_v27 = vld [vmem:[%s7046_s17 + $0x750] sm:$0xff]  ;;  %v4772_v32 = vpack.c.bf16 %v746_v24, %v738_v23  ;;  %v745_v34 = vld [vmem:[%s7046_s17 + $0x5c0] sm:$0xff]  ;;  %v812_v35 = vld [vmem:[%s7046_s17 + $0x7d8] sm:$0xff] }
  0xf3   : > { %4827 = vmatpush1.bf16.msra.mxu1 %v4826_v29  ;;  %v4770_v29 = vpack.c.bf16 %v729_v21, %v721_v20  ;;  %v754_v36 = vld [vmem:[%s7046_s17 + $0x608] sm:$0xff]  ;;  %v4850_v38 = vpack.c.bf16 %v795_v27, %v787_v26  ;;  %v803_v39 = vld [vmem:[%s7046_s17 + $0x790] sm:$0xff]  ;;  %v4852_v42 = vpack.c.bf16 %v812_v35, %v804_v31  ;;  %v568_v43 = vld [vmem:[%s7046_s17 + $0x38] sm:$0xff] }
  0xf4   : > { %4829 = vmatprep.subr.bf16.mxu1 %v4828_v33  ;;  %v737_v33 = vld [vmem:[%s7046_s17 + $0x580] sm:$0xff]  ;;  %v762_v37 = vld [vmem:[%s7046_s17 + $0x648] sm:$0xff]  ;;  %v811_v40 = vld [vmem:[%s7046_s17 + $0x7d0] sm:$0xff] }
  0xf5   : > { %4763 = vmatpush1.bf16.msra.mxu0 %v4762_v4  ;;  %v4776_v44 = vpack.c.bf16 %v762_v37, %v754_v36  ;;  %v761_v46 = vld [vmem:[%s7046_s17 + $0x640] sm:$0xff]  ;;  %v576_v47 = vld [vmem:[%s7046_s17 + $0x78] sm:$0xff]  ;;  %v770_v48 = vld [vmem:[%s7046_s17 + $0x688] sm:$0xff]  ;;  %v4854_v50 = vpack.c.bf16 %v811_v40, %v803_v39 }
  0xf6   : > { %4765 = vmatprep.subr.bf16.mxu0 %v4764_v7  ;;  %v778_v49 = vld [vmem:[%s7046_s17 + $0x6c8] sm:$0xff]  ;;  %v567_v51 = vld [vmem:[%s7046_s17 + $0x30] sm:$0xff]  ;;  %v4920_v54 = vpack.c.bf16 %v576_v47, %v568_v43  ;;  %v584_v55 = vld [vmem:[%s7046_s17 + $0xb8] sm:$0xff] }
  0xf7   : > { %4831 = vmatpush1.bf16.msra.mxu1 %v4830_v41  ;;  %v4774_v41 = vpack.c.bf16 %v745_v34, %v737_v33  ;;  %v575_v52 = vld [vmem:[%s7046_s17 + $0x70] sm:$0xff]  ;;  %v4780_v56 = vpack.c.bf16 %v778_v49, %v770_v48  ;;  %v777_v58 = vld [vmem:[%s7046_s17 + $0x6c0] sm:$0xff]  ;;  %v592_v59 = vld [vmem:[%s7046_s17 + $0xf8] sm:$0xff] }
  0xf8   : > { %4833 = vmatprep.subr.bf16.mxu1 %v4832_v45  ;;  %v753_v45 = vld [vmem:[%s7046_s17 + $0x600] sm:$0xff]  ;;  %v786_v60 = vld [vmem:[%s7046_s17 + $0x708] sm:$0xff]  ;;  %v4922_v63 = vpack.c.bf16 %v575_v52, %v567_v51  ;;  %v583_v0 = vld [vmem:[%s7046_s17 + $0xb0] sm:$0xff]  ;;  %v4924_v3 = vpack.c.bf16 %v592_v59, %v584_v55 }
  0xf9   : > { %4767 = vmatpush1.bf16.msra.mxu0 %v4766_v16  ;;  %v794_v61 = vld [vmem:[%s7046_s17 + $0x748] sm:$0xff]  ;;  %v7226_v62 = vld [vmem:[%s7148_s11] sm:$0xff]  ;;  %v600_v4 = vld [vmem:[%s7046_s17 + $0x138] sm:$0xff] }
  0xfa   : > { %4769 = vmatprep.subr.bf16.mxu0 %v4768_v19  ;;  %v785_v6 = vld [vmem:[%s7046_s17 + $0x700] sm:$0xff]  ;;  %v608_v8 = vld [vmem:[%s7046_s17 + $0x178] sm:$0xff]  ;;  %v802_v9 = vld [vmem:[%s7046_s17 + $0x788] sm:$0xff] }
  0xfb   : > { %4835 = vmatpush1.bf16.msra.mxu1 %v4834_v53  ;;  %v4778_v53 = vpack.c.bf16 %v761_v46, %v753_v45  ;;  %v793_v7 = vld [vmem:[%s7046_s17 + $0x740] sm:$0xff]  ;;  %v810_v10 = vld [vmem:[%s7046_s17 + $0x7c8] sm:$0xff]  ;;  %v7238_v11 = vld [vmem:[%s7148_s11 + $0x18] sm:$0xff] }
  0xfc   : > { %4837 = vmatprep.subr.bf16.mxu1 %v4836_v57  ;;  %v769_v57 = vld [vmem:[%s7046_s17 + $0x680] sm:$0xff]  ;;  %v607_v14 = vld [vmem:[%s7046_s17 + $0x170] sm:$0xff]  ;;  %v4786_v15 = vpack.c.bf16 %v793_v7, %v785_v6  ;;  %v616_v18 = vld [vmem:[%s7046_s17 + $0x1b8] sm:$0xff]  ;;  %v4788_v19 = vpack.c.bf16 %v810_v10, %v802_v9 }
  0xfd   : > { %4771 = vmatpush1.bf16.msra.mxu0 %v4770_v29  ;;  %v4782_v2 = vpack.c.bf16 %v777_v58, %v769_v57  ;;  %v7243_v16 = vld [vmem:[%s7148_s11 + $0x10] sm:$0xff]  ;;  %v801_v20 = vld [vmem:[%s7046_s17 + $0x780] sm:$0xff]  ;;  %v624_v22 = vld [vmem:[%s7046_s17 + $0x1f8] sm:$0xff] }
  0xfe   : > { %4773 = vmatprep.subr.bf16.mxu0 %v4772_v32  ;;  %v809_v21 = vld [vmem:[%s7046_s17 + $0x7c0] sm:$0xff]  ;;  %v566_v23 = vld [vmem:[%s7046_s17 + $0x28] sm:$0xff]  ;;  %v615_v27 = vld [vmem:[%s7046_s17 + $0x1b0] sm:$0xff]  ;;  %v4932_v32 = vpack.c.bf16 %v624_v22, %v616_v18 }
  0xff   : > { %4839 = vmatpush1.bf16.msra.mxu1 %v4838_v1  ;;  %v591_v1 = vld [vmem:[%s7046_s17 + $0xf0] sm:$0xff]  ;;  %v574_v24 = vld [vmem:[%s7046_s17 + $0x68] sm:$0xff]  ;;  %v7259_v31 = vld [vmem:[%s7148_s11 + $0x20] sm:$0xff] }
 0x100   : > { %4841 = vmatprep.subr.bf16.mxu1 %v4840_v5  ;;  %v4784_v5 = vpack.c.bf16 %v794_v61, %v786_v60  ;;  %v4926_v12 = vpack.c.bf16 %v591_v1, %v583_v0  ;;  %v623_v29 = vld [vmem:[%s7046_s17 + $0x1f0] sm:$0xff]  ;;  %v632_v33 = vld [vmem:[%s7046_s17 + $0x238] sm:$0xff]  ;;  %v4856_v34 = vpack.c.bf16 %v574_v24, %v566_v23  ;;  %v565_v35 = vld [vmem:[%s7046_s17 + $0x20] sm:$0xff] }
 0x101   : > { %4775 = vmatpush1.bf16.msra.mxu0 %v4774_v41  ;;  %v573_v36 = vld [vmem:[%s7046_s17 + $0x60] sm:$0xff]  ;;  %v640_v37 = vld [vmem:[%s7046_s17 + $0x278] sm:$0xff]  ;;  %v590_v39 = vld [vmem:[%s7046_s17 + $0xe8] sm:$0xff]  ;;  %v4934_v41 = vpack.c.bf16 %v623_v29, %v615_v27 }
 0x102   : > { %4777 = vmatprep.subr.bf16.mxu0 %v4776_v44  ;;  %v7270_v40 = vld [vmem:[%s7148_s11 + $0x38] sm:$0xff]  ;;  %v639_v43 = vld [vmem:[%s7046_s17 + $0x270] sm:$0xff]  ;;  %v4858_v44 = vpack.c.bf16 %v573_v36, %v565_v35  ;;  %v4936_v46 = vpack.c.bf16 %v640_v37, %v632_v33  ;;  %v581_v49 = vld [vmem:[%s7046_s17 + $0xa0] sm:$0xff] }
 0x103   : > { %4843 = vmatpush1.bf16.msra.mxu1 %v4842_v13  ;;  %v599_v13 = vld [vmem:[%s7046_s17 + $0x130] sm:$0xff]  ;;  %v648_v47 = vld [vmem:[%s7046_s17 + $0x2b8] sm:$0xff]  ;;  %v598_v52 = vld [vmem:[%s7046_s17 + $0x128] sm:$0xff] }
 0x104   : > { %4845 = vmatprep.subr.bf16.mxu1 %v4844_v17  ;;  %v4928_v17 = vpack.c.bf16 %v608_v8, %v600_v4  ;;  %v4930_v26 = vpack.c.bf16 %v607_v14, %v599_v13  ;;  %v7275_v45 = vld [vmem:[%s7148_s11 + $0x30] sm:$0xff]  ;;  %v656_v51 = vld [vmem:[%s7046_s17 + $0x2f8] sm:$0xff]  ;;  %v7292_v59 = vld [vmem:[%s7148_s11 + $0x40] sm:$0xff] }
 0x105   : > { %4779 = vmatpush1.bf16.msra.mxu0 %v4778_v53  ;;  %v606_v53 = vld [vmem:[%s7046_s17 + $0x168] sm:$0xff]  ;;  %v655_v57 = vld [vmem:[%s7046_s17 + $0x2f0] sm:$0xff]  ;;  %v4940_v60 = vpack.c.bf16 %v656_v51, %v648_v47  ;;  %v664_v61 = vld [vmem:[%s7046_s17 + $0x338] sm:$0xff] }
 0x106   : > { %4781 = vmatprep.subr.bf16.mxu0 %v4780_v56  ;;  %v647_v56 = vld [vmem:[%s7046_s17 + $0x2b0] sm:$0xff]  ;;  %v597_v0 = vld [vmem:[%s7046_s17 + $0x120] sm:$0xff]  ;;  %v622_v4 = vld [vmem:[%s7046_s17 + $0x1e8] sm:$0xff] }
 0x107   : > { %4847 = vmatpush1.bf16.msra.mxu1 %v4846_v25  ;;  %v7254_v25 = vld [vmem:[%s7148_s11 + $0x28] sm:$0xff]  ;;  %v605_v1 = vld [vmem:[%s7046_s17 + $0x160] sm:$0xff]  ;;  %v4942_v6 = vpack.c.bf16 %v655_v57, %v647_v56  ;;  %v663_v7 = vld [vmem:[%s7046_s17 + $0x330] sm:$0xff] }
 0x108   : > { %4849 = vmatprep.subr.bf16.mxu1 %v4848_v30  ;;  %v4790_v30 = vpack.c.bf16 %v809_v21, %v801_v20  ;;  %v671_v8 = vld [vmem:[%s7046_s17 + $0x370] sm:$0xff]  ;;  %v4866_v9 = vpack.c.bf16 %v605_v1, %v597_v0  ;;  %v680_v13 = vld [vmem:[%s7046_s17 + $0x3b8] sm:$0xff]  ;;  %v638_v20 = vld [vmem:[%s7046_s17 + $0x268] sm:$0xff] }
 0x109   : > { %4783 = vmatpush1.bf16.msra.mxu0 %v4782_v2  ;;  %v672_v2 = vld [vmem:[%s7046_s17 + $0x378] sm:$0xff]  ;;  %v7310_v10 = vld [vmem:[%s7148_s11 + $0x50] sm:$0xff]  ;;  %v7322_v21 = vld [vmem:[%s7148_s11 + $0x68] sm:$0xff]  ;;  %v4946_v22 = vpack.c.bf16 %v671_v8, %v663_v7 }
 0x10a   : > { %4785 = vmatprep.subr.bf16.mxu0 %v4784_v5  ;;  %v7304_v5 = vld [vmem:[%s7148_s11 + $0x58] sm:$0xff]  ;;  %v679_v23 = vld [vmem:[%s7046_s17 + $0x3b0] sm:$0xff]  ;;  %v7328_v27 = vld [vmem:[%s7148_s11 + $0x60] sm:$0xff] }
 0x10b   : > { %4851 = vmatpush1.bf16.msra.mxu1 %v4850_v38  ;;  %v582_v38 = vld [vmem:[%s7046_s17 + $0xa8] sm:$0xff]  ;;  %v688_v18 = vld [vmem:[%s7046_s17 + $0x3f8] sm:$0xff]  ;;  %v687_v24 = vld [vmem:[%s7046_s17 + $0x3f0] sm:$0xff] }
 0x10c   : > { %4853 = vmatprep.subr.bf16.mxu1 %v4852_v42  ;;  %v631_v42 = vld [vmem:[%s7046_s17 + $0x230] sm:$0xff]  ;;  %v4860_v48 = vpack.c.bf16 %v590_v39, %v582_v38  ;;  %v4948_v29 = vpack.c.bf16 %v688_v18, %v680_v13  ;;  %v629_v33 = vld [vmem:[%s7046_s17 + $0x220] sm:$0xff]  ;;  %v704_v35 = vld [vmem:[%s7046_s17 + $0x478] sm:$0xff]  ;;  %v4950_v39 = vpack.c.bf16 %v687_v24, %v679_v23 }
 0x10d   : > { %4787 = vmatpush1.bf16.msra.mxu0 %v4786_v15  ;;  %v4938_v55 = vpack.c.bf16 %v639_v43, %v631_v42  ;;  %v613_v15 = vld [vmem:[%s7046_s17 + $0x1a0] sm:$0xff]  ;;  %v646_v36 = vld [vmem:[%s7046_s17 + $0x2a8] sm:$0xff]  ;;  %v7340_v38 = vld [vmem:[%s7148_s11 + $0x78] sm:$0xff] }
 0x10e   : > { %4789 = vmatprep.subr.bf16.mxu0 %v4788_v19  ;;  %v630_v19 = vld [vmem:[%s7046_s17 + $0x228] sm:$0xff]  ;;  %v703_v42 = vld [vmem:[%s7046_s17 + $0x470] sm:$0xff]  ;;  %v712_v47 = vld [vmem:[%s7046_s17 + $0x4b8] sm:$0xff] }
 0x10f   : > { %4855 = vmatpush1.bf16.msra.mxu1 %v4854_v50  ;;  %v589_v50 = vld [vmem:[%s7046_s17 + $0xe0] sm:$0xff]  ;;  %v654_v37 = vld [vmem:[%s7046_s17 + $0x2e8] sm:$0xff]  ;;  %v720_v51 = vld [vmem:[%s7046_s17 + $0x4f8] sm:$0xff] }
 0x110   : > { %4921 = vmatprep.subr.bf16.mxu1 %v4920_v54  ;;  %v7287_v54 = vld [vmem:[%s7148_s11 + $0x48] sm:$0xff]  ;;  %v4862_v58 = vpack.c.bf16 %v589_v50, %v581_v49  ;;  %v645_v49 = vld [vmem:[%s7046_s17 + $0x2a0] sm:$0xff]  ;;  %v711_v56 = vld [vmem:[%s7046_s17 + $0x4b0] sm:$0xff] }
 0x111   : > { %4791 = vmatpush1.bf16.msra.mxu0 %v4790_v30  ;;  %v696_v30 = vld [vmem:[%s7046_s17 + $0x438] sm:$0xff]  ;;  %v653_v50 = vld [vmem:[%s7046_s17 + $0x2e0] sm:$0xff]  ;;  %v719_v57 = vld [vmem:[%s7046_s17 + $0x4f0] sm:$0xff] }
 0x112   : > { %1037 = vmatmul.mubr.f32.vlgmr.msra.gmra.mrb[0].mxu1 %v7226_v62  ;;  %4857 = vmatprep.subr.bf16.mxu0 %v4856_v34  ;;  %v637_v34 = vld [vmem:[%s7046_s17 + $0x260] sm:$0xff]  ;;  %v727_v7 = vld [vmem:[%s7046_s17 + $0x530] sm:$0xff]  ;;  %v744_v13 = vld [vmem:[%s7046_s17 + $0x5b8] sm:$0xff] }
 0x113   : > { %4923 = vmatpush1.bf16.msra.mxu1 %v4922_v63  ;;  %1042 = vmatprep.mubr.f32.mxu1 %v7238_v11  ;;  %v4864_v63 = vpack.c.bf16 %v606_v53, %v598_v52  ;;  %v4874_v43 = vpack.c.bf16 %v637_v34, %v629_v33  ;;  %v662_v52 = vld [vmem:[%s7046_s17 + $0x328] sm:$0xff]  ;;  %v661_v0 = vld [vmem:[%s7046_s17 + $0x320] sm:$0xff]  ;;  %v735_v8 = vld [vmem:[%s7046_s17 + $0x570] sm:$0xff] }
 0x114   : > { %4925 = vmatprep.subr.bf16.mxu1 %v4924_v3  ;;  %924 = vmatmul.mubr.f32.vlgmr.msra.gmra.mrb[0].mxu0 %v7226_v62  ;;  %v614_v3 = vld [vmem:[%s7046_s17 + $0x1a8] sm:$0xff]  ;;  %v669_v1 = vld [vmem:[%s7046_s17 + $0x360] sm:$0xff]  ;;  %v752_v18 = vld [vmem:[%s7046_s17 + $0x5f8] sm:$0xff] }
 0x115   : > { %4859 = vmatpush1.bf16.msra.mxu0 %v4858_v44  ;;  %929 = vmatprep.mubr.f32.mxu0 %v7238_v11  ;;  %v4868_v14 = vpack.c.bf16 %v622_v4, %v614_v3  ;;  %v7346_v44 = vld [vmem:[%s7148_s11 + $0x70] sm:$0xff]  ;;  %v670_v53 = vld [vmem:[%s7046_s17 + $0x368] sm:$0xff]  ;;  %v693_v33 = vld [vmem:[%s7046_s17 + $0x420] sm:$0xff] }
 0x116   : > { %1043 = vmatmul.mubr.f32.gmra.mrb[2].mxu1 %v7243_v16  ;;  %4861 = vmatprep.subr.bf16.mxu0 %v4860_v48  ;;  %v4876_v48 = vpack.c.bf16 %v654_v37, %v646_v36  ;;  %v678_v3 = vld [vmem:[%s7046_s17 + $0x3a8] sm:$0xff]  ;;  %v743_v23 = vld [vmem:[%s7046_s17 + $0x5b0] sm:$0xff]  ;;  %v701_v34 = vld [vmem:[%s7046_s17 + $0x460] sm:$0xff] }
 0x117   : > { %4927 = vmatpush1.bf16.msra.mxu1 %v4926_v12  ;;  %1048 = vmatprep.mubr.f32.mxu1 %v7254_v25  ;;  %v4944_v12 = vpack.c.bf16 %v672_v2, %v664_v61  ;;  %v728_v61 = vld [vmem:[%s7046_s17 + $0x538] sm:$0xff]  ;;  %v686_v4 = vld [vmem:[%s7046_s17 + $0x3e8] sm:$0xff]  ;;  %v751_v24 = vld [vmem:[%s7046_s17 + $0x5f0] sm:$0xff] }
 0x118   : > { %4929 = vmatprep.subr.bf16.mxu1 %v4928_v17  ;;  %930 = vmatmul.mubr.f32.gmra.mrb[2].mxu0 %v7243_v16  ;;  %v621_v17 = vld [vmem:[%s7046_s17 + $0x1e0] sm:$0xff]  ;;  %v736_v2 = vld [vmem:[%s7046_s17 + $0x578] sm:$0xff]  ;;  %v710_v36 = vld [vmem:[%s7046_s17 + $0x4a8] sm:$0xff] }
 0x119   : > { %4863 = vmatpush1.bf16.msra.mxu0 %v4862_v58  ;;  %935 = vmatprep.mubr.f32.mxu0 %v7254_v25  ;;  %v4878_v58 = vpack.c.bf16 %v653_v50, %v645_v49  ;;  %v718_v37 = vld [vmem:[%s7046_s17 + $0x4e8] sm:$0xff]  ;;  %v709_v49 = vld [vmem:[%s7046_s17 + $0x4a0] sm:$0xff] }
 0x11a   : > { %1049 = vmatmul.mubr.f32.gmra.mrb[4].mxu1 %v7259_v31  ;;  %4865 = vmatprep.subr.bf16.mxu0 %v4864_v63  ;;  %v4880_v63 = vpack.c.bf16 %v670_v53, %v662_v52  ;;  %v717_v50 = vld [vmem:[%s7046_s17 + $0x4e0] sm:$0xff]  ;;  %v726_v52 = vld [vmem:[%s7046_s17 + $0x528] sm:$0xff] }
 0x11b   : > { %4931 = vmatpush1.bf16.msra.mxu1 %v4930_v26  ;;  %1054 = vmatprep.mubr.f32.mxu1 %v7270_v40  ;;  %v4870_v26 = vpack.c.bf16 %v621_v17, %v613_v15  ;;  %v677_v15 = vld [vmem:[%s7046_s17 + $0x3a0] sm:$0xff]  ;;  %v734_v53 = vld [vmem:[%s7046_s17 + $0x568] sm:$0xff] }
 0x11c   : > { %4933 = vmatprep.subr.bf16.mxu1 %v4932_v32  ;;  %936 = vmatmul.mubr.f32.gmra.mrb[4].mxu0 %v7259_v31  ;;  %v4872_v32 = vpack.c.bf16 %v638_v20, %v630_v19  ;;  %v685_v17 = vld [vmem:[%s7046_s17 + $0x3e0] sm:$0xff]  ;;  %v694_v19 = vld [vmem:[%s7046_s17 + $0x428] sm:$0xff] }
 0x11d   : > { %4867 = vmatpush1.bf16.msra.mxu0 %v4866_v9  ;;  %941 = vmatprep.mubr.f32.mxu0 %v7270_v40  ;;  %v4882_v9 = vpack.c.bf16 %v669_v1, %v661_v0  ;;  %v702_v20 = vld [vmem:[%s7046_s17 + $0x468] sm:$0xff]  ;;  %v725_v0 = vld [vmem:[%s7046_s17 + $0x520] sm:$0xff] }
 0x11e   : > { %1055 = vmatmul.mubr.f32.gmra.mrb[6].mxu1 %v7275_v45  ;;  %4869 = vmatprep.subr.bf16.mxu0 %v4868_v14  ;;  %v4884_v14 = vpack.c.bf16 %v686_v4, %v678_v3  ;;  %v733_v1 = vld [vmem:[%s7046_s17 + $0x560] sm:$0xff]  ;;  %v750_v3 = vld [vmem:[%s7046_s17 + $0x5e8] sm:$0xff] }
 0x11f   : > { %4935 = vmatpush1.bf16.msra.mxu1 %v4934_v41  ;;  %1060 = vmatprep.mubr.f32.mxu1 %v7287_v54  ;;  %v695_v41 = vld [vmem:[%s7046_s17 + $0x430] sm:$0xff] }
 0x120   : > { %4937 = vmatprep.subr.bf16.mxu1 %v4936_v46  ;;  %942 = vmatmul.mubr.f32.gmra.mrb[6].mxu0 %v7275_v45  ;;  %v4952_v46 = vpack.c.bf16 %v704_v35, %v696_v30  ;;  %v760_v30 = vld [vmem:[%s7046_s17 + $0x638] sm:$0xff] }
 0x121   : > { %4871 = vmatpush1.bf16.msra.mxu0 %v4870_v26  ;;  %947 = vmatprep.mubr.f32.mxu0 %v7287_v54  ;;  %v4886_v26 = vpack.c.bf16 %v685_v17, %v677_v15  ;;  %v768_v35 = vld [vmem:[%s7046_s17 + $0x678] sm:$0xff]  ;;  %v749_v15 = vld [vmem:[%s7046_s17 + $0x5e0] sm:$0xff] }
 0x122   : > { %1061 = vmatmul.mubr.f32.gmra.mrb[8].mxu1 %v7292_v59  ;;  %4873 = vmatprep.subr.bf16.mxu0 %v4872_v32  ;;  %v4888_v32 = vpack.c.bf16 %v702_v20, %v694_v19  ;;  %v816_v17 = vld [vmem:[%s7046_s17 + $0x7f8] sm:$0xff]  ;;  %v766_v19 = vld [vmem:[%s7046_s17 + $0x668] sm:$0xff] }
 0x123   : > { %4939 = vmatpush1.bf16.msra.mxu1 %v4938_v55  ;;  %1066 = vmatprep.mubr.f32.mxu1 %v7304_v5  ;;  %v4954_v55 = vpack.c.bf16 %v703_v42, %v695_v41  ;;  %v759_v41 = vld [vmem:[%s7046_s17 + $0x630] sm:$0xff] }
 0x124   : > { %4941 = vmatprep.subr.bf16.mxu1 %v4940_v60  ;;  %948 = vmatmul.mubr.f32.gmra.mrb[8].mxu0 %v7292_v59  ;;  %v4956_v60 = vpack.c.bf16 %v720_v51, %v712_v47  ;;  %v767_v42 = vld [vmem:[%s7046_s17 + $0x670] sm:$0xff]  ;;  %v776_v47 = vld [vmem:[%s7046_s17 + $0x6b8] sm:$0xff] }
 0x125   : > { %4875 = vmatpush1.bf16.msra.mxu0 %v4874_v43  ;;  %953 = vmatprep.mubr.f32.mxu0 %v7304_v5  ;;  %v4890_v43 = vpack.c.bf16 %v701_v34, %v693_v33  ;;  %v784_v51 = vld [vmem:[%s7046_s17 + $0x6f8] sm:$0xff]  ;;  %v765_v33 = vld [vmem:[%s7046_s17 + $0x660] sm:$0xff] }
 0x126   : > { %1067 = vmatmul.mubr.f32.gmra.mrb[10].mxu1 %v7310_v10  ;;  %4877 = vmatprep.subr.bf16.mxu0 %v4876_v48  ;;  %v4892_v48 = vpack.c.bf16 %v718_v37, %v710_v36  ;;  %v1316_v34 = vld [vmem:[%s7061_s24 + $0x28] sm:$0xff]  ;;  %v782_v36 = vld [vmem:[%s7046_s17 + $0x6e8] sm:$0xff] }
 0x127   : > { %4943 = vmatpush1.bf16.msra.mxu1 %v4942_v6  ;;  %1072 = vmatprep.mubr.f32.mxu1 %v7322_v21  ;;  %v4958_v6 = vpack.c.bf16 %v719_v57, %v711_v56  ;;  %v775_v56 = vld [vmem:[%s7046_s17 + $0x6b0] sm:$0xff] }
 0x128   : > { %4945 = vmatprep.subr.bf16.mxu1 %v4944_v12  ;;  %954 = vmatmul.mubr.f32.gmra.mrb[10].mxu0 %v7310_v10  ;;  %v4960_v12 = vpack.c.bf16 %v736_v2, %v728_v61  ;;  %v783_v57 = vld [vmem:[%s7046_s17 + $0x6f0] sm:$0xff]  ;;  %v792_v61 = vld [vmem:[%s7046_s17 + $0x738] sm:$0xff]  ;;  %v742_v2 = vld [vmem:[%s7046_s17 + $0x5a8] sm:$0xff] }
 0x129   : > { %4879 = vmatpush1.bf16.msra.mxu0 %v4878_v58  ;;  %959 = vmatprep.mubr.f32.mxu0 %v7322_v21  ;;  %v4894_v58 = vpack.c.bf16 %v717_v50, %v709_v49  ;;  %v4974_v4 = vpack.c.bf16 %v783_v57, %v775_v56  ;;  %v773_v49 = vld [vmem:[%s7046_s17 + $0x6a0] sm:$0xff]  ;;  %v1319_v56 = vld [vmem:[%s7061_s24 + $0x40] sm:$0xff] }
 0x12a   : > { %1073 = vmatmul.mubr.f32.gmra.mrb[12].mxu1 %v7328_v27  ;;  %4881 = vmatprep.subr.bf16.mxu0 %v4880_v63  ;;  %v4896_v63 = vpack.c.bf16 %v734_v53, %v726_v52  ;;  %v781_v50 = vld [vmem:[%s7046_s17 + $0x6e0] sm:$0xff]  ;;  %v798_v52 = vld [vmem:[%s7046_s17 + $0x768] sm:$0xff]  ;;  %v1323_v57 = vld [vmem:[%s7061_s24 + $0x60] sm:$0xff] }
 0x12b   : > { %4947 = vmatpush1.bf16.msra.mxu1 %v4946_v22  ;;  %1078 = vmatprep.mubr.f32.mxu1 %v7340_v38  ;;  %v4962_v22 = vpack.c.bf16 %v735_v8, %v727_v7  ;;  %v799_v7 = vld [vmem:[%s7046_s17 + $0x770] sm:$0xff]  ;;  %v4898_v8 = vpack.c.bf16 %v733_v1, %v725_v0  ;;  %v789_v0 = vld [vmem:[%s7046_s17 + $0x720] sm:$0xff] }
 0x12c   : > { %4949 = vmatprep.subr.bf16.mxu1 %v4948_v29  ;;  %960 = vmatmul.mubr.f32.gmra.mrb[12].mxu0 %v7328_v27  ;;  %v4964_v29 = vpack.c.bf16 %v752_v18, %v744_v13  ;;  %v4900_v13 = vpack.c.bf16 %v750_v3, %v742_v2  ;;  %v758_v18 = vld [vmem:[%s7046_s17 + $0x628] sm:$0xff]  ;;  %v797_v1 = vld [vmem:[%s7046_s17 + $0x760] sm:$0xff]  ;;  %v7448_v3 = vpack.c.bf16 %v1323_v57, %v1319_v56  ;;  %v1396_v56 = vld [vmem:[%s7063_s23 + $0xa8] sm:$0xff] }
 0x12d   : > { %4883 = vmatpush1.bf16.msra.mxu0 %v4882_v9  ;;  %965 = vmatprep.mubr.f32.mxu0 %v7340_v38  ;;  %v814_v2 = vld [vmem:[%s7046_s17 + $0x7e8] sm:$0xff] }
 0x12e   : > { %1079 = vmatmul.mubr.f32.gmra.mrb[14].mxu1 %v7346_v44  ;;  %4885 = vmatprep.subr.bf16.mxu0 %v4884_v14  ;;  %v741_v14 = vld [vmem:[%s7046_s17 + $0x5a0] sm:$0xff] }
 0x12f   : > { %4951 = vmatpush1.bf16.msra.mxu1 %v4950_v39  ;;  %1262 = vmatprep.mubr.f32.mxu1 %v7157_v28  ;;  %v4966_v39 = vpack.c.bf16 %v751_v24, %v743_v23  ;;  %v815_v23 = vld [vmem:[%s7046_s17 + $0x7f0] sm:$0xff]  ;;  %v4902_v24 = vpack.c.bf16 %v749_v15, %v741_v14  ;;  %v805_v14 = vld [vmem:[%s7046_s17 + $0x7a0] sm:$0xff] }
 0x130   : > { %4953 = vmatprep.subr.bf16.mxu1 %v4952_v46  ;;  %966 = vmatmul.mubr.f32.gmra.mrb[14].mxu0 %v7346_v44  ;;  %v4968_v46 = vpack.c.bf16 %v768_v35, %v760_v30  ;;  %v4904_v30 = vpack.c.bf16 %v766_v19, %v758_v18  ;;  %v774_v35 = vld [vmem:[%s7046_s17 + $0x6a8] sm:$0xff]  ;;  %v813_v15 = vld [vmem:[%s7046_s17 + $0x7e0] sm:$0xff]  ;;  %v1380_v18 = vld [vmem:[%s7063_s23 + $0x28] sm:$0xff] }
 0x131   : > { %4887 = vmatpush1.bf16.msra.mxu0 %v4886_v26  ;;  %1149 = vmatprep.mubr.f32.mxu0 %v7157_v28  ;;  %v800_v28 = vld [vmem:[%s7046_s17 + $0x778] sm:$0xff] }
 0x132   : > { %4889 = vmatprep.subr.bf16.mxu0 %v4888_v32  ;;  %v4976_v9 = vpack.c.bf16 %v800_v28, %v792_v61  ;;  %v757_v32 = vld [vmem:[%s7046_s17 + $0x620] sm:$0xff]  ;;  %v1332_v61 = vld [vmem:[%s7061_s24 + $0xa8] sm:$0xff]  ;;  %v806_v28 = vld [vmem:[%s7046_s17 + $0x7a8] sm:$0xff] }
 0x133   : > { %4955 = vmatpush1.bf16.msra.mxu1 %v4954_v55  ;;  %v4970_v55 = vpack.c.bf16 %v767_v42, %v759_v41  ;;  %v1311_v42 = vld [vmem:[%s7061_s24] sm:$0xff] }
 0x134   : > { %4957 = vmatprep.subr.bf16.mxu1 %v4956_v60  ;;  %v4972_v60 = vpack.c.bf16 %v784_v51, %v776_v47  ;;  %v4908_v47 = vpack.c.bf16 %v782_v36, %v774_v35  ;;  %v790_v51 = vld [vmem:[%s7046_s17 + $0x728] sm:$0xff]  ;;  %v1384_v35 = vld [vmem:[%s7063_s23 + $0x48] sm:$0xff] }
 0x135   : > { %4891 = vmatpush1.bf16.msra.mxu0 %v4890_v43  ;;  %v1315_v43 = vld [vmem:[%s7061_s24 + $0x20] sm:$0xff]  ;;  %v1388_v36 = vld [vmem:[%s7063_s23 + $0x68] sm:$0xff] }
 0x136   : > { %4893 = vmatprep.subr.bf16.mxu0 %v4892_v48  ;;  %v1324_v48 = vld [vmem:[%s7061_s24 + $0x68] sm:$0xff]  ;;  %v7432_v53 = vpack.c.bf16 %v1315_v43, %v1311_v42  ;;  %v1347_v42 = vld [vmem:[%s7061_s24 + $0x120] sm:$0xff] }
 0x137   : > { %4959 = vmatpush1.bf16.msra.mxu1 %v4958_v6  ;;  %v791_v6 = vld [vmem:[%s7046_s17 + $0x730] sm:$0xff]  ;;  %v1352_v43 = vld [vmem:[%s7061_s24 + $0x148] sm:$0xff] }
 0x138   : > { %4961 = vmatprep.subr.bf16.mxu1 %v4960_v12  ;;  %v808_v12 = vld [vmem:[%s7046_s17 + $0x7b8] sm:$0xff]  ;;  %v4978_v20 = vpack.c.bf16 %v799_v7, %v791_v6  ;;  %v1327_v6 = vld [vmem:[%s7061_s24 + $0x80] sm:$0xff] }
 0x139   : > { %4895 = vmatpush1.bf16.msra.mxu0 %v4894_v58  ;;  %v4980_v26 = vpack.c.bf16 %v816_v17, %v808_v12  ;;  %v1328_v58 = vld [vmem:[%s7061_s24 + $0x88] sm:$0xff]  ;;  %v1331_v7 = vld [vmem:[%s7061_s24 + $0xa0] sm:$0xff] }
 0x13a   : > { %4897 = vmatprep.subr.bf16.mxu0 %v4896_v63  ;;  %v4912_v63 = vpack.c.bf16 %v798_v52, %v790_v51  ;;  %v1340_v12 = vld [vmem:[%s7061_s24 + $0xe8] sm:$0xff]  ;;  %v7464_v19 = vpack.c.bf16 %v1331_v7, %v1327_v6 }
 0x13b   : > { %4963 = vmatpush1.bf16.msra.mxu1 %v4962_v22  ;;  %v807_v22 = vld [vmem:[%s7046_s17 + $0x7b0] sm:$0xff]  ;;  %v1376_v17 = vld [vmem:[%s7063_s23 + $0x8] sm:$0xff] }
 0x13c   : > { %4965 = vmatprep.subr.bf16.mxu1 %v4964_v29  ;;  %v1312_v29 = vld [vmem:[%s7061_s24 + $0x8] sm:$0xff]  ;;  %v4982_v37 = vpack.c.bf16 %v815_v23, %v807_v22  ;;  %8646 = vst [vmem:[#allocation20_spill] sm:$0xff] %v7464_v19  ;;  %v1335_v22 = vld [vmem:[%s7061_s24 + $0xc0] sm:$0xff] }
 0x13d   : > { %4899 = vmatpush1.bf16.msra.mxu0 %v4898_v8  ;;  %v7422_v41 = vpack.c.bf16 %v1316_v34, %v1312_v29  ;;  %v1336_v8 = vld [vmem:[%s7061_s24 + $0xc8] sm:$0xff]  ;;  %v1339_v23 = vld [vmem:[%s7061_s24 + $0xe0] sm:$0xff] }
 0x13e   : > { %4901 = vmatprep.subr.bf16.mxu0 %v4900_v13  ;;  %v4916_v13 = vpack.c.bf16 %v814_v2, %v806_v28  ;;  %v1348_v29 = vld [vmem:[%s7061_s24 + $0x128] sm:$0xff]  ;;  %v7480_v34 = vpack.c.bf16 %v1339_v23, %v1335_v22  ;;  %v1391_v28 = vld [vmem:[%s7063_s23 + $0x80] sm:$0xff] }
 0x13f   : > { %4967 = vmatpush1.bf16.msra.mxu1 %v4966_v39  ;;  %v4906_v39 = vpack.c.bf16 %v765_v33, %v757_v32  ;;  %v1375_v32 = vld [vmem:[%s7063_s23] sm:$0xff]  ;;  %v1392_v52 = vld [vmem:[%s7063_s23 + $0x88] sm:$0xff] }
 0x140   : > { %4969 = vmatprep.subr.bf16.mxu1 %v4968_v46  ;;  %v1320_v46 = vld [vmem:[%s7061_s24 + $0x48] sm:$0xff]  ;;  %v1379_v33 = vld [vmem:[%s7063_s23 + $0x20] sm:$0xff]  ;;  %8649 = vst [vmem:[#allocation23_spill] sm:$0xff] %v7480_v34 }
 0x141   : > { %4903 = vmatpush1.bf16.msra.mxu0 %v4902_v24  ;;  %v4918_v24 = vpack.c.bf16 %v813_v15, %v805_v14  ;;  %v1400_v2 = vld [vmem:[%s7063_s23 + $0xc8] sm:$0xff] }
 0x142   : > { %4905 = vmatprep.subr.bf16.mxu0 %v4904_v30  ;;  %v7473_v30 = vpack.c.bf16 %v1380_v18, %v1376_v17  ;;  %v1404_v6 = vld [vmem:[%s7063_s23 + $0xe8] sm:$0xff]  ;;  %v1399_v17 = vld [vmem:[%s7063_s23 + $0xc0] sm:$0xff] }
 0x143   : > { %4971 = vmatpush1.bf16.msra.mxu1 %v4970_v55  ;;  %v7435_v55 = vpack.c.bf16 %v1324_v48, %v1320_v46  ;;  %v1356_v46 = vld [vmem:[%s7061_s24 + $0x168] sm:$0xff]  ;;  %v7495_v48 = vpack.c.bf16 %v1388_v36, %v1384_v35  ;;  %v7543_v15 = vpack.c.bf16 %v1404_v6, %v1400_v2  ;;  %v1407_v36 = vld [vmem:[%s7063_s23 + $0x100] sm:$0xff]  ;;  %v1321_v2 = vld [vmem:[%s7061_s24 + $0x50] sm:$0xff] }
 0x144   : > { %4973 = vmatprep.subr.bf16.mxu1 %v4972_v60  ;;  %v4910_v60 = vpack.c.bf16 %v781_v50, %v773_v49  ;;  %8648 = vst [vmem:[#allocation22_spill] sm:$0xff] %v7473_v30  ;;  %v1383_v49 = vld [vmem:[%s7063_s23 + $0x40] sm:$0xff]  ;;  %v7506_v57 = vpack.c.bf16 %v1356_v46, %v1352_v43  ;;  %v1408_v18 = vld [vmem:[%s7063_s23 + $0x108] sm:$0xff]  ;;  %v1313_v46 = vld [vmem:[%s7061_s24 + $0x10] sm:$0xff] }
 0x145   : > { %4907 = vmatpush1.bf16.msra.mxu0 %v4906_v39  ;;  %v1343_v39 = vld [vmem:[%s7061_s24 + $0x100] sm:$0xff]  ;;  %v1412_v22 = vld [vmem:[%s7063_s23 + $0x128] sm:$0xff]  ;;  %v1325_v6 = vld [vmem:[%s7061_s24 + $0x70] sm:$0xff] }
 0x146   : > { %4909 = vmatprep.subr.bf16.mxu0 %v4908_v47  ;;  %v7492_v47 = vpack.c.bf16 %v1379_v33, %v1375_v32  ;;  %v1387_v50 = vld [vmem:[%s7063_s23 + $0x60] sm:$0xff]  ;;  %v7501_v51 = vpack.c.bf16 %v1347_v42, %v1343_v39  ;;  %8652 = vst [vmem:[#allocation26_spill] sm:$0xff] %v7506_v57  ;;  %v1318_v32 = vld [vmem:[%s7061_s24 + $0x38] sm:$0xff]  ;;  %v7567_v35 = vpack.c.bf16 %v1412_v22, %v1408_v18  ;;  %v1416_v39 = vld [vmem:[%s7063_s23 + $0x148] sm:$0xff] }
 0x147   : > { %4975 = vmatpush1.bf16.msra.mxu1 %v4974_v4  ;;  %v7451_v4 = vpack.c.bf16 %v1332_v61, %v1328_v58  ;;  %v1351_v58 = vld [vmem:[%s7061_s24 + $0x140] sm:$0xff]  ;;  %v1360_v61 = vld [vmem:[%s7061_s24 + $0x188] sm:$0xff] }
 0x148   : > { %4977 = vmatprep.subr.bf16.mxu1 %v4976_v9  ;;  %v4914_v9 = vpack.c.bf16 %v797_v1, %v789_v0  ;;  %8651 = vst [vmem:[#allocation25_spill] sm:$0xff] %v7501_v51  ;;  %v7515_v0 = vpack.c.bf16 %v1387_v50, %v1383_v49  ;;  %v7519_v1 = vpack.c.bf16 %v1396_v56, %v1392_v52  ;;  %v1420_v42 = vld [vmem:[%s7063_s23 + $0x168] sm:$0xff]  ;;  %v1317_v49 = vld [vmem:[%s7061_s24 + $0x30] sm:$0xff]  ;;  %v1322_v50 = vld [vmem:[%s7061_s24 + $0x58] sm:$0xff] }
 0x149   : > { %8645 = vst [vmem:[#allocation19_spill] sm:$0xff] %v7451_v4  ;;  %4911 = vmatpush1.bf16.msra.mxu0 %v4910_v60  ;;  %v1355_v60 = vld [vmem:[%s7061_s24 + $0x160] sm:$0xff]  ;;  %v1326_v52 = vld [vmem:[%s7061_s24 + $0x78] sm:$0xff]  ;;  %v1436_v18 = vld [vmem:[%s7063_s23 + $0x1e8] sm:$0xff] }
 0x14a   : > { %4913 = vmatprep.subr.bf16.mxu0 %v4912_v63  ;;  %v1364_v63 = vld [vmem:[%s7061_s24 + $0x1a8] sm:$0xff] }
 0x14b   : > { %4979 = vmatpush1.bf16.msra.mxu1 %v4978_v20  ;;  %v7467_v20 = vpack.c.bf16 %v1340_v12, %v1336_v8  ;;  %v7530_v7 = vpack.c.bf16 %v1364_v63, %v1360_v61  ;;  %v1359_v8 = vld [vmem:[%s7061_s24 + $0x180] sm:$0xff]  ;;  %v1368_v12 = vld [vmem:[%s7061_s24 + $0x1c8] sm:$0xff]  ;;  %v8564_v61 = vmov 0.0  }
 0x14c   : > { %4981 = vmatprep.subr.bf16.mxu1 %v4980_v26  ;;  %v1344_v26 = vld [vmem:[%s7061_s24 + $0x108] sm:$0xff] }
 0x14d   : > { %8647 = vst [vmem:[#allocation21_spill] sm:$0xff] %v7467_v20  ;;  %4915 = vmatpush1.bf16.msra.mxu0 %v4914_v9  ;;  %8654 = vst [vmem:[#allocation28_spill] sm:$0xff] %v7530_v7  ;;  %v1363_v9 = vld [vmem:[%s7061_s24 + $0x1a0] sm:$0xff]  ;;  %v1424_v63 = vld [vmem:[%s7063_s23 + $0x188] sm:$0xff] }
 0x14e   : > { %4917 = vmatprep.subr.bf16.mxu0 %v4916_v13  ;;  %v1372_v13 = vld [vmem:[%s7061_s24 + $0x1e8] sm:$0xff] }
 0x14f   : > { %4983 = vmatpush1.bf16.msra.mxu1 %v4982_v37  ;;  %v7485_v37 = vpack.c.bf16 %v1348_v29, %v1344_v26  ;;  %v7554_v23 = vpack.c.bf16 %v1372_v13, %v1368_v12  ;;  %v1371_v26 = vld [vmem:[%s7061_s24 + $0x1e0] sm:$0xff]  ;;  %v1314_v29 = vld [vmem:[%s7061_s24 + $0x18] sm:$0xff] }
 0x150   : > { %4985 = vmatprep.subr.bf16.mxu1 %v7422_v41  ;;  %v7578_v43 = vpack.c.bf16 %v1318_v32, %v1314_v29  ;;  %v1338_v29 = vld [vmem:[%s7061_s24 + $0xd8] sm:$0xff] }
 0x151   : > { %8650 = vst [vmem:[#allocation24_spill] sm:$0xff] %v7485_v37  ;;  %4919 = vmatpush1.bf16.msra.mxu0 %v4918_v24  ;;  %8656 = vst [vmem:[#allocation30_spill] sm:$0xff] %v7554_v23  ;;  %v1367_v24 = vld [vmem:[%s7061_s24 + $0x1c0] sm:$0xff]  ;;  %v1342_v32 = vld [vmem:[%s7061_s24 + $0xf8] sm:$0xff] }
 0x152   : > { %1263 = vmatmul.mubr.f32.vlgmr.msra.gmra.mrb[16].mxu1 %v7226_v62  ;;  %5049 = vmatprep.subr.bf16.mxu0 %v7473_v30 }
 0x153   : > { %4987 = vmatpush1.bf16.msra.mxu1 %v7432_v53  ;;  %1268 = vmatprep.mubr.f32.mxu1 %v7238_v11 }
 0x154   : > { %4989 = vmatprep.subr.bf16.mxu1 %v7435_v55  ;;  %1150 = vmatmul.mubr.f32.vlgmr.msra.gmra.mrb[16].mxu0 %v7226_v62  ;;  %v1395_v62 = vld [vmem:[%s7063_s23 + $0xa0] sm:$0xff] }
 0x155   : > { %1155 = vmatprep.mubr.f32.mxu0 %v7238_v11  ;;  %5051 = vmatpush1.bf16.msra.mxu0 %v7492_v47  ;;  %v7525_v11 = vpack.c.bf16 %v1355_v60, %v1351_v58  ;;  %v7539_v14 = vpack.c.bf16 %v1395_v62, %v1391_v28  ;;  %v7591_v58 = vpack.c.bf16 %v1420_v42, %v1416_v39  ;;  %v1419_v60 = vld [vmem:[%s7063_s23 + $0x160] sm:$0xff]  ;;  %v1428_v28 = vld [vmem:[%s7063_s23 + $0x1a8] sm:$0xff] }
 0x156   : > { %1269 = vmatmul.mubr.f32.gmra.mrb[18].mxu1 %v7243_v16  ;;  %5053 = vmatprep.subr.bf16.mxu0 %v7495_v48  ;;  %v7602_v62 = vpack.c.bf16 %v1326_v52, %v1322_v50  ;;  %v7615_v13 = vpack.c.bf16 %v1428_v28, %v1424_v63  ;;  %v1431_v39 = vld [vmem:[%s7063_s23 + $0x1c0] sm:$0xff]  ;;  %v1346_v50 = vld [vmem:[%s7061_s24 + $0x118] sm:$0xff]  ;;  %v1345_v63 = vld [vmem:[%s7061_s24 + $0x110] sm:$0xff] }
 0x157   : > { %4991 = vmatpush1.bf16.msra.mxu1 %v7448_v3  ;;  %1274 = vmatprep.mubr.f32.mxu1 %v7254_v25  ;;  %8653 = vst [vmem:[#allocation27_spill] sm:$0xff] %v7525_v11  ;;  %v1435_v42 = vld [vmem:[%s7063_s23 + $0x1e0] sm:$0xff]  ;;  %v1350_v52 = vld [vmem:[%s7061_s24 + $0x138] sm:$0xff] }
 0x158   : > { %4993 = vmatprep.subr.bf16.mxu1 %v7451_v4  ;;  %1156 = vmatmul.mubr.f32.gmra.mrb[18].mxu0 %v7243_v16  ;;  %v1403_v16 = vld [vmem:[%s7063_s23 + $0xe0] sm:$0xff]  ;;  %v1354_v28 = vld [vmem:[%s7061_s24 + $0x158] sm:$0xff] }
 0x159   : > { %1161 = vmatprep.mubr.f32.mxu0 %v7254_v25  ;;  %5055 = vmatpush1.bf16.msra.mxu0 %v7515_v0  ;;  %v7549_v25 = vpack.c.bf16 %v1363_v9, %v1359_v8  ;;  %v7563_v33 = vpack.c.bf16 %v1403_v16, %v1399_v17  ;;  %v1330_v8 = vld [vmem:[%s7061_s24 + $0x98] sm:$0xff]  ;;  %v1423_v17 = vld [vmem:[%s7063_s23 + $0x180] sm:$0xff]  ;;  %v7620_v16 = vpack.c.bf16 %v1325_v6, %v1321_v2 }
 0x15a   : > { %1275 = vmatmul.mubr.f32.gmra.mrb[20].mxu1 %v7259_v31  ;;  %5057 = vmatprep.subr.bf16.mxu0 %v7519_v1  ;;  %v1334_v9 = vld [vmem:[%s7061_s24 + $0xb8] sm:$0xff] }
 0x15b   : > { %4995 = vmatpush1.bf16.msra.mxu1 %v7464_v19  ;;  %1280 = vmatprep.mubr.f32.mxu1 %v7270_v40  ;;  %8655 = vst [vmem:[#allocation29_spill] sm:$0xff] %v7549_v25  ;;  %v7626_v22 = vpack.c.bf16 %v1334_v9, %v1330_v8  ;;  %v1358_v2 = vld [vmem:[%s7061_s24 + $0x178] sm:$0xff]  ;;  %v1357_v9 = vld [vmem:[%s7061_s24 + $0x170] sm:$0xff] }
 0x15c   : > { %4997 = vmatprep.subr.bf16.mxu1 %v7467_v20  ;;  %1162 = vmatmul.mubr.f32.gmra.mrb[20].mxu0 %v7259_v31  ;;  %v1411_v31 = vld [vmem:[%s7063_s23 + $0x120] sm:$0xff]  ;;  %v7676_v8 = vpack.c.bf16 %v1358_v2, %v1354_v28  ;;  %v1377_v28 = vld [vmem:[%s7063_s23 + $0x10] sm:$0xff] }
 0x15d   : > { %1167 = vmatprep.mubr.f32.mxu0 %v7270_v40  ;;  %5059 = vmatpush1.bf16.msra.mxu0 %v7539_v14  ;;  %v7573_v40 = vpack.c.bf16 %v1371_v26, %v1367_v24  ;;  %v7587_v56 = vpack.c.bf16 %v1411_v31, %v1407_v36  ;;  %8658 = vst [vmem:[#allocation32_spill] sm:$0xff] %v7626_v22  ;;  %v1329_v24 = vld [vmem:[%s7061_s24 + $0x90] sm:$0xff] }
 0x15e   : > { %1281 = vmatmul.mubr.f32.gmra.mrb[22].mxu1 %v7275_v45  ;;  %5061 = vmatprep.subr.bf16.mxu0 %v7543_v15  ;;  %v1333_v26 = vld [vmem:[%s7061_s24 + $0xb0] sm:$0xff]  ;;  %8664 = vst [vmem:[#allocation38_spill] sm:$0xff] %v7676_v8 }
 0x15f   : > { %4999 = vmatpush1.bf16.msra.mxu1 %v7480_v34  ;;  %1286 = vmatprep.mubr.f32.mxu1 %v7287_v54  ;;  %8657 = vst [vmem:[#allocation31_spill] sm:$0xff] %v7573_v40  ;;  %v1381_v2 = vld [vmem:[%s7063_s23 + $0x30] sm:$0xff] }
 0x160   : > { %5001 = vmatprep.subr.bf16.mxu1 %v7485_v37  ;;  %1168 = vmatmul.mubr.f32.gmra.mrb[22].mxu0 %v7275_v45  ;;  %v1415_v45 = vld [vmem:[%s7063_s23 + $0x140] sm:$0xff] }
 0x161   : > { %1173 = vmatprep.mubr.f32.mxu0 %v7287_v54  ;;  %5063 = vmatpush1.bf16.msra.mxu0 %v7563_v33  ;;  %v7597_v54 = vpack.c.bf16 %v1317_v49, %v1313_v46  ;;  %v7611_v12 = vpack.c.bf16 %v1419_v60, %v1415_v45  ;;  %v7643_v46 = vpack.c.bf16 %v1333_v26, %v1329_v24  ;;  %v1341_v49 = vld [vmem:[%s7061_s24 + $0xf0] sm:$0xff] }
 0x162   : > { %1287 = vmatmul.mubr.f32.gmra.mrb[24].mxu1 %v7292_v59  ;;  %5065 = vmatprep.subr.bf16.mxu0 %v7567_v35  ;;  %v7655_v45 = vpack.c.bf16 %v1435_v42, %v1431_v39  ;;  %v1361_v24 = vld [vmem:[%s7061_s24 + $0x190] sm:$0xff] }
 0x163   : > { %5003 = vmatpush1.bf16.msra.mxu1 %v7501_v51  ;;  %1292 = vmatprep.mubr.f32.mxu1 %v7304_v5  ;;  %8659 = vst [vmem:[#allocation33_spill] sm:$0xff] %v7643_v46  ;;  %v1365_v26 = vld [vmem:[%s7061_s24 + $0x1b0] sm:$0xff] }
 0x164   : > { %5005 = vmatprep.subr.bf16.mxu1 %v7506_v57  ;;  %1174 = vmatmul.mubr.f32.gmra.mrb[24].mxu0 %v7292_v59  ;;  %v1427_v59 = vld [vmem:[%s7063_s23 + $0x1a0] sm:$0xff]  ;;  %v7697_v39 = vpack.c.bf16 %v1365_v26, %v1361_v24  ;;  %v1385_v24 = vld [vmem:[%s7063_s23 + $0x50] sm:$0xff] }
 0x165   : > { %1179 = vmatprep.mubr.f32.mxu0 %v7304_v5  ;;  %5067 = vmatpush1.bf16.msra.mxu0 %v7587_v56  ;;  %v1432_v5 = vld [vmem:[%s7063_s23 + $0x1c8] sm:$0xff]  ;;  %v7635_v36 = vpack.c.bf16 %v1427_v59, %v1423_v17  ;;  %v1362_v17 = vld [vmem:[%s7061_s24 + $0x198] sm:$0xff]  ;;  %v1389_v26 = vld [vmem:[%s7063_s23 + $0x70] sm:$0xff] }
 0x166   : > { %1293 = vmatmul.mubr.f32.gmra.mrb[26].mxu1 %v7310_v10  ;;  %5069 = vmatprep.subr.bf16.mxu0 %v7591_v58  ;;  %v7638_v31 = vpack.c.bf16 %v1436_v18, %v1432_v5  ;;  %v1366_v59 = vld [vmem:[%s7061_s24 + $0x1b8] sm:$0xff]  ;;  %8667 = vst [vmem:[#allocation41_spill] sm:$0xff] %v7697_v39 }
 0x167   : > { %5007 = vmatpush1.bf16.msra.mxu1 %v7525_v11  ;;  %1298 = vmatprep.mubr.f32.mxu1 %v7322_v21  ;;  %v7686_v18 = vpack.c.bf16 %v1366_v59, %v1362_v17  ;;  %v7721_v17 = vpack.c.bf16 %v1381_v2, %v1377_v28  ;;  %v1402_v28 = vld [vmem:[%s7063_s23 + $0xd8] sm:$0xff] }
 0x168   : > { %5009 = vmatprep.subr.bf16.mxu1 %v7530_v7  ;;  %1180 = vmatmul.mubr.f32.gmra.mrb[26].mxu0 %v7310_v10  ;;  %v7646_v10 = vpack.c.bf16 %v1342_v32, %v1338_v29  ;;  %v1370_v29 = vld [vmem:[%s7061_s24 + $0x1d8] sm:$0xff] }
 0x169   : > { %1185 = vmatprep.mubr.f32.mxu0 %v7322_v21  ;;  %5071 = vmatpush1.bf16.msra.mxu0 %v7611_v12  ;;  %v1337_v21 = vld [vmem:[%s7061_s24 + $0xd0] sm:$0xff]  ;;  %8666 = vst [vmem:[#allocation40_spill] sm:$0xff] %v7686_v18  ;;  %v1374_v32 = vld [vmem:[%s7061_s24 + $0x1f8] sm:$0xff] }
 0x16a   : > { %1299 = vmatmul.mubr.f32.gmra.mrb[28].mxu1 %v7328_v27  ;;  %5073 = vmatprep.subr.bf16.mxu0 %v7615_v13  ;;  %8660 = vst [vmem:[#allocation34_spill] sm:$0xff] %v7646_v10  ;;  %v7659_v60 = vpack.c.bf16 %v1341_v49, %v1337_v21  ;;  %v7700_v42 = vpack.c.bf16 %v1374_v32, %v1370_v29  ;;  %v1369_v21 = vld [vmem:[%s7061_s24 + $0x1d0] sm:$0xff]  ;;  %v1394_v29 = vld [vmem:[%s7063_s23 + $0x98] sm:$0xff] }
 0x16b   : > { %5011 = vmatpush1.bf16.msra.mxu1 %v7549_v25  ;;  %1304 = vmatprep.mubr.f32.mxu1 %v7340_v38  ;;  %v1373_v49 = vld [vmem:[%s7061_s24 + $0x1f0] sm:$0xff]  ;;  %v1398_v32 = vld [vmem:[%s7063_s23 + $0xb8] sm:$0xff] }
 0x16c   : > { %5013 = vmatprep.subr.bf16.mxu1 %v7554_v23  ;;  %1186 = vmatmul.mubr.f32.gmra.mrb[28].mxu0 %v7328_v27  ;;  %8661 = vst [vmem:[#allocation35_spill] sm:$0xff] %v7659_v60  ;;  %v7662_v27 = vpack.c.bf16 %v1350_v52, %v1346_v50  ;;  %8668 = vst [vmem:[#allocation42_spill] sm:$0xff] %v7700_v42  ;;  %v1378_v50 = vld [vmem:[%s7063_s23 + $0x18] sm:$0xff] }
 0x16d   : > { %1191 = vmatprep.mubr.f32.mxu0 %v7340_v38  ;;  %5075 = vmatpush1.bf16.msra.mxu0 %v7635_v36  ;;  %v1349_v38 = vld [vmem:[%s7061_s24 + $0x130] sm:$0xff]  ;;  %v1382_v52 = vld [vmem:[%s7063_s23 + $0x38] sm:$0xff] }
 0x16e   : > { %1305 = vmatmul.mubr.f32.gmra.mrb[30].mxu1 %v7346_v44  ;;  %5077 = vmatprep.subr.bf16.mxu0 %v7638_v31  ;;  %8662 = vst [vmem:[#allocation36_spill] sm:$0xff] %v7662_v27  ;;  %v7673_v6 = vpack.c.bf16 %v1349_v38, %v1345_v63  ;;  %v7709_v63 = vpack.c.bf16 %v1373_v49, %v1369_v21  ;;  %v1406_v2 = vld [vmem:[%s7063_s23 + $0xf8] sm:$0xff] }
 0x16f   : > { %5015 = vmatpush1.bf16.msra.mxu1 %v7573_v40  ;;  %1503 = vmatprep.mubr.f32.mxu1 %v8564_v61  ;;  %v7712_v38 = vpack.c.bf16 %v1382_v52, %v1378_v50  ;;  %v7734_v21 = vpack.c.bf16 %v1389_v26, %v1385_v24  ;;  %v7738_v49 = vpack.c.bf16 %v1398_v32, %v1394_v29  ;;  %v1393_v50 = vld [vmem:[%s7063_s23 + $0x90] sm:$0xff]  ;;  %v1410_v29 = vld [vmem:[%s7063_s23 + $0x118] sm:$0xff] }
 0x170   : > { %5017 = vmatprep.subr.bf16.mxu1 %v7578_v43  ;;  %1192 = vmatmul.mubr.f32.gmra.mrb[30].mxu0 %v7346_v44  ;;  %8663 = vst [vmem:[#allocation37_spill] sm:$0xff] %v7673_v6  ;;  %v1353_v44 = vld [vmem:[%s7061_s24 + $0x150] sm:$0xff]  ;;  %8669 = vst [vmem:[#allocation43_spill] sm:$0xff] %v7709_v63  ;;  %v1414_v32 = vld [vmem:[%s7063_s23 + $0x138] sm:$0xff] }
 0x171   : > { %5079 = vmatpush1.bf16.msra.mxu0 %v7655_v45  ;;  %1649 = vmatprep.mubr.f32.mxu0 %v8564_v61  ;;  %v7683_v5 = vpack.c.bf16 %v1357_v9, %v1353_v44  ;;  %8670 = vst [vmem:[#allocation44_spill] sm:$0xff] %v7712_v38  ;;  %v1386_v44 = vld [vmem:[%s7063_s23 + $0x58] sm:$0xff]  ;;  %v1397_v52 = vld [vmem:[%s7063_s23 + $0xb0] sm:$0xff] }
 0x172   : > { %1504 = vmatmul.mubr.f32.vlgmr.msra.gmra.mrb[32].mxu1 %v8564_v61  ;;  %5113 = vmatprep.subr.bf16.mxu0 %v7422_v41  ;;  %v1390_v9 = vld [vmem:[%s7063_s23 + $0x78] sm:$0xff]  ;;  %v1401_v24 = vld [vmem:[%s7063_s23 + $0xd0] sm:$0xff] }
 0x173   : > { %5019 = vmatpush1.bf16.msra.mxu1 %v7597_v54  ;;  %1574 = vmatprep.mubr.f32.mxu1 %v8564_v61  ;;  %8665 = vst [vmem:[#allocation39_spill] sm:$0xff] %v7683_v5  ;;  %v7724_v59 = vpack.c.bf16 %v1390_v9, %v1386_v44  ;;  %v7747_v44 = vpack.c.bf16 %v1397_v52, %v1393_v50  ;;  %v1405_v26 = vld [vmem:[%s7063_s23 + $0xf0] sm:$0xff] }
 0x174   : > { %5021 = vmatprep.subr.bf16.mxu1 %v7602_v62  ;;  %v7750_v9 = vpack.c.bf16 %v1406_v2, %v1402_v28  ;;  %v7759_v50 = vpack.c.bf16 %v1405_v26, %v1401_v24  ;;  %v7762_v52 = vpack.c.bf16 %v1414_v32, %v1410_v29  ;;  %v1409_v28 = vld [vmem:[%s7063_s23 + $0x110] sm:$0xff] }
 0x175   : > { %v1413_v2 = vld [vmem:[%s7063_s23 + $0x130] sm:$0xff] }
 0x176   : > { %v7771_v24 = vpack.c.bf16 %v1413_v2, %v1409_v28  ;;  %v1417_v29 = vld [vmem:[%s7063_s23 + $0x150] sm:$0xff]  ;;  %v1434_v2 = vld [vmem:[%s7063_s23 + $0x1d8] sm:$0xff] }
 0x177   : > { %5023 = vmatpush1.bf16.msra.mxu1 %v7620_v16  ;;  %v1421_v32 = vld [vmem:[%s7063_s23 + $0x170] sm:$0xff] }
 0x178   : > { %5025 = vmatprep.subr.bf16.mxu1 %v7626_v22  ;;  %1650 = vmatmul.mubr.f32.vlgmr.msra.gmra.mrb[30].mxu0 %v8564_v61 }
 0x179   : > { %5115 = vmatpush1.bf16.msra.mxu0 %v7432_v53  ;;  %1846 = vmatprep.mubr.f32.mxu0 %v8564_v61 }
 0x17a   : > { %5117 = vmatprep.subr.bf16.mxu0 %v7435_v55 }
 0x17b   : > { %5027 = vmatpush1.bf16.msra.mxu1 %v7643_v46 }
 0x17c   : > { %5029 = vmatprep.subr.bf16.mxu1 %v7646_v10 }
 0x17d   : > { %5119 = vmatpush1.bf16.msra.mxu0 %v7448_v3 }
 0x17e   : > { %5121 = vmatprep.subr.bf16.mxu0 %v7451_v4 }
 0x17f   : > { %5031 = vmatpush1.bf16.msra.mxu1 %v7659_v60 }
 0x180   : > { %5033 = vmatprep.subr.bf16.mxu1 %v7662_v27 }
 0x181   : > { %5123 = vmatpush1.bf16.msra.mxu0 %v7464_v19 }
 0x182   : > { %5125 = vmatprep.subr.bf16.mxu0 %v7467_v20 }
 0x183   : > { %5035 = vmatpush1.bf16.msra.mxu1 %v7673_v6 }
 0x184   : > { %5037 = vmatprep.subr.bf16.mxu1 %v7676_v8 }
 0x185   : > { %5127 = vmatpush1.bf16.msra.mxu0 %v7480_v34 }
 0x186   : > { %5129 = vmatprep.subr.bf16.mxu0 %v7485_v37  ;;  %v1437_v37 = vld [vmem:[%s7063_s23 + $0x1f0] sm:$0xff] }
 0x187   : > { %5039 = vmatpush1.bf16.msra.mxu1 %v7683_v5 }
 0x188   : > { %5041 = vmatprep.subr.bf16.mxu1 %v7686_v18 }
 0x189   : > { %5131 = vmatpush1.bf16.msra.mxu0 %v7501_v51 }
 0x18a   : > { %5133 = vmatprep.subr.bf16.mxu0 %v7506_v57  ;;  %v1422_v57 = vld [vmem:[%s7063_s23 + $0x178] sm:$0xff] }
 0x18b   : > { %5043 = vmatpush1.bf16.msra.mxu1 %v7697_v39 }
 0x18c   : > { %5045 = vmatprep.subr.bf16.mxu1 %v7700_v42 }
 0x18d   : > { %5135 = vmatpush1.bf16.msra.mxu0 %v7525_v11  ;;  %v1430_v11 = vld [vmem:[%s7063_s23 + $0x1b8] sm:$0xff] }
 0x18e   : > { %5137 = vmatprep.subr.bf16.mxu0 %v7530_v7  ;;  %v1426_v7 = vld [vmem:[%s7063_s23 + $0x198] sm:$0xff] }
 0x18f   : > { %5047 = vmatpush1.bf16.msra.mxu1 %v7709_v63  ;;  %v7786_v28 = vpack.c.bf16 %v1430_v11, %v1426_v7  ;;  %v8671_v11 = vmov 0.0   ;;  %v819_v7 = vlaneseq }
 0x190   : > { %5081 = vmatprep.subr.bf16.mxu1 %v7712_v38 }
 0x191   : > { %5139 = vmatpush1.bf16.msra.mxu0 %v7549_v25  ;;  %v1438_v25 = vld [vmem:[%s7063_s23 + $0x1f8] sm:$0xff] }
 0x192   : > { %1575 = vmatmul.mubr.f32.vlgmr.msra.gmra.mrb[0].mxu1 %v8564_v61  ;;  %5141 = vmatprep.subr.bf16.mxu0 %v7554_v23  ;;  %v7783_v23 = vpack.c.bf16 %v1421_v32, %v1417_v29 }
 0x193   : > { %5083 = vmatpush1.bf16.msra.mxu1 %v7721_v17  ;;  %1720 = vmatprep.mubr.f32.mxu1 %v8564_v61  ;;  %v1418_v61 = vld [vmem:[%s7063_s23 + $0x158] sm:$0xff] }
 0x194   : > { %5085 = vmatprep.subr.bf16.mxu1 %v7724_v59  ;;  %v7774_v26 = vpack.c.bf16 %v1422_v57, %v1418_v61  ;;  %v1425_v57 = vld [vmem:[%s7063_s23 + $0x190] sm:$0xff] }
 0x195   : > { %5143 = vmatpush1.bf16.msra.mxu0 %v7573_v40  ;;  %v1429_v61 = vld [vmem:[%s7063_s23 + $0x1b0] sm:$0xff]  ;;  %v7796_v40 = vpack.c.bf16 %v1438_v25, %v1434_v2  ;;  %v7824_v25 = vshrl.u32 %v819_v7, 7 }
 0x196   : > { %5177 = vmatprep.subr.bf16.mxu0 %v7473_v30  ;;  %v7793_v51 = vpack.c.bf16 %v1429_v61, %v1425_v57  ;;  %v1433_v30 = vld [vmem:[%s7063_s23 + $0x1d0] sm:$0xff] }
 0x197   : > { %5087 = vmatpush1.bf16.msra.mxu1 %v7734_v21  ;;  %v7801_v29 = vpack.c.bf16 %v1437_v37, %v1433_v30  ;;  %v821_v32 = vsub.s32 0, %v7824_v25  ;;  %v7828_v57 = vld [vmem:[%s7054_s21] sm:$0xff]  ;;  %v825_v61 = vsub.s32 1, %v7824_v25 }
 0x198   : > { %5089 = vmatprep.subr.bf16.mxu1 %v7738_v49 }
 0x199   : > { %v7832_v2 = vrot.slane %v7828_v57, %v821_v32  ;;  %v829_v32 = vsub.s32 2, %v7824_v25 }
 0x19b   : > { %5091 = vmatpush1.bf16.msra.mxu1 %v7747_v44  ;;  %8672 = vst [vmem:[#allocation45_spill] sm:$0xff] %v7832_v2 }
 0x19c   : > { %5093 = vmatprep.subr.bf16.mxu1 %v7750_v9 }
 0x19f   : > { %5095 = vmatpush1.bf16.msra.mxu1 %v7759_v50 }
 0x1a0   : > { %5097 = vmatprep.subr.bf16.mxu1 %v7762_v52 }
 0x1a3   : > { %5099 = vmatpush1.bf16.msra.mxu1 %v7771_v24 }
 0x1a4   : > { %5101 = vmatprep.subr.bf16.mxu1 %v7774_v26 }
 0x1a7   : > { %5103 = vmatpush1.bf16.msra.mxu1 %v7783_v23 }
 0x1a8   : > { %5105 = vmatprep.subr.bf16.mxu1 %v7786_v28 }
 0x1ab   : > { %5107 = vmatpush1.bf16.msra.mxu1 %v7793_v51 }
 0x1ac   : > { %5109 = vmatprep.subr.bf16.mxu1 %v7796_v40 }
 0x1af   : > { %5111 = vmatpush1.bf16.msra.mxu1 %v7801_v29 }
 0x1b0   : > { %5145 = vmatprep.subr.bf16.mxu1 %v7578_v43 }
 0x1b2   : > { %1721 = vmatmul.mubr.f32.vlgmr.msra.gmra.mrb[30].mxu1 %v8671_v11 }
 0x1b3   : > { %5147 = vmatpush1.bf16.msra.mxu1 %v7597_v54  ;;  %1917 = vmatprep.mubr.f32.mxu1 %v8671_v11 }
 0x1b4   : > { %5149 = vmatprep.subr.bf16.mxu1 %v7602_v62 }
 0x1b7   : > { %5151 = vmatpush1.bf16.msra.mxu1 %v7620_v16 }
 0x1b8   : > { %5153 = vmatprep.subr.bf16.mxu1 %v7626_v22 }
 0x1bb   : > { %5155 = vmatpush1.bf16.msra.mxu1 %v7643_v46 }
 0x1bc   : > { %5157 = vmatprep.subr.bf16.mxu1 %v7646_v10 }
 0x1bf   : > { %5159 = vmatpush1.bf16.msra.mxu1 %v7659_v60 }
 0x1c0   : > { %5161 = vmatprep.subr.bf16.mxu1 %v7662_v27 }
 0x1c3   : > { %5163 = vmatpush1.bf16.msra.mxu1 %v7673_v6 }
 0x1c4   : > { %5165 = vmatprep.subr.bf16.mxu1 %v7676_v8 }
 0x1c7   : > { %5167 = vmatpush1.bf16.msra.mxu1 %v7683_v5 }
 0x1c8   : > { %5169 = vmatprep.subr.bf16.mxu1 %v7686_v18 }
 0x1cb   : > { %5171 = vmatpush1.bf16.msra.mxu1 %v7697_v39 }
 0x1cc   : > { %5173 = vmatprep.subr.bf16.mxu1 %v7700_v42  ;;  %v7835_v42 = vrot.slane %v7828_v57, %v825_v61  ;;  %v833_v61 = vsub.s32 3, %v7824_v25 }
 0x1ce   : > { %8673 = vst [vmem:[#allocation46_spill] sm:$0xff] %v7835_v42 }
 0x1cf   : > { %5175 = vmatpush1.bf16.msra.mxu1 %v7709_v63 }
 0x1d0   : > { %5209 = vmatprep.subr.bf16.mxu1 %v7712_v38 }
 0x1e7   : > { %v925_v30 = vpop.f32.mrb[0].mxu0 }
 0x1e8   : > { %v927_v37 = vpop.f32.mrb[1].mxu0  ;;  %v926_v63 = vadd.f32 %v925_v30, %v7832_v2  ;;  %v7842_v30 = vrot.slane %v7828_v57, %v829_v32 }
 0x1e9   : > { %v928_v38 = vadd.f32 %v927_v37, %v7835_v42 }
 0x1ea   : > { %8674 = vst [vmem:[#allocation47_spill] sm:$0xff] %v7842_v30 }
 0x245   : > { %v1505_v39 = vpop.f32.mrb[32].mxu1 }
 0x246   : > { %v1581_v18 = vadd.f32 %v1505_v39, %v926_v63  ;;  %v1507_v7 = vpop.f32.mrb[33].mxu1  ;;  %v7845_v39 = vrot.slane %v7828_v57, %v833_v61  ;;  %v837_v63 = vsub.s32 4, %v7824_v25 }
 0x247   : > { %v1582_v5 = vadd.f32 %v1507_v7, %v928_v38 }
 0x248   : > { %v4599_v6 = vmul.f32 -1.442695, %v1581_v18  ;;  %8675 = vst [vmem:[#allocation48_spill] sm:$0xff] %v7845_v39 }
 0x249   : > { %v4600_v8 = vmul.f32 -1.442695, %v1582_v5 }
 0x24b   : > { %6239 = vpow2.f32 %v4600_v8  ;;  %v1651_v27 = vpop.f32.mrb[30].mxu0  ;;  %v841_v8 = vsub.s32 5, %v7824_v25 }
 0x24c   : > { %6241 = vpow2.f32 %v4599_v6  ;;  %v1653_v60 = vpop.f32.mrb[31].mxu0 }
 0x24d   : > { %v7852_v7 = vrot.slane %v7828_v57, %v841_v8 }
 0x24f   : > { %v6089_v32 = vadd.f32 %v1653_v60, %v7852_v7  ;;  %v845_v60 = vsub.s32 6, %v7824_v25 }
 0x255   : > { %v6240_v34 = vpop.eup %6239 }
 0x256   : > { %v6242_v10 = vpop.eup %6241  ;;  %v1740_v20 = vadd.f32 1.0, %v6240_v34 }
 0x257   : > { %v1734_v37 = vadd.f32 1.0, %v6242_v10  ;;  %v7855_v10 = vrot.slane %v7828_v57, %v837_v63  ;;  %v849_v63 = vsub.s32 7, %v7824_v25 }
 0x258   : > { %6243 = vrcp.f32 %v1740_v20 }
 0x259   : > { %6245 = vrcp.f32 %v1734_v37  ;;  %v6088_v20 = vadd.f32 %v1651_v27, %v7855_v10 }
 0x25b   : > { %v4602_v37 = vmul.f32 -1.442695, %v6088_v20 }
 0x262   : > { %v6244_v61 = vpop.eup %6243 }
 0x265   : > { %v1576_v5 = vpop.f32.mrb[0].mxu1 }
 0x266   : > { %v6058_v6 = vadd.f32 %v1576_v5, %v7842_v30  ;;  %v1578_v18 = vpop.f32.mrb[1].mxu1  ;;  %v6246_v5 = vpop.eup %6245  ;;  %v4603_v30 = vmul.f32 -1.442695, %v6089_v32 }
 0x267   : > { %v6059_v38 = vadd.f32 %v1578_v18, %v7845_v39  ;;  %v1750_v18 = vmul.f32 0.0, %v6244_v61 }
 0x268   : > { %6247 = vtanh.f32 %v6058_v6 }
 0x269   : > { %v4601_v34 = vmul.f32 -1.442695, %v6059_v38 }
 0x26b   : > { %6249 = vpow2.f32 %v4601_v34 }
 0x26c   : > { %6251 = vpow2.f32 %v4603_v30  ;;  %v7872_v30 = vrot.slane %v7828_v57, %v845_v60 }
 0x26d   : > { %6253 = vpow2.f32 %v4602_v37  ;;  %v7875_v37 = vrot.slane %v7828_v57, %v849_v63 }
 0x272   : > { %v6248_v42 = vpop.eup %6247 }
 0x273   : > { %v1751_v6 = vmul.f32 %v6248_v42, %v6246_v5 }
 0x275   : > { %v6250_v38 = vpop.eup %6249  ;;  %v7859_v39 = vadd.f32 %v1751_v6, %v1750_v18 }
 0x276   : > { %v1747_v8 = vadd.f32 1.0, %v6250_v38  ;;  %v6252_v27 = vpop.eup %6251 }
 0x277   : > { %6255 = vtanh.f32 %v7859_v39  ;;  %v6254_v34 = vpop.eup %6253  ;;  %v1764_v42 = vadd.f32 1.0, %v6252_v27 }
 0x278   : > { %6257 = vrcp.f32 %v1747_v8  ;;  %v1758_v61 = vadd.f32 1.0, %v6254_v34 }
 0x279   : > { %6259 = vrcp.f32 %v1764_v42 }
 0x27a   : > { %6261 = vrcp.f32 %v1758_v61 }
 0x281   : > { %v6256_v32 = vpop.eup %6255 }
 0x282   : > { %v6258_v20 = vpop.eup %6257 }
 0x283   : > { %v1754_v5 = vmul.f32 %v6258_v20, %v6256_v32  ;;  %v6260_v8 = vpop.eup %6259 }
 0x284   : > { %v6262_v60 = vpop.eup %6261  ;;  %v1774_v63 = vmul.f32 0.0, %v6260_v8  ;;  %v8681_v8 = vld [vmem:[#allocation24_spill] sm:$0xff] }
 0x285   : > { %v1722_v25 = vpop.f32.mrb[30].mxu1  ;;  %1779 = vst [vmem:[%s7869_s2] sm:$0xff] %v1754_v5  ;;  %1847 = vmatmul.mubr.f32.vlgmr.msra.gmra.mrb[2].mxu0 %v1754_v5  ;;  %1918 = vmatmul.mubr.f32.vlgmr.msra.gmra.mrb[2].mxu1 %v1754_v5 }
 0x286   : > { %v6104_v18 = vadd.f32 %v1722_v25, %v7872_v30  ;;  %v1724_v6 = vpop.f32.mrb[31].mxu1  ;;  %5179 = vmatpush1.bf16.msra.mxu0 %v7492_v47  ;;  %5211 = vmatpush1.bf16.msra.mxu1 %v7721_v17 }
 0x287   : > { %v6105_v38 = vadd.f32 %v1724_v6, %v7875_v37  ;;  %5181 = vmatprep.subr.bf16.mxu0 %v7495_v48  ;;  %5213 = vmatprep.subr.bf16.mxu1 %v7724_v59  ;;  %v8678_v6 = vld [vmem:[#allocation34_spill] sm:$0xff] }
 0x288   : > { %6263 = vtanh.f32 %v6104_v18  ;;  %1992 = vmatprep.mubr.f32.mxu0 %v8671_v11  ;;  %2063 = vmatprep.mubr.f32.mxu1 %v8671_v11  ;;  %v8677_v18 = vld [vmem:[#allocation21_spill] sm:$0xff] }
 0x289   : > { %v4604_v57 = vmul.f32 -1.442695, %v6105_v38  ;;  %v8679_v38 = vld [vmem:[#allocation23_spill] sm:$0xff] }
 0x28a   : > { %5183 = vmatpush1.bf16.msra.mxu0 %v7515_v0  ;;  %5215 = vmatpush1.bf16.msra.mxu1 %v7734_v21 }
 0x28b   : > { %6265 = vpow2.f32 %v4604_v57  ;;  %5185 = vmatprep.subr.bf16.mxu0 %v7519_v1  ;;  %5217 = vmatprep.subr.bf16.mxu1 %v7738_v49  ;;  %v8680_v57 = vld [vmem:[#allocation35_spill] sm:$0xff] }
 0x28e   : > { %5187 = vmatpush1.bf16.msra.mxu0 %v7539_v14  ;;  %5219 = vmatpush1.bf16.msra.mxu1 %v7747_v44 }
 0x28f   : > { %5189 = vmatprep.subr.bf16.mxu0 %v7543_v15  ;;  %5221 = vmatprep.subr.bf16.mxu1 %v7750_v9 }
 0x292   : > { %v6264_v27 = vpop.eup %6263  ;;  %5191 = vmatpush1.bf16.msra.mxu0 %v7563_v33  ;;  %5223 = vmatpush1.bf16.msra.mxu1 %v7759_v50 }
 0x293   : > { %v1775_v34 = vmul.f32 %v6264_v27, %v6262_v60  ;;  %5193 = vmatprep.subr.bf16.mxu0 %v7567_v35  ;;  %5225 = vmatprep.subr.bf16.mxu1 %v7762_v52  ;;  %v8682_v60 = vld [vmem:[#allocation36_spill] sm:$0xff]  ;;  %v8683_v27 = vld [vmem:[#allocation25_spill] sm:$0xff] }
 0x295   : > { %v6266_v32 = vpop.eup %6265  ;;  %v7898_v20 = vadd.f32 %v1775_v34, %v1774_v63  ;;  %v8684_v63 = vld [vmem:[#allocation37_spill] sm:$0xff]  ;;  %v8685_v34 = vld [vmem:[#allocation26_spill] sm:$0xff] }
 0x296   : > { %v1771_v42 = vadd.f32 1.0, %v6266_v32  ;;  %5195 = vmatpush1.bf16.msra.mxu0 %v7587_v56  ;;  %5227 = vmatpush1.bf16.msra.mxu1 %v7771_v24  ;;  %v8686_v32 = vld [vmem:[#allocation38_spill] sm:$0xff] }
 0x297   : > { %6267 = vtanh.f32 %v7898_v20  ;;  %5197 = vmatprep.subr.bf16.mxu0 %v7591_v58  ;;  %5229 = vmatprep.subr.bf16.mxu1 %v7774_v26 }
 0x298   : > { %6269 = vrcp.f32 %v1771_v42  ;;  %v8687_v42 = vld [vmem:[#allocation27_spill] sm:$0xff] }
 0x29a   : > { %5199 = vmatpush1.bf16.msra.mxu0 %v7611_v12  ;;  %5231 = vmatpush1.bf16.msra.mxu1 %v7783_v23 }
 0x29b   : > { %5201 = vmatprep.subr.bf16.mxu0 %v7615_v13  ;;  %5233 = vmatprep.subr.bf16.mxu1 %v7786_v28 }
 0x29e   : > { %5203 = vmatpush1.bf16.msra.mxu0 %v7635_v36  ;;  %5235 = vmatpush1.bf16.msra.mxu1 %v7793_v51 }
 0x29f   : > { %5205 = vmatprep.subr.bf16.mxu0 %v7638_v31  ;;  %5237 = vmatprep.subr.bf16.mxu1 %v7796_v40 }
 0x2a1   : > { %v6268_v61 = vpop.eup %6267 }
 0x2a2   : > { %v6270_v5 = vpop.eup %6269  ;;  %5207 = vmatpush1.bf16.msra.mxu0 %v7655_v45  ;;  %5239 = vmatpush1.bf16.msra.mxu1 %v7801_v29 }
 0x2a3   : > { %v1778_v25 = vmul.f32 %v6270_v5, %v6268_v61  ;;  %5241 = vmatprep.subr.bf16.mxu0 %v7422_v41  ;;  %5273 = vmatprep.subr.bf16.mxu1 %v7578_v43  ;;  %v8688_v61 = vld [vmem:[#allocation39_spill] sm:$0xff]  ;;  %v8689_v5 = vld [vmem:[#allocation28_spill] sm:$0xff] }
 0x2a5   : > { %4605 = vst [vmem:[%s7869_s2 + $0x78] sm:$0xff] %v1778_v25  ;;  %1993 = vmatmul.mubr.f32.vlgmr.msra.gmra.mrb[28].mxu0 %v1778_v25  ;;  %2064 = vmatmul.mubr.f32.vlgmr.msra.gmra.mrb[28].mxu1 %v1778_v25  ;;  %v8690_v25 = vld [vmem:[#allocation40_spill] sm:$0xff] }
 0x2a6   : > { %5243 = vmatpush1.bf16.msra.mxu0 %v7432_v53  ;;  %5275 = vmatpush1.bf16.msra.mxu1 %v7597_v54 }
 0x2a7   : > { %5245 = vmatprep.subr.bf16.mxu0 %v7435_v55  ;;  %5277 = vmatprep.subr.bf16.mxu1 %v7602_v62 }
 0x2a8   : > { %2190 = vmatprep.mubr.f32.mxu0 %v8671_v11  ;;  %2261 = vmatprep.mubr.f32.mxu1 %v8671_v11 }
 0x2aa   : > { %5247 = vmatpush1.bf16.msra.mxu0 %v7448_v3  ;;  %5279 = vmatpush1.bf16.msra.mxu1 %v7620_v16 }
 0x2ab   : > { %5249 = vmatprep.subr.bf16.mxu0 %v7451_v4  ;;  %5281 = vmatprep.subr.bf16.mxu1 %v7626_v22 }
 0x2ae   : > { %5251 = vmatpush1.bf16.msra.mxu0 %v7464_v19  ;;  %5283 = vmatpush1.bf16.msra.mxu1 %v7643_v46 }
 0x2af   : > { %5253 = vmatprep.subr.bf16.mxu0 %v8677_v18  ;;  %5285 = vmatprep.subr.bf16.mxu1 %v8678_v6  ;;  %v8699_v6 = vld [vmem:[#allocation46_spill] sm:$0xff] }
 0x2b2   : > { %5255 = vmatpush1.bf16.msra.mxu0 %v8679_v38  ;;  %5287 = vmatpush1.bf16.msra.mxu1 %v8680_v57  ;;  %v8691_v57 = vld [vmem:[#allocation29_spill] sm:$0xff] }
 0x2b3   : > { %5257 = vmatprep.subr.bf16.mxu0 %v8681_v8  ;;  %5289 = vmatprep.subr.bf16.mxu1 %v8682_v60  ;;  %v8692_v8 = vld [vmem:[#allocation41_spill] sm:$0xff]  ;;  %v8693_v60 = vld [vmem:[#allocation30_spill] sm:$0xff] }
 0x2b6   : > { %5259 = vmatpush1.bf16.msra.mxu0 %v8683_v27  ;;  %5291 = vmatpush1.bf16.msra.mxu1 %v8684_v63  ;;  %v8694_v27 = vld [vmem:[#allocation42_spill] sm:$0xff]  ;;  %v8695_v63 = vld [vmem:[#allocation31_spill] sm:$0xff] }
 0x2b7   : > { %5261 = vmatprep.subr.bf16.mxu0 %v8685_v34  ;;  %5293 = vmatprep.subr.bf16.mxu1 %v8686_v32  ;;  %v8696_v34 = vld [vmem:[#allocation43_spill] sm:$0xff]  ;;  %v8697_v32 = vld [vmem:[#allocation22_spill] sm:$0xff] }
 0x2ba   : > { %5263 = vmatpush1.bf16.msra.mxu0 %v8687_v42  ;;  %5295 = vmatpush1.bf16.msra.mxu1 %v8688_v61  ;;  %v8698_v42 = vld [vmem:[#allocation44_spill] sm:$0xff] }
 0x2bb   : > { %5265 = vmatprep.subr.bf16.mxu0 %v8689_v5  ;;  %5297 = vmatprep.subr.bf16.mxu1 %v8690_v25 }
 0x2be   : > { %5267 = vmatpush1.bf16.msra.mxu0 %v8691_v57  ;;  %5299 = vmatpush1.bf16.msra.mxu1 %v8692_v8 }
 0x2bf   : > { %5269 = vmatprep.subr.bf16.mxu0 %v8693_v60  ;;  %5301 = vmatprep.subr.bf16.mxu1 %v8694_v27  ;;  %v8700_v27 = vld [vmem:[#allocation48_spill] sm:$0xff] }
 0x2c2   : > { %5271 = vmatpush1.bf16.msra.mxu0 %v8695_v63  ;;  %5303 = vmatpush1.bf16.msra.mxu1 %v8696_v34  ;;  %v8701_v34 = vld [vmem:[#allocation47_spill] sm:$0xff] }
 0x2c3   : > { %5305 = vmatprep.subr.bf16.mxu0 %v8697_v32  ;;  %5337 = vmatprep.subr.bf16.mxu1 %v8698_v42 }
 0x358   : > { %v1848_v61 = vpop.f32.mrb[2].mxu0  ;;  %v1919_v5 = vpop.f32.mrb[2].mxu1 }
 0x359   : > { %v6044_v25 = vadd.f32 %v1848_v61, %v7832_v2  ;;  %v1850_v38 = vpop.f32.mrb[3].mxu0  ;;  %v1921_v57 = vpop.f32.mrb[3].mxu1  ;;  %v6060_v19 = vadd.f32 %v1919_v5, %v8701_v34 }
 0x35a   : > { %v6045_v8 = vadd.f32 %v1850_v38, %v8699_v6  ;;  %v6061_v63 = vadd.f32 %v1921_v57, %v8700_v27 }
 0x35b   : > { %v4606_v18 = vmul.f32 -1.442695, %v6044_v25 }
 0x35c   : > { %v4607_v60 = vmul.f32 -1.442695, %v6045_v8  ;;  %v4608_v46 = vmul.f32 -1.442695, %v6061_v63 }
 0x35d   : > { %6271 = vpow2.f32 %v4606_v18 }
 0x35e   : > { %6273 = vpow2.f32 %v4607_v60 }
 0x35f   : > { %6275 = vpow2.f32 %v4608_v46 }
 0x360   : > { %6277 = vtanh.f32 %v6060_v19 }
 0x367   : > { %v6272_v32 = vpop.eup %6271 }
 0x368   : > { %v6274_v22 = vpop.eup %6273  ;;  %v2077_v42 = vadd.f32 1.0, %v6272_v32 }
 0x369   : > { %v2083_v4 = vadd.f32 1.0, %v6274_v22  ;;  %v6276_v61 = vpop.eup %6275 }
 0x36a   : > { %6279 = vrcp.f32 %v2077_v42  ;;  %v6278_v2 = vpop.eup %6277  ;;  %v2090_v18 = vadd.f32 1.0, %v6276_v61 }
 0x36b   : > { %6281 = vrcp.f32 %v2083_v4 }
 0x36c   : > { %6283 = vrcp.f32 %v2090_v18 }
 0x374   : > { %v6280_v38 = vpop.eup %6279 }
 0x375   : > { %v6282_v25 = vpop.eup %6281  ;;  %v2094_v8 = vmul.f32 %v6280_v38, %v6278_v2 }
 0x376   : > { %v2093_v60 = vmul.f32 %v6282_v25, %v7859_v39  ;;  %v6284_v39 = vpop.eup %6283 }
 0x378   : > { %v7957_v57 = vadd.f32 %v2094_v8, %v2093_v60  ;;  %v1994_v63 = vpop.f32.mrb[28].mxu0  ;;  %v2065_v5 = vpop.f32.mrb[28].mxu1 }
 0x379   : > { %v6086_v32 = vadd.f32 %v1994_v63, %v7855_v10  ;;  %v1996_v19 = vpop.f32.mrb[29].mxu0  ;;  %v2067_v22 = vpop.f32.mrb[29].mxu1  ;;  %v6102_v25 = vadd.f32 %v2065_v5, %v7872_v30 }
 0x37a   : > { %v6087_v4 = vadd.f32 %v1996_v19, %v7852_v7  ;;  %6285 = vtanh.f32 %v7957_v57  ;;  %v6103_v2 = vadd.f32 %v2067_v22, %v7875_v37 }
 0x37b   : > { %v4609_v46 = vmul.f32 -1.442695, %v6086_v32 }
 0x37c   : > { %v4610_v42 = vmul.f32 -1.442695, %v6087_v4  ;;  %v4611_v38 = vmul.f32 -1.442695, %v6103_v2 }
 0x37d   : > { %6287 = vpow2.f32 %v4609_v46 }
 0x37e   : > { %6289 = vpow2.f32 %v4610_v42 }
 0x37f   : > { %6291 = vpow2.f32 %v4611_v38 }
 0x380   : > { %6293 = vtanh.f32 %v6102_v25  ;;  %v8702_v25 = vld [vmem:[#allocation19_spill] sm:$0xff] }
 0x384   : > { %v6286_v61 = vpop.eup %6285 }
 0x385   : > { %v2097_v8 = vmul.f32 %v6286_v61, %v6284_v39 }
 0x387   : > { %v6288_v18 = vpop.eup %6287  ;;  %4612 = vst [vmem:[%s7869_s2 + $0x10] sm:$0xff] %v2097_v8  ;;  %2191 = vmatmul.mubr.f32.vlgmr.msra.gmra.mrb[4].mxu0 %v2097_v8  ;;  %2262 = vmatmul.mubr.f32.vlgmr.msra.gmra.mrb[4].mxu1 %v2097_v8  ;;  %v8703_v8 = vld [vmem:[#allocation32_spill] sm:$0xff] }
 0x388   : > { %v6290_v60 = vpop.eup %6289  ;;  %v2101_v63 = vadd.f32 1.0, %v6288_v18  ;;  %5307 = vmatpush1.bf16.msra.mxu0 %v7492_v47  ;;  %5339 = vmatpush1.bf16.msra.mxu1 %v7721_v17  ;;  %v8704_v18 = vld [vmem:[#allocation20_spill] sm:$0xff] }
 0x389   : > { %v2107_v32 = vadd.f32 1.0, %v6290_v60  ;;  %5309 = vmatprep.subr.bf16.mxu0 %v7495_v48  ;;  %5341 = vmatprep.subr.bf16.mxu1 %v7724_v59  ;;  %v6292_v5 = vpop.eup %6291  ;;  %v8705_v60 = vld [vmem:[#allocation33_spill] sm:$0xff] }
 0x38a   : > { %6295 = vrcp.f32 %v2101_v63  ;;  %2336 = vmatprep.mubr.f32.mxu0 %v8671_v11  ;;  %2407 = vmatprep.mubr.f32.mxu1 %v8671_v11  ;;  %v6294_v19 = vpop.eup %6293  ;;  %v2114_v42 = vadd.f32 1.0, %v6292_v5  ;;  %v8706_v63 = vld [vmem:[#allocation21_spill] sm:$0xff]  ;;  %v8708_v5 = vld [vmem:[#allocation23_spill] sm:$0xff] }
 0x38b   : > { %6297 = vrcp.f32 %v2107_v32  ;;  %v8707_v32 = vld [vmem:[#allocation34_spill] sm:$0xff] }
 0x38c   : > { %5311 = vmatpush1.bf16.msra.mxu0 %v7515_v0  ;;  %5343 = vmatpush1.bf16.msra.mxu1 %v7734_v21  ;;  %6299 = vrcp.f32 %v2114_v42  ;;  %v8713_v42 = vld [vmem:[#allocation37_spill] sm:$0xff] }
 0x38d   : > { %5313 = vmatprep.subr.bf16.mxu0 %v7519_v1  ;;  %5345 = vmatprep.subr.bf16.mxu1 %v7738_v49 }
 0x390   : > { %5315 = vmatpush1.bf16.msra.mxu0 %v7539_v14  ;;  %5347 = vmatpush1.bf16.msra.mxu1 %v7747_v44 }
 0x391   : > { %5317 = vmatprep.subr.bf16.mxu0 %v7543_v15  ;;  %5349 = vmatprep.subr.bf16.mxu1 %v7750_v9 }
 0x394   : > { %v6296_v22 = vpop.eup %6295  ;;  %5319 = vmatpush1.bf16.msra.mxu0 %v7563_v33  ;;  %5351 = vmatpush1.bf16.msra.mxu1 %v7759_v50 }
 0x395   : > { %v6298_v4 = vpop.eup %6297  ;;  %v2118_v46 = vmul.f32 %v6296_v22, %v6294_v19  ;;  %5321 = vmatprep.subr.bf16.mxu0 %v7567_v35  ;;  %5353 = vmatprep.subr.bf16.mxu1 %v7762_v52  ;;  %v8709_v19 = vld [vmem:[#allocation35_spill] sm:$0xff]  ;;  %v8710_v22 = vld [vmem:[#allocation24_spill] sm:$0xff] }
 0x396   : > { %v2117_v2 = vmul.f32 %v6298_v4, %v7898_v20  ;;  %v6300_v20 = vpop.eup %6299  ;;  %v8711_v4 = vld [vmem:[#allocation36_spill] sm:$0xff] }
 0x398   : > { %v7984_v39 = vadd.f32 %v2118_v46, %v2117_v2  ;;  %5323 = vmatpush1.bf16.msra.mxu0 %v7587_v56  ;;  %5355 = vmatpush1.bf16.msra.mxu1 %v7771_v24  ;;  %v8712_v46 = vld [vmem:[#allocation25_spill] sm:$0xff]  ;;  %v8714_v2 = vld [vmem:[#allocation26_spill] sm:$0xff] }
 0x399   : > { %5325 = vmatprep.subr.bf16.mxu0 %v7591_v58  ;;  %5357 = vmatprep.subr.bf16.mxu1 %v7774_v26 }
 0x39a   : > { %6301 = vtanh.f32 %v7984_v39 }
 0x39c   : > { %5327 = vmatpush1.bf16.msra.mxu0 %v7611_v12  ;;  %5359 = vmatpush1.bf16.msra.mxu1 %v7783_v23 }
 0x39d   : > { %5329 = vmatprep.subr.bf16.mxu0 %v7615_v13  ;;  %5361 = vmatprep.subr.bf16.mxu1 %v7786_v28 }
 0x3a0   : > { %5331 = vmatpush1.bf16.msra.mxu0 %v7635_v36  ;;  %5363 = vmatpush1.bf16.msra.mxu1 %v7793_v51 }
 0x3a1   : > { %5333 = vmatprep.subr.bf16.mxu0 %v7638_v31  ;;  %5365 = vmatprep.subr.bf16.mxu1 %v7796_v40 }
 0x3a4   : > { %v6302_v61 = vpop.eup %6301  ;;  %5335 = vmatpush1.bf16.msra.mxu0 %v7655_v45  ;;  %5367 = vmatpush1.bf16.msra.mxu1 %v7801_v29 }
 0x3a5   : > { %v2121_v38 = vmul.f32 %v6302_v61, %v6300_v20  ;;  %5369 = vmatprep.subr.bf16.mxu0 %v7422_v41  ;;  %5401 = vmatprep.subr.bf16.mxu1 %v7578_v43  ;;  %v8715_v20 = vld [vmem:[#allocation38_spill] sm:$0xff]  ;;  %v8716_v61 = vld [vmem:[#allocation27_spill] sm:$0xff] }
 0x3a7   : > { %4613 = vst [vmem:[%s7869_s2 + $0x68] sm:$0xff] %v2121_v38  ;;  %2337 = vmatmul.mubr.f32.vlgmr.msra.gmra.mrb[26].mxu0 %v2121_v38  ;;  %2408 = vmatmul.mubr.f32.vlgmr.msra.gmra.mrb[26].mxu1 %v2121_v38  ;;  %v8717_v38 = vld [vmem:[#allocation39_spill] sm:$0xff] }
 0x3a8   : > { %5371 = vmatpush1.bf16.msra.mxu0 %v7432_v53  ;;  %5403 = vmatpush1.bf16.msra.mxu1 %v7597_v54 }
 0x3a9   : > { %5373 = vmatprep.subr.bf16.mxu0 %v7435_v55  ;;  %5405 = vmatprep.subr.bf16.mxu1 %v7602_v62 }
 0x3aa   : > { %2534 = vmatprep.mubr.f32.mxu0 %v8671_v11  ;;  %2605 = vmatprep.mubr.f32.mxu1 %v8671_v11 }
 0x3ac   : > { %5375 = vmatpush1.bf16.msra.mxu0 %v7448_v3  ;;  %5407 = vmatpush1.bf16.msra.mxu1 %v7620_v16 }
 0x3ad   : > { %5377 = vmatprep.subr.bf16.mxu0 %v8702_v25  ;;  %5409 = vmatprep.subr.bf16.mxu1 %v8703_v8 }
 0x3b0   : > { %5379 = vmatpush1.bf16.msra.mxu0 %v8704_v18  ;;  %5411 = vmatpush1.bf16.msra.mxu1 %v8705_v60 }
 0x3b1   : > { %5381 = vmatprep.subr.bf16.mxu0 %v8706_v63  ;;  %5413 = vmatprep.subr.bf16.mxu1 %v8707_v32  ;;  %v8718_v32 = vld [vmem:[#allocation28_spill] sm:$0xff]  ;;  %v8728_v63 = vld [vmem:[#allocation45_spill] sm:$0xff] }
 0x3b4   : > { %5383 = vmatpush1.bf16.msra.mxu0 %v8708_v5  ;;  %5415 = vmatpush1.bf16.msra.mxu1 %v8709_v19  ;;  %v8719_v5 = vld [vmem:[#allocation40_spill] sm:$0xff]  ;;  %v8720_v19 = vld [vmem:[#allocation29_spill] sm:$0xff] }
 0x3b5   : > { %5385 = vmatprep.subr.bf16.mxu0 %v8710_v22  ;;  %5417 = vmatprep.subr.bf16.mxu1 %v8711_v4  ;;  %v8721_v22 = vld [vmem:[#allocation41_spill] sm:$0xff]  ;;  %v8722_v4 = vld [vmem:[#allocation30_spill] sm:$0xff] }
 0x3b8   : > { %5387 = vmatpush1.bf16.msra.mxu0 %v8712_v46  ;;  %5419 = vmatpush1.bf16.msra.mxu1 %v8713_v42  ;;  %v8723_v46 = vld [vmem:[#allocation42_spill] sm:$0xff]  ;;  %v8724_v42 = vld [vmem:[#allocation31_spill] sm:$0xff] }
 0x3b9   : > { %5389 = vmatprep.subr.bf16.mxu0 %v8714_v2  ;;  %5421 = vmatprep.subr.bf16.mxu1 %v8715_v20  ;;  %v8725_v2 = vld [vmem:[#allocation43_spill] sm:$0xff]  ;;  %v8726_v20 = vld [vmem:[#allocation22_spill] sm:$0xff] }
 0x3bc   : > { %5391 = vmatpush1.bf16.msra.mxu0 %v8716_v61  ;;  %5423 = vmatpush1.bf16.msra.mxu1 %v8717_v38  ;;  %v8727_v61 = vld [vmem:[#allocation44_spill] sm:$0xff] }
 0x3bd   : > { %5393 = vmatprep.subr.bf16.mxu0 %v8718_v32  ;;  %5425 = vmatprep.subr.bf16.mxu1 %v8719_v5 }
 0x3c0   : > { %5395 = vmatpush1.bf16.msra.mxu0 %v8720_v19  ;;  %5427 = vmatpush1.bf16.msra.mxu1 %v8721_v22 }
 0x3c1   : > { %5397 = vmatprep.subr.bf16.mxu0 %v8722_v4  ;;  %5429 = vmatprep.subr.bf16.mxu1 %v8723_v46 }
 0x3c4   : > { %5399 = vmatpush1.bf16.msra.mxu0 %v8724_v42  ;;  %5431 = vmatpush1.bf16.msra.mxu1 %v8725_v2 }
 0x3c5   : > { %5433 = vmatprep.subr.bf16.mxu0 %v8726_v20  ;;  %5465 = vmatprep.subr.bf16.mxu1 %v8727_v61 }
 0x45a   : > { %v2192_v38 = vpop.f32.mrb[4].mxu0  ;;  %v2263_v32 = vpop.f32.mrb[4].mxu1 }
 0x45b   : > { %v6046_v5 = vadd.f32 %v2192_v38, %v8728_v63  ;;  %v2194_v60 = vpop.f32.mrb[5].mxu0  ;;  %v2265_v19 = vpop.f32.mrb[5].mxu1  ;;  %v6062_v2 = vadd.f32 %v2263_v32, %v8701_v34 }
 0x45c   : > { %v6047_v22 = vadd.f32 %v2194_v60, %v8699_v6  ;;  %v6063_v42 = vadd.f32 %v2265_v19, %v8700_v27 }
 0x45d   : > { %v4614_v18 = vmul.f32 -1.442695, %v6046_v5 }
 0x45e   : > { %v4615_v4 = vmul.f32 -1.442695, %v6047_v22  ;;  %v4616_v46 = vmul.f32 -1.442695, %v6063_v42 }
 0x45f   : > { %6303 = vpow2.f32 %v4614_v18 }
 0x460   : > { %6305 = vpow2.f32 %v4615_v4 }
 0x461   : > { %6307 = vpow2.f32 %v4616_v46 }
 0x462   : > { %6309 = vtanh.f32 %v6062_v2 }
 0x469   : > { %v6304_v20 = vpop.eup %6303 }
 0x46a   : > { %v6306_v8 = vpop.eup %6305  ;;  %v2421_v61 = vadd.f32 1.0, %v6304_v20 }
 0x46b   : > { %v2427_v25 = vadd.f32 1.0, %v6306_v8  ;;  %v6308_v38 = vpop.eup %6307 }
 0x46c   : > { %6311 = vrcp.f32 %v2421_v61  ;;  %v6310_v63 = vpop.eup %6309  ;;  %v2434_v18 = vadd.f32 1.0, %v6308_v38 }
 0x46d   : > { %6313 = vrcp.f32 %v2427_v25 }
 0x46e   : > { %6315 = vrcp.f32 %v2434_v18 }
 0x476   : > { %v6312_v60 = vpop.eup %6311 }
 0x477   : > { %v6314_v5 = vpop.eup %6313  ;;  %v2438_v22 = vmul.f32 %v6312_v60, %v6310_v63 }
 0x478   : > { %v2437_v4 = vmul.f32 %v6314_v5, %v7957_v57  ;;  %v6316_v63 = vpop.eup %6315 }
 0x47a   : > { %v8043_v19 = vadd.f32 %v2438_v22, %v2437_v4  ;;  %v2338_v42 = vpop.f32.mrb[26].mxu0  ;;  %v2409_v32 = vpop.f32.mrb[26].mxu1 }
 0x47b   : > { %v6084_v20 = vadd.f32 %v2338_v42, %v7855_v10  ;;  %v2340_v46 = vpop.f32.mrb[27].mxu0  ;;  %v2411_v8 = vpop.f32.mrb[27].mxu1  ;;  %v6100_v5 = vadd.f32 %v2409_v32, %v7872_v30 }
 0x47c   : > { %v6085_v25 = vadd.f32 %v2340_v46, %v7852_v7  ;;  %6317 = vtanh.f32 %v8043_v19  ;;  %v6101_v57 = vadd.f32 %v2411_v8, %v7875_v37 }
 0x47d   : > { %v4617_v2 = vmul.f32 -1.442695, %v6084_v20 }
 0x47e   : > { %v4618_v61 = vmul.f32 -1.442695, %v6085_v25  ;;  %v4619_v60 = vmul.f32 -1.442695, %v6101_v57 }
 0x47f   : > { %6319 = vpow2.f32 %v4617_v2 }
 0x480   : > { %6321 = vpow2.f32 %v4618_v61 }
 0x481   : > { %6323 = vpow2.f32 %v4619_v60 }
 0x482   : > { %6325 = vtanh.f32 %v6100_v5  ;;  %v8729_v5 = vld [vmem:[#allocation19_spill] sm:$0xff] }
 0x486   : > { %v6318_v38 = vpop.eup %6317 }
 0x487   : > { %v2441_v22 = vmul.f32 %v6318_v38, %v6316_v63 }
 0x489   : > { %v6320_v18 = vpop.eup %6319  ;;  %4620 = vst [vmem:[%s7869_s2 + $0x20] sm:$0xff] %v2441_v22  ;;  %2535 = vmatmul.mubr.f32.vlgmr.msra.gmra.mrb[6].mxu0 %v2441_v22  ;;  %2606 = vmatmul.mubr.f32.vlgmr.msra.gmra.mrb[6].mxu1 %v2441_v22  ;;  %v8730_v22 = vld [vmem:[#allocation32_spill] sm:$0xff] }
 0x48a   : > { %v6322_v4 = vpop.eup %6321  ;;  %v2445_v42 = vadd.f32 1.0, %v6320_v18  ;;  %5435 = vmatpush1.bf16.msra.mxu0 %v7492_v47  ;;  %5467 = vmatpush1.bf16.msra.mxu1 %v7721_v17  ;;  %v8731_v18 = vld [vmem:[#allocation20_spill] sm:$0xff] }
 0x48b   : > { %v2451_v20 = vadd.f32 1.0, %v6322_v4  ;;  %5437 = vmatprep.subr.bf16.mxu0 %v7495_v48  ;;  %5469 = vmatprep.subr.bf16.mxu1 %v7724_v59  ;;  %v6324_v32 = vpop.eup %6323  ;;  %v8732_v4 = vld [vmem:[#allocation33_spill] sm:$0xff] }
 0x48c   : > { %6327 = vrcp.f32 %v2445_v42  ;;  %2680 = vmatprep.mubr.f32.mxu0 %v8671_v11  ;;  %2751 = vmatprep.mubr.f32.mxu1 %v8671_v11  ;;  %v6326_v46 = vpop.eup %6325  ;;  %v2458_v61 = vadd.f32 1.0, %v6324_v32  ;;  %v8733_v42 = vld [vmem:[#allocation21_spill] sm:$0xff]  ;;  %v8735_v32 = vld [vmem:[#allocation23_spill] sm:$0xff] }
 0x48d   : > { %6329 = vrcp.f32 %v2451_v20  ;;  %v8734_v20 = vld [vmem:[#allocation34_spill] sm:$0xff] }
 0x48e   : > { %5439 = vmatpush1.bf16.msra.mxu0 %v7515_v0  ;;  %5471 = vmatpush1.bf16.msra.mxu1 %v7734_v21  ;;  %6331 = vrcp.f32 %v2458_v61  ;;  %v8740_v61 = vld [vmem:[#allocation37_spill] sm:$0xff] }
 0x48f   : > { %5441 = vmatprep.subr.bf16.mxu0 %v7519_v1  ;;  %5473 = vmatprep.subr.bf16.mxu1 %v7738_v49 }
 0x492   : > { %5443 = vmatpush1.bf16.msra.mxu0 %v7539_v14  ;;  %5475 = vmatpush1.bf16.msra.mxu1 %v7747_v44 }
 0x493   : > { %5445 = vmatprep.subr.bf16.mxu0 %v7543_v15  ;;  %5477 = vmatprep.subr.bf16.mxu1 %v7750_v9 }
 0x496   : > { %v6328_v8 = vpop.eup %6327  ;;  %5447 = vmatpush1.bf16.msra.mxu0 %v7563_v33  ;;  %5479 = vmatpush1.bf16.msra.mxu1 %v7759_v50 }
 0x497   : > { %v6330_v25 = vpop.eup %6329  ;;  %v2462_v2 = vmul.f32 %v6328_v8, %v6326_v46  ;;  %5449 = vmatprep.subr.bf16.mxu0 %v7567_v35  ;;  %5481 = vmatprep.subr.bf16.mxu1 %v7762_v52  ;;  %v8736_v46 = vld [vmem:[#allocation35_spill] sm:$0xff]  ;;  %v8737_v8 = vld [vmem:[#allocation24_spill] sm:$0xff] }
 0x498   : > { %v2461_v57 = vmul.f32 %v6330_v25, %v7984_v39  ;;  %v6332_v39 = vpop.eup %6331  ;;  %v8738_v25 = vld [vmem:[#allocation36_spill] sm:$0xff] }
 0x49a   : > { %v8070_v63 = vadd.f32 %v2462_v2, %v2461_v57  ;;  %5451 = vmatpush1.bf16.msra.mxu0 %v7587_v56  ;;  %5483 = vmatpush1.bf16.msra.mxu1 %v7771_v24  ;;  %v8739_v2 = vld [vmem:[#allocation25_spill] sm:$0xff]  ;;  %v8741_v57 = vld [vmem:[#allocation26_spill] sm:$0xff] }
 0x49b   : > { %5453 = vmatprep.subr.bf16.mxu0 %v7591_v58  ;;  %5485 = vmatprep.subr.bf16.mxu1 %v7774_v26 }
 0x49c   : > { %6333 = vtanh.f32 %v8070_v63 }
 0x49e   : > { %5455 = vmatpush1.bf16.msra.mxu0 %v7611_v12  ;;  %5487 = vmatpush1.bf16.msra.mxu1 %v7783_v23 }
 0x49f   : > { %5457 = vmatprep.subr.bf16.mxu0 %v7615_v13  ;;  %5489 = vmatprep.subr.bf16.mxu1 %v7786_v28 }
 0x4a2   : > { %5459 = vmatpush1.bf16.msra.mxu0 %v7635_v36  ;;  %5491 = vmatpush1.bf16.msra.mxu1 %v7793_v51 }
 0x4a3   : > { %5461 = vmatprep.subr.bf16.mxu0 %v7638_v31  ;;  %5493 = vmatprep.subr.bf16.mxu1 %v7796_v40 }
 0x4a6   : > { %v6334_v38 = vpop.eup %6333  ;;  %5463 = vmatpush1.bf16.msra.mxu0 %v7655_v45  ;;  %5495 = vmatpush1.bf16.msra.mxu1 %v7801_v29 }
 0x4a7   : > { %v2465_v60 = vmul.f32 %v6334_v38, %v6332_v39  ;;  %5497 = vmatprep.subr.bf16.mxu0 %v7422_v41  ;;  %5529 = vmatprep.subr.bf16.mxu1 %v7578_v43  ;;  %v8742_v39 = vld [vmem:[#allocation38_spill] sm:$0xff]  ;;  %v8743_v38 = vld [vmem:[#allocation27_spill] sm:$0xff] }
 0x4a9   : > { %4621 = vst [vmem:[%s7869_s2 + $0x58] sm:$0xff] %v2465_v60  ;;  %2681 = vmatmul.mubr.f32.vlgmr.msra.gmra.mrb[24].mxu0 %v2465_v60  ;;  %2752 = vmatmul.mubr.f32.vlgmr.msra.gmra.mrb[24].mxu1 %v2465_v60  ;;  %v8744_v60 = vld [vmem:[#allocation39_spill] sm:$0xff] }
 0x4aa   : > { %5499 = vmatpush1.bf16.msra.mxu0 %v7432_v53  ;;  %5531 = vmatpush1.bf16.msra.mxu1 %v7597_v54 }
 0x4ab   : > { %5501 = vmatprep.subr.bf16.mxu0 %v7435_v55  ;;  %5533 = vmatprep.subr.bf16.mxu1 %v7602_v62 }
 0x4ac   : > { %2878 = vmatprep.mubr.f32.mxu0 %v8671_v11  ;;  %2949 = vmatprep.mubr.f32.mxu1 %v8671_v11 }
 0x4ae   : > { %5503 = vmatpush1.bf16.msra.mxu0 %v7448_v3  ;;  %5535 = vmatpush1.bf16.msra.mxu1 %v7620_v16 }
 0x4af   : > { %5505 = vmatprep.subr.bf16.mxu0 %v8729_v5  ;;  %5537 = vmatprep.subr.bf16.mxu1 %v8730_v22 }
 0x4b2   : > { %5507 = vmatpush1.bf16.msra.mxu0 %v8731_v18  ;;  %5539 = vmatpush1.bf16.msra.mxu1 %v8732_v4 }
 0x4b3   : > { %5509 = vmatprep.subr.bf16.mxu0 %v8733_v42  ;;  %5541 = vmatprep.subr.bf16.mxu1 %v8734_v20  ;;  %v8745_v20 = vld [vmem:[#allocation28_spill] sm:$0xff]  ;;  %v8755_v42 = vld [vmem:[#allocation45_spill] sm:$0xff] }
 0x4b6   : > { %5511 = vmatpush1.bf16.msra.mxu0 %v8735_v32  ;;  %5543 = vmatpush1.bf16.msra.mxu1 %v8736_v46  ;;  %v8746_v32 = vld [vmem:[#allocation40_spill] sm:$0xff]  ;;  %v8747_v46 = vld [vmem:[#allocation29_spill] sm:$0xff] }
 0x4b7   : > { %5513 = vmatprep.subr.bf16.mxu0 %v8737_v8  ;;  %5545 = vmatprep.subr.bf16.mxu1 %v8738_v25  ;;  %v8748_v8 = vld [vmem:[#allocation41_spill] sm:$0xff]  ;;  %v8749_v25 = vld [vmem:[#allocation30_spill] sm:$0xff] }
 0x4ba   : > { %5515 = vmatpush1.bf16.msra.mxu0 %v8739_v2  ;;  %5547 = vmatpush1.bf16.msra.mxu1 %v8740_v61  ;;  %v8750_v2 = vld [vmem:[#allocation42_spill] sm:$0xff]  ;;  %v8751_v61 = vld [vmem:[#allocation31_spill] sm:$0xff] }
 0x4bb   : > { %5517 = vmatprep.subr.bf16.mxu0 %v8741_v57  ;;  %5549 = vmatprep.subr.bf16.mxu1 %v8742_v39  ;;  %v8752_v57 = vld [vmem:[#allocation43_spill] sm:$0xff]  ;;  %v8753_v39 = vld [vmem:[#allocation22_spill] sm:$0xff] }
 0x4be   : > { %5519 = vmatpush1.bf16.msra.mxu0 %v8743_v38  ;;  %5551 = vmatpush1.bf16.msra.mxu1 %v8744_v60  ;;  %v8754_v38 = vld [vmem:[#allocation44_spill] sm:$0xff] }
 0x4bf   : > { %5521 = vmatprep.subr.bf16.mxu0 %v8745_v20  ;;  %5553 = vmatprep.subr.bf16.mxu1 %v8746_v32 }
 0x4c2   : > { %5523 = vmatpush1.bf16.msra.mxu0 %v8747_v46  ;;  %5555 = vmatpush1.bf16.msra.mxu1 %v8748_v8 }
 0x4c3   : > { %5525 = vmatprep.subr.bf16.mxu0 %v8749_v25  ;;  %5557 = vmatprep.subr.bf16.mxu1 %v8750_v2 }
 0x4c6   : > { %5527 = vmatpush1.bf16.msra.mxu0 %v8751_v61  ;;  %5559 = vmatpush1.bf16.msra.mxu1 %v8752_v57 }
 0x4c7   : > { %5561 = vmatprep.subr.bf16.mxu0 %v8753_v39  ;;  %5593 = vmatprep.subr.bf16.mxu1 %v8754_v38 }
 0x55c   : > { %v2536_v60 = vpop.f32.mrb[6].mxu0  ;;  %v2607_v20 = vpop.f32.mrb[6].mxu1 }
 0x55d   : > { %v6048_v32 = vadd.f32 %v2536_v60, %v8755_v42  ;;  %v2538_v4 = vpop.f32.mrb[7].mxu0  ;;  %v2609_v46 = vpop.f32.mrb[7].mxu1  ;;  %v6064_v57 = vadd.f32 %v2607_v20, %v8701_v34 }
 0x55e   : > { %v6049_v8 = vadd.f32 %v2538_v4, %v8699_v6  ;;  %v6065_v61 = vadd.f32 %v2609_v46, %v8700_v27 }
 0x55f   : > { %v4622_v18 = vmul.f32 -1.442695, %v6048_v32 }
 0x560   : > { %v4623_v25 = vmul.f32 -1.442695, %v6049_v8  ;;  %v4624_v2 = vmul.f32 -1.442695, %v6065_v61 }
 0x561   : > { %6335 = vpow2.f32 %v4622_v18 }
 0x562   : > { %6337 = vpow2.f32 %v4623_v25 }
 0x563   : > { %6339 = vpow2.f32 %v4624_v2 }
 0x564   : > { %6341 = vtanh.f32 %v6064_v57 }
 0x56b   : > { %v6336_v39 = vpop.eup %6335 }
 0x56c   : > { %v6338_v22 = vpop.eup %6337  ;;  %v2765_v38 = vadd.f32 1.0, %v6336_v39 }
 0x56d   : > { %v2771_v5 = vadd.f32 1.0, %v6338_v22  ;;  %v6340_v60 = vpop.eup %6339 }
 0x56e   : > { %6343 = vrcp.f32 %v2765_v38  ;;  %v6342_v42 = vpop.eup %6341  ;;  %v2778_v18 = vadd.f32 1.0, %v6340_v60 }
 0x56f   : > { %6345 = vrcp.f32 %v2771_v5 }
 0x570   : > { %6347 = vrcp.f32 %v2778_v18 }
 0x578   : > { %v6344_v4 = vpop.eup %6343 }
 0x579   : > { %v6346_v32 = vpop.eup %6345  ;;  %v2782_v8 = vmul.f32 %v6344_v4, %v6342_v42 }
 0x57a   : > { %v2781_v25 = vmul.f32 %v6346_v32, %v8043_v19  ;;  %v6348_v42 = vpop.eup %6347 }
 0x57c   : > { %v8129_v46 = vadd.f32 %v2782_v8, %v2781_v25  ;;  %v2682_v61 = vpop.f32.mrb[24].mxu0  ;;  %v2753_v20 = vpop.f32.mrb[24].mxu1 }
 0x57d   : > { %v6082_v39 = vadd.f32 %v2682_v61, %v7855_v10  ;;  %v2684_v2 = vpop.f32.mrb[25].mxu0  ;;  %v2755_v22 = vpop.f32.mrb[25].mxu1  ;;  %v6098_v32 = vadd.f32 %v2753_v20, %v7872_v30 }
 0x57e   : > { %v6083_v5 = vadd.f32 %v2684_v2, %v7852_v7  ;;  %6349 = vtanh.f32 %v8129_v46  ;;  %v6099_v19 = vadd.f32 %v2755_v22, %v7875_v37 }
 0x57f   : > { %v4625_v57 = vmul.f32 -1.442695, %v6082_v39 }
 0x580   : > { %v4626_v38 = vmul.f32 -1.442695, %v6083_v5  ;;  %v4627_v4 = vmul.f32 -1.442695, %v6099_v19 }
 0x581   : > { %6351 = vpow2.f32 %v4625_v57 }
 0x582   : > { %6353 = vpow2.f32 %v4626_v38 }
 0x583   : > { %6355 = vpow2.f32 %v4627_v4 }
 0x584   : > { %6357 = vtanh.f32 %v6098_v32  ;;  %v8756_v32 = vld [vmem:[#allocation19_spill] sm:$0xff] }
 0x588   : > { %v6350_v60 = vpop.eup %6349 }
 0x589   : > { %v2785_v8 = vmul.f32 %v6350_v60, %v6348_v42 }
 0x58b   : > { %v6352_v18 = vpop.eup %6351  ;;  %4628 = vst [vmem:[%s7869_s2 + $0x30] sm:$0xff] %v2785_v8  ;;  %2879 = vmatmul.mubr.f32.vlgmr.msra.gmra.mrb[8].mxu0 %v2785_v8  ;;  %2950 = vmatmul.mubr.f32.vlgmr.msra.gmra.mrb[8].mxu1 %v2785_v8  ;;  %v8757_v8 = vld [vmem:[#allocation32_spill] sm:$0xff] }
 0x58c   : > { %v6354_v25 = vpop.eup %6353  ;;  %v2789_v61 = vadd.f32 1.0, %v6352_v18  ;;  %5563 = vmatpush1.bf16.msra.mxu0 %v7492_v47  ;;  %5595 = vmatpush1.bf16.msra.mxu1 %v7721_v17  ;;  %v8758_v18 = vld [vmem:[#allocation20_spill] sm:$0xff] }
 0x58d   : > { %v2795_v39 = vadd.f32 1.0, %v6354_v25  ;;  %5565 = vmatprep.subr.bf16.mxu0 %v7495_v48  ;;  %5597 = vmatprep.subr.bf16.mxu1 %v7724_v59  ;;  %v6356_v20 = vpop.eup %6355  ;;  %v8759_v25 = vld [vmem:[#allocation33_spill] sm:$0xff] }
 0x58e   : > { %6359 = vrcp.f32 %v2789_v61  ;;  %3024 = vmatprep.mubr.f32.mxu0 %v8671_v11  ;;  %3095 = vmatprep.mubr.f32.mxu1 %v8671_v11  ;;  %v6358_v2 = vpop.eup %6357  ;;  %v2802_v38 = vadd.f32 1.0, %v6356_v20  ;;  %v8760_v61 = vld [vmem:[#allocation21_spill] sm:$0xff]  ;;  %v8762_v20 = vld [vmem:[#allocation23_spill] sm:$0xff] }
 0x58f   : > { %6361 = vrcp.f32 %v2795_v39  ;;  %v8761_v39 = vld [vmem:[#allocation34_spill] sm:$0xff] }
 0x590   : > { %5567 = vmatpush1.bf16.msra.mxu0 %v7515_v0  ;;  %5599 = vmatpush1.bf16.msra.mxu1 %v7734_v21  ;;  %6363 = vrcp.f32 %v2802_v38  ;;  %v8767_v38 = vld [vmem:[#allocation37_spill] sm:$0xff] }
 0x591   : > { %5569 = vmatprep.subr.bf16.mxu0 %v7519_v1  ;;  %5601 = vmatprep.subr.bf16.mxu1 %v7738_v49 }
 0x594   : > { %5571 = vmatpush1.bf16.msra.mxu0 %v7539_v14  ;;  %5603 = vmatpush1.bf16.msra.mxu1 %v7747_v44 }
 0x595   : > { %5573 = vmatprep.subr.bf16.mxu0 %v7543_v15  ;;  %5605 = vmatprep.subr.bf16.mxu1 %v7750_v9 }
 0x598   : > { %v6360_v22 = vpop.eup %6359  ;;  %5575 = vmatpush1.bf16.msra.mxu0 %v7563_v33  ;;  %5607 = vmatpush1.bf16.msra.mxu1 %v7759_v50 }
 0x599   : > { %v6362_v5 = vpop.eup %6361  ;;  %v2806_v57 = vmul.f32 %v6360_v22, %v6358_v2  ;;  %5577 = vmatprep.subr.bf16.mxu0 %v7567_v35  ;;  %5609 = vmatprep.subr.bf16.mxu1 %v7762_v52  ;;  %v8763_v2 = vld [vmem:[#allocation35_spill] sm:$0xff]  ;;  %v8764_v22 = vld [vmem:[#allocation24_spill] sm:$0xff] }
 0x59a   : > { %v2805_v19 = vmul.f32 %v6362_v5, %v8070_v63  ;;  %v6364_v63 = vpop.eup %6363  ;;  %v8765_v5 = vld [vmem:[#allocation36_spill] sm:$0xff] }
 0x59c   : > { %v8156_v42 = vadd.f32 %v2806_v57, %v2805_v19  ;;  %5579 = vmatpush1.bf16.msra.mxu0 %v7587_v56  ;;  %5611 = vmatpush1.bf16.msra.mxu1 %v7771_v24  ;;  %v8766_v57 = vld [vmem:[#allocation25_spill] sm:$0xff]  ;;  %v8768_v19 = vld [vmem:[#allocation26_spill] sm:$0xff] }
 0x59d   : > { %5581 = vmatprep.subr.bf16.mxu0 %v7591_v58  ;;  %5613 = vmatprep.subr.bf16.mxu1 %v7774_v26 }
 0x59e   : > { %6365 = vtanh.f32 %v8156_v42 }
 0x5a0   : > { %5583 = vmatpush1.bf16.msra.mxu0 %v7611_v12  ;;  %5615 = vmatpush1.bf16.msra.mxu1 %v7783_v23 }
 0x5a1   : > { %5585 = vmatprep.subr.bf16.mxu0 %v7615_v13  ;;  %5617 = vmatprep.subr.bf16.mxu1 %v7786_v28 }
 0x5a4   : > { %5587 = vmatpush1.bf16.msra.mxu0 %v7635_v36  ;;  %5619 = vmatpush1.bf16.msra.mxu1 %v7793_v51 }
 0x5a5   : > { %5589 = vmatprep.subr.bf16.mxu0 %v7638_v31  ;;  %5621 = vmatprep.subr.bf16.mxu1 %v7796_v40 }
 0x5a8   : > { %v6366_v60 = vpop.eup %6365  ;;  %5591 = vmatpush1.bf16.msra.mxu0 %v7655_v45  ;;  %5623 = vmatpush1.bf16.msra.mxu1 %v7801_v29 }
 0x5a9   : > { %v2809_v4 = vmul.f32 %v6366_v60, %v6364_v63  ;;  %5625 = vmatprep.subr.bf16.mxu0 %v7422_v41  ;;  %5657 = vmatprep.subr.bf16.mxu1 %v7578_v43  ;;  %v8769_v63 = vld [vmem:[#allocation38_spill] sm:$0xff]  ;;  %v8770_v60 = vld [vmem:[#allocation27_spill] sm:$0xff] }
 0x5ab   : > { %4629 = vst [vmem:[%s7869_s2 + $0x48] sm:$0xff] %v2809_v4  ;;  %3025 = vmatmul.mubr.f32.vlgmr.msra.gmra.mrb[22].mxu0 %v2809_v4  ;;  %3096 = vmatmul.mubr.f32.vlgmr.msra.gmra.mrb[22].mxu1 %v2809_v4  ;;  %v8771_v4 = vld [vmem:[#allocation39_spill] sm:$0xff] }
 0x5ac   : > { %5627 = vmatpush1.bf16.msra.mxu0 %v7432_v53  ;;  %5659 = vmatpush1.bf16.msra.mxu1 %v7597_v54 }
 0x5ad   : > { %5629 = vmatprep.subr.bf16.mxu0 %v7435_v55  ;;  %5661 = vmatprep.subr.bf16.mxu1 %v7602_v62 }
 0x5ae   : > { %3220 = vmatprep.mubr.f32.mxu0 %v8671_v11  ;;  %3291 = vmatprep.mubr.f32.mxu1 %v8671_v11 }
 0x5b0   : > { %5631 = vmatpush1.bf16.msra.mxu0 %v7448_v3  ;;  %5663 = vmatpush1.bf16.msra.mxu1 %v7620_v16 }
 0x5b1   : > { %5633 = vmatprep.subr.bf16.mxu0 %v8756_v32  ;;  %5665 = vmatprep.subr.bf16.mxu1 %v8757_v8 }
 0x5b4   : > { %5635 = vmatpush1.bf16.msra.mxu0 %v8758_v18  ;;  %5667 = vmatpush1.bf16.msra.mxu1 %v8759_v25 }
 0x5b5   : > { %5637 = vmatprep.subr.bf16.mxu0 %v8760_v61  ;;  %5669 = vmatprep.subr.bf16.mxu1 %v8761_v39  ;;  %v8772_v39 = vld [vmem:[#allocation28_spill] sm:$0xff]  ;;  %v8782_v61 = vld [vmem:[#allocation45_spill] sm:$0xff] }
 0x5b8   : > { %5639 = vmatpush1.bf16.msra.mxu0 %v8762_v20  ;;  %5671 = vmatpush1.bf16.msra.mxu1 %v8763_v2  ;;  %v8773_v20 = vld [vmem:[#allocation40_spill] sm:$0xff]  ;;  %v8774_v2 = vld [vmem:[#allocation29_spill] sm:$0xff] }
 0x5b9   : > { %5641 = vmatprep.subr.bf16.mxu0 %v8764_v22  ;;  %5673 = vmatprep.subr.bf16.mxu1 %v8765_v5  ;;  %v8775_v22 = vld [vmem:[#allocation41_spill] sm:$0xff]  ;;  %v8776_v5 = vld [vmem:[#allocation30_spill] sm:$0xff] }
 0x5bc   : > { %5643 = vmatpush1.bf16.msra.mxu0 %v8766_v57  ;;  %5675 = vmatpush1.bf16.msra.mxu1 %v8767_v38  ;;  %v8777_v57 = vld [vmem:[#allocation42_spill] sm:$0xff]  ;;  %v8778_v38 = vld [vmem:[#allocation31_spill] sm:$0xff] }
 0x5bd   : > { %5645 = vmatprep.subr.bf16.mxu0 %v8768_v19  ;;  %5677 = vmatprep.subr.bf16.mxu1 %v8769_v63  ;;  %v8779_v19 = vld [vmem:[#allocation43_spill] sm:$0xff]  ;;  %v8780_v63 = vld [vmem:[#allocation22_spill] sm:$0xff] }
 0x5c0   : > { %5647 = vmatpush1.bf16.msra.mxu0 %v8770_v60  ;;  %5679 = vmatpush1.bf16.msra.mxu1 %v8771_v4  ;;  %v8781_v60 = vld [vmem:[#allocation44_spill] sm:$0xff] }
 0x5c1   : > { %5649 = vmatprep.subr.bf16.mxu0 %v8772_v39  ;;  %5681 = vmatprep.subr.bf16.mxu1 %v8773_v20 }
 0x5c4   : > { %5651 = vmatpush1.bf16.msra.mxu0 %v8774_v2  ;;  %5683 = vmatpush1.bf16.msra.mxu1 %v8775_v22 }
 0x5c5   : > { %5653 = vmatprep.subr.bf16.mxu0 %v8776_v5  ;;  %5685 = vmatprep.subr.bf16.mxu1 %v8777_v57 }
 0x5c8   : > { %5655 = vmatpush1.bf16.msra.mxu0 %v8778_v38  ;;  %5687 = vmatpush1.bf16.msra.mxu1 %v8779_v19 }
 0x5c9   : > { %5689 = vmatprep.subr.bf16.mxu0 %v8780_v63  ;;  %5721 = vmatprep.subr.bf16.mxu1 %v8781_v60 }
 0x65e   : > { %v2880_v4 = vpop.f32.mrb[8].mxu0  ;;  %v2951_v39 = vpop.f32.mrb[8].mxu1 }
 0x65f   : > { %v6050_v20 = vadd.f32 %v2880_v4, %v8782_v61  ;;  %v2882_v25 = vpop.f32.mrb[9].mxu0  ;;  %v2953_v2 = vpop.f32.mrb[9].mxu1  ;;  %v6066_v19 = vadd.f32 %v2951_v39, %v8701_v34 }
 0x660   : > { %v6051_v22 = vadd.f32 %v2882_v25, %v8699_v6  ;;  %v6067_v38 = vadd.f32 %v2953_v2, %v8700_v27 }
 0x661   : > { %v4630_v18 = vmul.f32 -1.442695, %v6050_v20 }
 0x662   : > { %v4631_v5 = vmul.f32 -1.442695, %v6051_v22  ;;  %v4632_v57 = vmul.f32 -1.442695, %v6067_v38 }
 0x663   : > { %6367 = vpow2.f32 %v4630_v18 }
 0x664   : > { %6369 = vpow2.f32 %v4631_v5 }
 0x665   : > { %6371 = vpow2.f32 %v4632_v57 }
 0x666   : > { %6373 = vtanh.f32 %v6066_v19 }
 0x66d   : > { %v6368_v63 = vpop.eup %6367 }
 0x66e   : > { %v6370_v8 = vpop.eup %6369  ;;  %v3109_v60 = vadd.f32 1.0, %v6368_v63 }
 0x66f   : > { %v3115_v32 = vadd.f32 1.0, %v6370_v8  ;;  %v6372_v4 = vpop.eup %6371 }
 0x670   : > { %6375 = vrcp.f32 %v3109_v60  ;;  %v6374_v61 = vpop.eup %6373  ;;  %v3122_v18 = vadd.f32 1.0, %v6372_v4 }
 0x671   : > { %6377 = vrcp.f32 %v3115_v32 }
 0x672   : > { %6379 = vrcp.f32 %v3122_v18 }
 0x67a   : > { %v6376_v25 = vpop.eup %6375 }
 0x67b   : > { %v6378_v20 = vpop.eup %6377  ;;  %v3126_v22 = vmul.f32 %v6376_v25, %v6374_v61 }
 0x67c   : > { %v3125_v5 = vmul.f32 %v6378_v20, %v8129_v46  ;;  %v6380_v61 = vpop.eup %6379 }
 0x67e   : > { %v8215_v2 = vadd.f32 %v3126_v22, %v3125_v5  ;;  %v3026_v38 = vpop.f32.mrb[22].mxu0  ;;  %v3097_v39 = vpop.f32.mrb[22].mxu1 }
 0x67f   : > { %v6080_v63 = vadd.f32 %v3026_v38, %v7855_v10  ;;  %v3028_v57 = vpop.f32.mrb[23].mxu0  ;;  %v3099_v8 = vpop.f32.mrb[23].mxu1  ;;  %v6096_v20 = vadd.f32 %v3097_v39, %v7872_v30 }
 0x680   : > { %v6081_v32 = vadd.f32 %v3028_v57, %v7852_v7  ;;  %6381 = vtanh.f32 %v8215_v2  ;;  %v6097_v46 = vadd.f32 %v3099_v8, %v7875_v37 }
 0x681   : > { %v4633_v19 = vmul.f32 -1.442695, %v6080_v63 }
 0x682   : > { %v4634_v60 = vmul.f32 -1.442695, %v6081_v32  ;;  %v4635_v25 = vmul.f32 -1.442695, %v6097_v46 }
 0x683   : > { %6383 = vpow2.f32 %v4633_v19 }
 0x684   : > { %6385 = vpow2.f32 %v4634_v60 }
 0x685   : > { %6387 = vpow2.f32 %v4635_v25 }
 0x686   : > { %6389 = vtanh.f32 %v6096_v20  ;;  %v8785_v20 = vld [vmem:[#allocation19_spill] sm:$0xff] }
 0x68a   : > { %v6382_v4 = vpop.eup %6381 }
 0x68b   : > { %v8222_v22 = vmul.f32 %v6382_v4, %v6380_v61 }
 0x68d   : > { %8783 = vst [vmem:[#allocation46_spill] sm:$0xff] %v8222_v22  ;;  %v6384_v18 = vpop.eup %6383  ;;  %4636 = vst [vmem:[%s7869_s2 + $0x40] sm:$0xff] %v8222_v22  ;;  %3221 = vmatmul.mubr.f32.vlgmr.msra.gmra.mrb[10].mxu0 %v8222_v22  ;;  %3292 = vmatmul.mubr.f32.vlgmr.msra.gmra.mrb[10].mxu1 %v8222_v22  ;;  %v8799_v22 = vld [vmem:[#allocation27_spill] sm:$0xff] }
 0x68e   : > { %v6386_v5 = vpop.eup %6385  ;;  %v3133_v38 = vadd.f32 1.0, %v6384_v18  ;;  %5691 = vmatpush1.bf16.msra.mxu0 %v7492_v47  ;;  %5723 = vmatpush1.bf16.msra.mxu1 %v7721_v17  ;;  %v8786_v18 = vld [vmem:[#allocation32_spill] sm:$0xff] }
 0x68f   : > { %v3139_v63 = vadd.f32 1.0, %v6386_v5  ;;  %5693 = vmatprep.subr.bf16.mxu0 %v7495_v48  ;;  %5725 = vmatprep.subr.bf16.mxu1 %v7724_v59  ;;  %v6388_v39 = vpop.eup %6387  ;;  %v8787_v5 = vld [vmem:[#allocation20_spill] sm:$0xff] }
 0x690   : > { %6391 = vrcp.f32 %v3133_v38  ;;  %3366 = vmatprep.mubr.f32.mxu0 %v8671_v11  ;;  %3437 = vmatprep.mubr.f32.mxu1 %v8671_v11  ;;  %v6390_v57 = vpop.eup %6389  ;;  %v3146_v60 = vadd.f32 1.0, %v6388_v39  ;;  %v8788_v38 = vld [vmem:[#allocation33_spill] sm:$0xff]  ;;  %v8790_v39 = vld [vmem:[#allocation34_spill] sm:$0xff] }
 0x691   : > { %6393 = vrcp.f32 %v3139_v63  ;;  %v8789_v63 = vld [vmem:[#allocation21_spill] sm:$0xff] }
 0x692   : > { %5695 = vmatpush1.bf16.msra.mxu0 %v7515_v0  ;;  %5727 = vmatpush1.bf16.msra.mxu1 %v7734_v21  ;;  %6395 = vrcp.f32 %v3146_v60  ;;  %v8795_v60 = vld [vmem:[#allocation25_spill] sm:$0xff] }
 0x693   : > { %5697 = vmatprep.subr.bf16.mxu0 %v7519_v1  ;;  %5729 = vmatprep.subr.bf16.mxu1 %v7738_v49 }
 0x696   : > { %5699 = vmatpush1.bf16.msra.mxu0 %v7539_v14  ;;  %5731 = vmatpush1.bf16.msra.mxu1 %v7747_v44 }
 0x697   : > { %5701 = vmatprep.subr.bf16.mxu0 %v7543_v15  ;;  %5733 = vmatprep.subr.bf16.mxu1 %v7750_v9 }
 0x69a   : > { %v6392_v8 = vpop.eup %6391  ;;  %5703 = vmatpush1.bf16.msra.mxu0 %v7563_v33  ;;  %5735 = vmatpush1.bf16.msra.mxu1 %v7759_v50 }
 0x69b   : > { %v6394_v32 = vpop.eup %6393  ;;  %v3150_v19 = vmul.f32 %v6392_v8, %v6390_v57  ;;  %5705 = vmatprep.subr.bf16.mxu0 %v7567_v35  ;;  %5737 = vmatprep.subr.bf16.mxu1 %v7762_v52  ;;  %v8791_v57 = vld [vmem:[#allocation23_spill] sm:$0xff] }
 0x69c   : > { %v3149_v46 = vmul.f32 %v6394_v32, %v8156_v42  ;;  %v6396_v42 = vpop.eup %6395  ;;  %v8792_v8 = vld [vmem:[#allocation35_spill] sm:$0xff]  ;;  %v8793_v32 = vld [vmem:[#allocation24_spill] sm:$0xff] }
 0x69e   : > { %v8247_v61 = vadd.f32 %v3150_v19, %v3149_v46  ;;  %5707 = vmatpush1.bf16.msra.mxu0 %v7587_v56  ;;  %5739 = vmatpush1.bf16.msra.mxu1 %v7771_v24  ;;  %v8794_v19 = vld [vmem:[#allocation36_spill] sm:$0xff]  ;;  %v8796_v46 = vld [vmem:[#allocation37_spill] sm:$0xff] }
 0x69f   : > { %5709 = vmatprep.subr.bf16.mxu0 %v7591_v58  ;;  %5741 = vmatprep.subr.bf16.mxu1 %v7774_v26 }
 0x6a0   : > { %6397 = vtanh.f32 %v8247_v61 }
 0x6a2   : > { %5711 = vmatpush1.bf16.msra.mxu0 %v7611_v12  ;;  %5743 = vmatpush1.bf16.msra.mxu1 %v7783_v23 }
 0x6a3   : > { %5713 = vmatprep.subr.bf16.mxu0 %v7615_v13  ;;  %5745 = vmatprep.subr.bf16.mxu1 %v7786_v28 }
 0x6a6   : > { %5715 = vmatpush1.bf16.msra.mxu0 %v7635_v36  ;;  %5747 = vmatpush1.bf16.msra.mxu1 %v7793_v51 }
 0x6a7   : > { %5717 = vmatprep.subr.bf16.mxu0 %v7638_v31  ;;  %5749 = vmatprep.subr.bf16.mxu1 %v7796_v40 }
 0x6aa   : > { %v6398_v4 = vpop.eup %6397  ;;  %5719 = vmatpush1.bf16.msra.mxu0 %v7655_v45  ;;  %5751 = vmatpush1.bf16.msra.mxu1 %v7801_v29 }
 0x6ab   : > { %v8264_v25 = vmul.f32 %v6398_v4, %v6396_v42  ;;  %5753 = vmatprep.subr.bf16.mxu0 %v7422_v41  ;;  %5785 = vmatprep.subr.bf16.mxu1 %v7578_v43  ;;  %v8797_v42 = vld [vmem:[#allocation26_spill] sm:$0xff] }
 0x6ac   : > { %v8798_v4 = vld [vmem:[#allocation38_spill] sm:$0xff] }
 0x6ad   : > { %8784 = vst [vmem:[#allocation48_spill] sm:$0xff] %v8264_v25  ;;  %4637 = vst [vmem:[%s7869_s2 + $0x38] sm:$0xff] %v8264_v25  ;;  %3367 = vmatmul.mubr.f32.vlgmr.msra.gmra.mrb[20].mxu0 %v8264_v25  ;;  %3438 = vmatmul.mubr.f32.vlgmr.msra.gmra.mrb[20].mxu1 %v8264_v25  ;;  %v8800_v25 = vld [vmem:[#allocation39_spill] sm:$0xff] }
 0x6ae   : > { %5755 = vmatpush1.bf16.msra.mxu0 %v7432_v53  ;;  %5787 = vmatpush1.bf16.msra.mxu1 %v7597_v54 }
 0x6af   : > { %5757 = vmatprep.subr.bf16.mxu0 %v7435_v55  ;;  %5789 = vmatprep.subr.bf16.mxu1 %v7602_v62 }
 0x6b0   : > { %3562 = vmatprep.mubr.f32.mxu0 %v8671_v11  ;;  %3633 = vmatprep.mubr.f32.mxu1 %v8671_v11 }
 0x6b2   : > { %5759 = vmatpush1.bf16.msra.mxu0 %v7448_v3  ;;  %5791 = vmatpush1.bf16.msra.mxu1 %v7620_v16 }
 0x6b3   : > { %5761 = vmatprep.subr.bf16.mxu0 %v8785_v20  ;;  %5793 = vmatprep.subr.bf16.mxu1 %v8786_v18 }
 0x6b6   : > { %5763 = vmatpush1.bf16.msra.mxu0 %v8787_v5  ;;  %5795 = vmatpush1.bf16.msra.mxu1 %v8788_v38 }
 0x6b7   : > { %5765 = vmatprep.subr.bf16.mxu0 %v8789_v63  ;;  %5797 = vmatprep.subr.bf16.mxu1 %v8790_v39  ;;  %v8801_v39 = vld [vmem:[#allocation28_spill] sm:$0xff]  ;;  %v8811_v63 = vld [vmem:[#allocation45_spill] sm:$0xff] }
 0x6ba   : > { %5767 = vmatpush1.bf16.msra.mxu0 %v8791_v57  ;;  %5799 = vmatpush1.bf16.msra.mxu1 %v8792_v8  ;;  %v8802_v57 = vld [vmem:[#allocation40_spill] sm:$0xff]  ;;  %v8803_v8 = vld [vmem:[#allocation29_spill] sm:$0xff] }
 0x6bb   : > { %5769 = vmatprep.subr.bf16.mxu0 %v8793_v32  ;;  %5801 = vmatprep.subr.bf16.mxu1 %v8794_v19  ;;  %v8804_v32 = vld [vmem:[#allocation41_spill] sm:$0xff]  ;;  %v8805_v19 = vld [vmem:[#allocation30_spill] sm:$0xff] }
 0x6be   : > { %5771 = vmatpush1.bf16.msra.mxu0 %v8795_v60  ;;  %5803 = vmatpush1.bf16.msra.mxu1 %v8796_v46  ;;  %v8806_v60 = vld [vmem:[#allocation42_spill] sm:$0xff]  ;;  %v8807_v46 = vld [vmem:[#allocation31_spill] sm:$0xff] }
 0x6bf   : > { %5773 = vmatprep.subr.bf16.mxu0 %v8797_v42  ;;  %5805 = vmatprep.subr.bf16.mxu1 %v8798_v4  ;;  %v8808_v42 = vld [vmem:[#allocation43_spill] sm:$0xff]  ;;  %v8809_v4 = vld [vmem:[#allocation22_spill] sm:$0xff] }
 0x6c2   : > { %5775 = vmatpush1.bf16.msra.mxu0 %v8799_v22  ;;  %5807 = vmatpush1.bf16.msra.mxu1 %v8800_v25  ;;  %v8810_v22 = vld [vmem:[#allocation44_spill] sm:$0xff] }
 0x6c3   : > { %5777 = vmatprep.subr.bf16.mxu0 %v8801_v39  ;;  %5809 = vmatprep.subr.bf16.mxu1 %v8802_v57 }
 0x6c6   : > { %5779 = vmatpush1.bf16.msra.mxu0 %v8803_v8  ;;  %5811 = vmatpush1.bf16.msra.mxu1 %v8804_v32 }
 0x6c7   : > { %5781 = vmatprep.subr.bf16.mxu0 %v8805_v19  ;;  %5813 = vmatprep.subr.bf16.mxu1 %v8806_v60 }
 0x6ca   : > { %5783 = vmatpush1.bf16.msra.mxu0 %v8807_v46  ;;  %5815 = vmatpush1.bf16.msra.mxu1 %v8808_v42 }
 0x6cb   : > { %5817 = vmatprep.subr.bf16.mxu0 %v8809_v4  ;;  %5849 = vmatprep.subr.bf16.mxu1 %v8810_v22 }
 0x760   : > { %v3222_v25 = vpop.f32.mrb[10].mxu0  ;;  %v3293_v39 = vpop.f32.mrb[10].mxu1 }
 0x761   : > { %v6052_v57 = vadd.f32 %v3222_v25, %v8811_v63  ;;  %v3224_v38 = vpop.f32.mrb[11].mxu0  ;;  %v3295_v8 = vpop.f32.mrb[11].mxu1  ;;  %v6068_v42 = vadd.f32 %v3293_v39, %v8701_v34 }
 0x762   : > { %v6053_v32 = vadd.f32 %v3224_v38, %v8699_v6  ;;  %v6069_v46 = vadd.f32 %v3295_v8, %v8700_v27 }
 0x763   : > { %v4638_v5 = vmul.f32 -1.442695, %v6052_v57 }
 0x764   : > { %v4639_v19 = vmul.f32 -1.442695, %v6053_v32  ;;  %v4640_v60 = vmul.f32 -1.442695, %v6069_v46 }
 0x765   : > { %6399 = vpow2.f32 %v4638_v5 }
 0x766   : > { %6401 = vpow2.f32 %v4639_v19 }
 0x767   : > { %6403 = vpow2.f32 %v4640_v60 }
 0x768   : > { %6405 = vtanh.f32 %v6068_v42 }
 0x76f   : > { %v6400_v4 = vpop.eup %6399 }
 0x770   : > { %v6402_v18 = vpop.eup %6401  ;;  %v3451_v22 = vadd.f32 1.0, %v6400_v4 }
 0x771   : > { %v3457_v20 = vadd.f32 1.0, %v6402_v18  ;;  %v6404_v25 = vpop.eup %6403 }
 0x772   : > { %6407 = vrcp.f32 %v3451_v22  ;;  %v6406_v63 = vpop.eup %6405  ;;  %v3464_v5 = vadd.f32 1.0, %v6404_v25 }
 0x773   : > { %6409 = vrcp.f32 %v3457_v20 }
 0x774   : > { %6411 = vrcp.f32 %v3464_v5 }
 0x77c   : > { %v6408_v38 = vpop.eup %6407 }
 0x77d   : > { %v6410_v57 = vpop.eup %6409  ;;  %v3468_v32 = vmul.f32 %v6408_v38, %v6406_v63 }
 0x77e   : > { %v3467_v19 = vmul.f32 %v6410_v57, %v8215_v2  ;;  %v6412_v63 = vpop.eup %6411 }
 0x780   : > { %v8311_v8 = vadd.f32 %v3468_v32, %v3467_v19  ;;  %v3368_v46 = vpop.f32.mrb[20].mxu0  ;;  %v3439_v39 = vpop.f32.mrb[20].mxu1 }
 0x781   : > { %v6078_v4 = vadd.f32 %v3368_v46, %v7855_v10  ;;  %v3370_v60 = vpop.f32.mrb[21].mxu0  ;;  %v3441_v18 = vpop.f32.mrb[21].mxu1  ;;  %v6094_v57 = vadd.f32 %v3439_v39, %v7872_v30 }
 0x782   : > { %v6079_v22 = vadd.f32 %v3370_v60, %v7852_v7  ;;  %6413 = vtanh.f32 %v8311_v8  ;;  %v6095_v2 = vadd.f32 %v3441_v18, %v7875_v37 }
 0x783   : > { %v4641_v20 = vmul.f32 -1.442695, %v6078_v4 }
 0x784   : > { %v4642_v42 = vmul.f32 -1.442695, %v6079_v22  ;;  %v4643_v38 = vmul.f32 -1.442695, %v6095_v2 }
 0x785   : > { %6415 = vpow2.f32 %v4641_v20 }
 0x786   : > { %6417 = vpow2.f32 %v4642_v42 }
 0x787   : > { %6419 = vpow2.f32 %v4643_v38 }
 0x788   : > { %6421 = vtanh.f32 %v6094_v57  ;;  %v8814_v57 = vld [vmem:[#allocation20_spill] sm:$0xff] }
 0x78c   : > { %v6414_v25 = vpop.eup %6413 }
 0x78d   : > { %v8318_v32 = vmul.f32 %v6414_v25, %v6412_v63 }
 0x78f   : > { %v6416_v5 = vpop.eup %6415  ;;  %4644 = vst [vmem:[%s7869_s2 + $0x50] sm:$0xff] %v8318_v32  ;;  %3563 = vmatmul.mubr.f32.vlgmr.msra.gmra.mrb[12].mxu0 %v8318_v32  ;;  %3634 = vmatmul.mubr.f32.vlgmr.msra.gmra.mrb[12].mxu1 %v8318_v32 }
 0x790   : > { %v6418_v19 = vpop.eup %6417  ;;  %v3475_v46 = vadd.f32 1.0, %v6416_v5  ;;  %5819 = vmatpush1.bf16.msra.mxu0 %v7492_v47  ;;  %5851 = vmatpush1.bf16.msra.mxu1 %v7721_v17  ;;  %v8819_v5 = vld [vmem:[#allocation35_spill] sm:$0xff] }
 0x791   : > { %v3481_v4 = vadd.f32 1.0, %v6418_v19  ;;  %5821 = vmatprep.subr.bf16.mxu0 %v7495_v48  ;;  %5853 = vmatprep.subr.bf16.mxu1 %v7724_v59  ;;  %v6420_v39 = vpop.eup %6419  ;;  %v8820_v19 = vld [vmem:[#allocation24_spill] sm:$0xff] }
 0x792   : > { %6423 = vrcp.f32 %v3475_v46  ;;  %3708 = vmatprep.mubr.f32.mxu0 %v8671_v11  ;;  %3779 = vmatprep.mubr.f32.mxu1 %v8671_v11  ;;  %v6422_v60 = vpop.eup %6421  ;;  %v3488_v42 = vadd.f32 1.0, %v6420_v39  ;;  %v8823_v46 = vld [vmem:[#allocation37_spill] sm:$0xff]  ;;  %v8825_v39 = vld [vmem:[#allocation38_spill] sm:$0xff] }
 0x793   : > { %6425 = vrcp.f32 %v3481_v4  ;;  %v8824_v4 = vld [vmem:[#allocation26_spill] sm:$0xff] }
 0x794   : > { %5823 = vmatpush1.bf16.msra.mxu0 %v7515_v0  ;;  %5855 = vmatpush1.bf16.msra.mxu1 %v7734_v21  ;;  %6427 = vrcp.f32 %v3488_v42  ;;  %v8830_v42 = vld [vmem:[#allocation29_spill] sm:$0xff] }
 0x795   : > { %5825 = vmatprep.subr.bf16.mxu0 %v7519_v1  ;;  %5857 = vmatprep.subr.bf16.mxu1 %v7738_v49 }
 0x798   : > { %5827 = vmatpush1.bf16.msra.mxu0 %v7539_v14  ;;  %5859 = vmatpush1.bf16.msra.mxu1 %v7747_v44 }
 0x799   : > { %5829 = vmatprep.subr.bf16.mxu0 %v7543_v15  ;;  %5861 = vmatprep.subr.bf16.mxu1 %v7750_v9 }
 0x79c   : > { %v6424_v18 = vpop.eup %6423  ;;  %5831 = vmatpush1.bf16.msra.mxu0 %v7563_v33  ;;  %5863 = vmatpush1.bf16.msra.mxu1 %v7759_v50 }
 0x79d   : > { %v6426_v22 = vpop.eup %6425  ;;  %v3492_v20 = vmul.f32 %v6424_v18, %v6422_v60  ;;  %5833 = vmatprep.subr.bf16.mxu0 %v7567_v35  ;;  %5865 = vmatprep.subr.bf16.mxu1 %v7762_v52  ;;  %v8826_v60 = vld [vmem:[#allocation27_spill] sm:$0xff] }
 0x79e   : > { %v3491_v2 = vmul.f32 %v6426_v22, %v8247_v61  ;;  %v6428_v61 = vpop.eup %6427  ;;  %v8827_v18 = vld [vmem:[#allocation39_spill] sm:$0xff]  ;;  %v8828_v22 = vld [vmem:[#allocation28_spill] sm:$0xff] }
 0x7a0   : > { %v8343_v63 = vadd.f32 %v3492_v20, %v3491_v2  ;;  %5835 = vmatpush1.bf16.msra.mxu0 %v7587_v56  ;;  %5867 = vmatpush1.bf16.msra.mxu1 %v7771_v24  ;;  %v8829_v20 = vld [vmem:[#allocation40_spill] sm:$0xff]  ;;  %v8831_v2 = vld [vmem:[#allocation41_spill] sm:$0xff] }
 0x7a1   : > { %5837 = vmatprep.subr.bf16.mxu0 %v7591_v58  ;;  %5869 = vmatprep.subr.bf16.mxu1 %v7774_v26 }
 0x7a2   : > { %6429 = vtanh.f32 %v8343_v63 }
 0x7a4   : > { %5839 = vmatpush1.bf16.msra.mxu0 %v7611_v12  ;;  %5871 = vmatpush1.bf16.msra.mxu1 %v7783_v23 }
 0x7a5   : > { %5841 = vmatprep.subr.bf16.mxu0 %v7615_v13  ;;  %5873 = vmatprep.subr.bf16.mxu1 %v7786_v28 }
 0x7a8   : > { %5843 = vmatpush1.bf16.msra.mxu0 %v7635_v36  ;;  %5875 = vmatpush1.bf16.msra.mxu1 %v7793_v51 }
 0x7a9   : > { %5845 = vmatprep.subr.bf16.mxu0 %v7638_v31  ;;  %5877 = vmatprep.subr.bf16.mxu1 %v7796_v40 }
 0x7ac   : > { %v6430_v25 = vpop.eup %6429  ;;  %5847 = vmatpush1.bf16.msra.mxu0 %v7655_v45  ;;  %5879 = vmatpush1.bf16.msra.mxu1 %v7801_v29 }
 0x7ad   : > { %v8360_v38 = vmul.f32 %v6430_v25, %v6428_v61  ;;  %5881 = vmatprep.subr.bf16.mxu0 %v7422_v41  ;;  %5913 = vmatprep.subr.bf16.mxu1 %v7578_v43  ;;  %v8812_v41 = vld [vmem:[#allocation19_spill] sm:$0xff]  ;;  %v8813_v43 = vld [vmem:[#allocation32_spill] sm:$0xff]  ;;  %v8832_v61 = vld [vmem:[#allocation30_spill] sm:$0xff] }
 0x7ae   : > { %v8833_v25 = vld [vmem:[#allocation42_spill] sm:$0xff] }
 0x7af   : > { %4645 = vst [vmem:[%s7869_s2 + $0x28] sm:$0xff] %v8360_v38  ;;  %3709 = vmatmul.mubr.f32.vlgmr.msra.gmra.mrb[18].mxu0 %v8360_v38  ;;  %3780 = vmatmul.mubr.f32.vlgmr.msra.gmra.mrb[18].mxu1 %v8360_v38 }
 0x7b0   : > { %5883 = vmatpush1.bf16.msra.mxu0 %v7432_v53  ;;  %5915 = vmatpush1.bf16.msra.mxu1 %v7597_v54  ;;  %v8815_v53 = vld [vmem:[#allocation33_spill] sm:$0xff] }
 0x7b1   : > { %5885 = vmatprep.subr.bf16.mxu0 %v7435_v55  ;;  %5917 = vmatprep.subr.bf16.mxu1 %v7602_v62  ;;  %v8816_v54 = vld [vmem:[#allocation21_spill] sm:$0xff]  ;;  %v8817_v55 = vld [vmem:[#allocation34_spill] sm:$0xff]  ;;  %v8818_v62 = vld [vmem:[#allocation23_spill] sm:$0xff] }
 0x7b2   : > { %3904 = vmatprep.mubr.f32.mxu0 %v8671_v11  ;;  %3975 = vmatprep.mubr.f32.mxu1 %v8671_v11 }
 0x7b4   : > { %5887 = vmatpush1.bf16.msra.mxu0 %v7448_v3  ;;  %5919 = vmatpush1.bf16.msra.mxu1 %v7620_v16  ;;  %v8821_v3 = vld [vmem:[#allocation36_spill] sm:$0xff]  ;;  %v8822_v16 = vld [vmem:[#allocation25_spill] sm:$0xff] }
 0x7b5   : > { %5889 = vmatprep.subr.bf16.mxu0 %v8812_v41  ;;  %5921 = vmatprep.subr.bf16.mxu1 %v8813_v43  ;;  %v8834_v41 = vld [vmem:[#allocation31_spill] sm:$0xff] }
 0x7b6   : > { %v8835_v43 = vld [vmem:[#allocation43_spill] sm:$0xff] }
 0x7b8   : > { %5891 = vmatpush1.bf16.msra.mxu0 %v8814_v57  ;;  %5923 = vmatpush1.bf16.msra.mxu1 %v8815_v53  ;;  %v8836_v57 = vld [vmem:[#allocation22_spill] sm:$0xff]  ;;  %v8837_v53 = vld [vmem:[#allocation44_spill] sm:$0xff] }
 0x7b9   : > { %5893 = vmatprep.subr.bf16.mxu0 %v8816_v54  ;;  %5925 = vmatprep.subr.bf16.mxu1 %v8817_v55 }
 0x7bc   : > { %5895 = vmatpush1.bf16.msra.mxu0 %v8818_v62  ;;  %5927 = vmatpush1.bf16.msra.mxu1 %v8819_v5  ;;  %v8838_v62 = vld [vmem:[#allocation45_spill] sm:$0xff] }
 0x7bd   : > { %5897 = vmatprep.subr.bf16.mxu0 %v8820_v19  ;;  %5929 = vmatprep.subr.bf16.mxu1 %v8821_v3 }
 0x7c0   : > { %5899 = vmatpush1.bf16.msra.mxu0 %v8822_v16  ;;  %5931 = vmatpush1.bf16.msra.mxu1 %v8823_v46 }
 0x7c1   : > { %5901 = vmatprep.subr.bf16.mxu0 %v8824_v4  ;;  %5933 = vmatprep.subr.bf16.mxu1 %v8825_v39 }
 0x7c4   : > { %5903 = vmatpush1.bf16.msra.mxu0 %v8826_v60  ;;  %5935 = vmatpush1.bf16.msra.mxu1 %v8827_v18 }
 0x7c5   : > { %5905 = vmatprep.subr.bf16.mxu0 %v8828_v22  ;;  %5937 = vmatprep.subr.bf16.mxu1 %v8829_v20 }
 0x7c8   : > { %5907 = vmatpush1.bf16.msra.mxu0 %v8830_v42  ;;  %5939 = vmatpush1.bf16.msra.mxu1 %v8831_v2 }
 0x7c9   : > { %5909 = vmatprep.subr.bf16.mxu0 %v8832_v61  ;;  %5941 = vmatprep.subr.bf16.mxu1 %v8833_v25 }
 0x7cc   : > { %5911 = vmatpush1.bf16.msra.mxu0 %v8834_v41  ;;  %5943 = vmatpush1.bf16.msra.mxu1 %v8835_v43 }
 0x7cd   : > { %5945 = vmatprep.subr.bf16.mxu0 %v8836_v57  ;;  %5977 = vmatprep.subr.bf16.mxu1 %v8837_v53 }
 0x862   : > { %v3564_v54 = vpop.f32.mrb[12].mxu0  ;;  %v3635_v55 = vpop.f32.mrb[12].mxu1 }
 0x863   : > { %v6054_v5 = vadd.f32 %v3564_v54, %v8838_v62  ;;  %v3566_v19 = vpop.f32.mrb[13].mxu0  ;;  %v3637_v3 = vpop.f32.mrb[13].mxu1  ;;  %v6070_v18 = vadd.f32 %v3635_v55, %v8701_v34 }
 0x864   : > { %v6055_v16 = vadd.f32 %v3566_v19, %v8699_v6  ;;  %v6071_v39 = vadd.f32 %v3637_v3, %v8700_v27 }
 0x865   : > { %v4646_v46 = vmul.f32 -1.442695, %v6054_v5 }
 0x866   : > { %v4647_v4 = vmul.f32 -1.442695, %v6055_v16  ;;  %v4648_v60 = vmul.f32 -1.442695, %v6071_v39 }
 0x867   : > { %6431 = vpow2.f32 %v4646_v46 }
 0x868   : > { %6433 = vpow2.f32 %v4647_v4 }
 0x869   : > { %6435 = vpow2.f32 %v4648_v60 }
 0x86a   : > { %6437 = vtanh.f32 %v6070_v18 }
 0x871   : > { %v6432_v22 = vpop.eup %6431 }
 0x872   : > { %v6434_v20 = vpop.eup %6433  ;;  %v3793_v42 = vadd.f32 1.0, %v6432_v22 }
 0x873   : > { %v3799_v2 = vadd.f32 1.0, %v6434_v20  ;;  %v6436_v61 = vpop.eup %6435 }
 0x874   : > { %6439 = vrcp.f32 %v3793_v42  ;;  %v6438_v25 = vpop.eup %6437  ;;  %v3806_v53 = vadd.f32 1.0, %v6436_v61 }
 0x875   : > { %6441 = vrcp.f32 %v3799_v2 }
 0x876   : > { %6443 = vrcp.f32 %v3806_v53  ;;  %v4205_v53 = vld [vmem:[%s7070_s10 + $0x38] sm:$0xff] }
 0x87e   : > { %v6440_v41 = vpop.eup %6439 }
 0x87f   : > { %v6442_v43 = vpop.eup %6441  ;;  %v3810_v57 = vmul.f32 %v6440_v41, %v6438_v25 }
 0x880   : > { %v3809_v54 = vmul.f32 %v6442_v43, %v8311_v8  ;;  %v6444_v18 = vpop.eup %6443 }
 0x882   : > { %v8407_v5 = vadd.f32 %v3810_v57, %v3809_v54  ;;  %v3710_v19 = vpop.f32.mrb[18].mxu0  ;;  %v3781_v55 = vpop.f32.mrb[18].mxu1  ;;  %v4204_v57 = vld [vmem:[%s7070_s10 + $0x30] sm:$0xff] }
 0x883   : > { %v6076_v3 = vadd.f32 %v3710_v19, %v7855_v10  ;;  %v3712_v16 = vpop.f32.mrb[19].mxu0  ;;  %v3783_v46 = vpop.f32.mrb[19].mxu1  ;;  %v6092_v42 = vadd.f32 %v3781_v55, %v7872_v30  ;;  %v6022_v54 = vpack.c.bf16 %v4205_v53, %v4204_v57  ;;  %v4222_v19 = vld [vmem:[%s7070_s10 + $0xc0] sm:$0xff]  ;;  %v4223_v55 = vld [vmem:[%s7070_s10 + $0xc8] sm:$0xff] }
 0x884   : > { %v6077_v4 = vadd.f32 %v3712_v16, %v7852_v7  ;;  %6445 = vtanh.f32 %v8407_v5  ;;  %v6093_v8 = vadd.f32 %v3783_v46, %v7875_v37  ;;  %v4206_v16 = vld [vmem:[%s7070_s10 + $0x40] sm:$0xff]  ;;  %v4207_v46 = vld [vmem:[%s7070_s10 + $0x48] sm:$0xff] }
 0x885   : > { %v4649_v39 = vmul.f32 -1.442695, %v6076_v3  ;;  %v6024_v3 = vpack.c.bf16 %v4223_v55, %v4222_v19 }
 0x886   : > { %v4650_v60 = vmul.f32 -1.442695, %v6077_v4  ;;  %v4651_v20 = vmul.f32 -1.442695, %v6093_v8  ;;  %v6026_v4 = vpack.c.bf16 %v4207_v46, %v4206_v16 }
 0x887   : > { %6447 = vpow2.f32 %v4649_v39  ;;  %v4224_v39 = vld [vmem:[%s7070_s10 + $0xd0] sm:$0xff] }
 0x888   : > { %6449 = vpow2.f32 %v4650_v60  ;;  %v4225_v60 = vld [vmem:[%s7070_s10 + $0xd8] sm:$0xff] }
 0x889   : > { %6451 = vpow2.f32 %v4651_v20  ;;  %v6028_v8 = vpack.c.bf16 %v4225_v60, %v4224_v39 }
 0x88a   : > { %6453 = vtanh.f32 %v6092_v42  ;;  %v4226_v42 = vld [vmem:[%s7070_s10 + $0xe0] sm:$0xff] }
 0x88e   : > { %v6446_v22 = vpop.eup %6445 }
 0x88f   : > { %v8414_v2 = vmul.f32 %v6446_v22, %v6444_v18  ;;  %v4208_v18 = vld [vmem:[%s7070_s10 + $0x50] sm:$0xff]  ;;  %v4209_v22 = vld [vmem:[%s7070_s10 + $0x58] sm:$0xff] }
 0x890   : > { %v6030_v20 = vpack.c.bf16 %v4209_v22, %v4208_v18 }
 0x891   : > { %v6448_v61 = vpop.eup %6447  ;;  %4652 = vst [vmem:[%s7869_s2 + $0x60] sm:$0xff] %v8414_v2  ;;  %3905 = vmatmul.mubr.f32.vlgmr.msra.gmra.mrb[14].mxu0 %v8414_v2  ;;  %3976 = vmatmul.mubr.f32.vlgmr.msra.gmra.mrb[14].mxu1 %v8414_v2 }
 0x892   : > { %v6450_v25 = vpop.eup %6449  ;;  %v3817_v41 = vadd.f32 1.0, %v6448_v61  ;;  %5947 = vmatpush1.bf16.msra.mxu0 %v7492_v47  ;;  %5979 = vmatpush1.bf16.msra.mxu1 %v7721_v17  ;;  %v4227_v61 = vld [vmem:[%s7070_s10 + $0xe8] sm:$0xff] }
 0x893   : > { %v3823_v43 = vadd.f32 1.0, %v6450_v25  ;;  %5949 = vmatprep.subr.bf16.mxu0 %v7495_v48  ;;  %5981 = vmatprep.subr.bf16.mxu1 %v7724_v59  ;;  %v6452_v47 = vpop.eup %6451  ;;  %v6032_v25 = vpack.c.bf16 %v4227_v61, %v4226_v42 }
 0x894   : > { %6455 = vrcp.f32 %v3817_v41  ;;  %4050 = vmatprep.mubr.f32.mxu0 %v8671_v11  ;;  %4121 = vmatprep.mubr.f32.mxu1 %v8671_v11  ;;  %v6454_v48 = vpop.eup %6453  ;;  %v4221_v11 = vld [vmem:[%s7070_s10 + $0xb8] sm:$0xff]  ;;  %v4210_v41 = vld [vmem:[%s7070_s10 + $0x60] sm:$0xff] }
 0x895   : > { %6457 = vrcp.f32 %v3823_v43  ;;  %v4211_v43 = vld [vmem:[%s7070_s10 + $0x68] sm:$0xff] }
 0x896   : > { %5951 = vmatpush1.bf16.msra.mxu0 %v7515_v0  ;;  %5983 = vmatpush1.bf16.msra.mxu1 %v7734_v21 }
 0x897   : > { %5953 = vmatprep.subr.bf16.mxu0 %v7519_v1  ;;  %5985 = vmatprep.subr.bf16.mxu1 %v7738_v49  ;;  %v3830_v1 = vadd.f32 1.0, %v6452_v47  ;;  %v4201_v49 = vld [vmem:[%s7070_s10 + $0x18] sm:$0xff]  ;;  %v6034_v47 = vpack.c.bf16 %v4211_v43, %v4210_v41 }
 0x899   : > { %6459 = vrcp.f32 %v3830_v1  ;;  %v4213_v1 = vld [vmem:[%s7070_s10 + $0x78] sm:$0xff] }
 0x89a   : > { %5955 = vmatpush1.bf16.msra.mxu0 %v7539_v14  ;;  %5987 = vmatpush1.bf16.msra.mxu1 %v7747_v44 }
 0x89b   : > { %5957 = vmatprep.subr.bf16.mxu0 %v7543_v15  ;;  %5989 = vmatprep.subr.bf16.mxu1 %v7750_v9  ;;  %v4218_v9 = vld [vmem:[%s7070_s10 + $0xa0] sm:$0xff] }
 0x89e   : > { %v6456_v17 = vpop.eup %6455  ;;  %5959 = vmatpush1.bf16.msra.mxu0 %v7563_v33  ;;  %5991 = vmatpush1.bf16.msra.mxu1 %v7759_v50  ;;  %v4219_v50 = vld [vmem:[%s7070_s10 + $0xa8] sm:$0xff] }
 0x89f   : > { %v6458_v0 = vpop.eup %6457  ;;  %v3834_v59 = vmul.f32 %v6456_v17, %v6454_v48  ;;  %5961 = vmatprep.subr.bf16.mxu0 %v7567_v35  ;;  %5993 = vmatprep.subr.bf16.mxu1 %v7762_v52  ;;  %v4215_v35 = vld [vmem:[%s7070_s10 + $0x88] sm:$0xff]  ;;  %v6016_v52 = vpack.c.bf16 %v4219_v50, %v4218_v9  ;;  %v4228_v48 = vld [vmem:[%s7070_s10 + $0xf0] sm:$0xff]  ;;  %v4229_v17 = vld [vmem:[%s7070_s10 + $0xf8] sm:$0xff] }
 0x8a0   : > { %v3833_v14 = vmul.f32 %v6458_v0, %v8343_v63  ;;  %v6036_v0 = vpack.c.bf16 %v4229_v17, %v4228_v48  ;;  %v4184_v48 = vld [vmem:[%s7869_s2 + $0x10] sm:$0xff]  ;;  %v8839_v17 = vld [vmem:[#allocation48_spill] sm:$0xff] }
 0x8a2   : > { %v8439_v21 = vadd.f32 %v3834_v59, %v3833_v14  ;;  %5963 = vmatpush1.bf16.msra.mxu0 %v7587_v56  ;;  %5995 = vmatpush1.bf16.msra.mxu1 %v7771_v24  ;;  %v4198_v56 = vld [vmem:[%s7070_s10] sm:$0xff]  ;;  %v4212_v59 = vld [vmem:[%s7070_s10 + $0x70] sm:$0xff] }
 0x8a3   : > { %5965 = vmatprep.subr.bf16.mxu0 %v7591_v58  ;;  %5997 = vmatprep.subr.bf16.mxu1 %v7774_v26  ;;  %v6460_v15 = vpop.eup %6459  ;;  %v4199_v58 = vld [vmem:[%s7070_s10 + $0x8] sm:$0xff]  ;;  %v4202_v24 = vld [vmem:[%s7070_s10 + $0x20] sm:$0xff]  ;;  %v6038_v14 = vpack.c.bf16 %v4213_v1, %v4212_v59  ;;  %v4191_v59 = vld [vmem:[%s7869_s2 + $0x48] sm:$0xff] }
 0x8a4   : > { %6461 = vtanh.f32 %v8439_v21  ;;  %v4203_v26 = vld [vmem:[%s7070_s10 + $0x28] sm:$0xff]  ;;  %v8840_v1 = vld [vmem:[#allocation46_spill] sm:$0xff] }
 0x8a6   : > { %5967 = vmatpush1.bf16.msra.mxu0 %v7611_v12  ;;  %5999 = vmatpush1.bf16.msra.mxu1 %v7783_v23  ;;  %v6010_v12 = vpack.c.bf16 %v4199_v58, %v4198_v56 }
 0x8a7   : > { %5969 = vmatprep.subr.bf16.mxu0 %v7615_v13  ;;  %6001 = vmatprep.subr.bf16.mxu1 %v7786_v28  ;;  %v4216_v13 = vld [vmem:[%s7070_s10 + $0x90] sm:$0xff]  ;;  %v6018_v28 = vpack.c.bf16 %v4203_v26, %v4202_v24 }
 0x8aa   : > { %5971 = vmatpush1.bf16.msra.mxu0 %v7635_v36  ;;  %6003 = vmatpush1.bf16.msra.mxu1 %v7793_v51  ;;  %v4214_v51 = vld [vmem:[%s7070_s10 + $0x80] sm:$0xff]  ;;  %v4217_v36 = vld [vmem:[%s7070_s10 + $0x98] sm:$0xff] }
 0x8ab   : > { %5973 = vmatprep.subr.bf16.mxu0 %v7638_v31  ;;  %6005 = vmatprep.subr.bf16.mxu1 %v7796_v40  ;;  %v6008_v40 = vpack.c.bf16 %v4215_v35, %v4214_v51  ;;  %v6012_v31 = vpack.c.bf16 %v4217_v36, %v4216_v13 }
 0x8ae   : > { %v6462_v33 = vpop.eup %6461  ;;  %5975 = vmatpush1.bf16.msra.mxu0 %v7655_v45  ;;  %6007 = vmatpush1.bf16.msra.mxu1 %v7801_v29  ;;  %v4200_v45 = vld [vmem:[%s7070_s10 + $0x10] sm:$0xff] }
 0x8af   : > { %v8456_v23 = vmul.f32 %v6462_v33, %v6460_v15  ;;  %6009 = vmatprep.subr.bf16.mxu0 %v6008_v40  ;;  %v6014_v44 = vpack.c.bf16 %v4201_v49, %v4200_v45  ;;  %v4220_v29 = vld [vmem:[%s7070_s10 + $0xb0] sm:$0xff] }
 0x8b0   : > { %v6020_v63 = vpack.c.bf16 %v4221_v11, %v4220_v29 }
 0x8b1   : > { %4653 = vst [vmem:[%s7869_s2 + $0x18] sm:$0xff] %v8456_v23  ;;  %4051 = vmatmul.mubr.f32.vlgmr.msra.gmra.mrb[16].mxu0 %v8456_v23  ;;  %4122 = vmatmul.mubr.f32.vlgmr.msra.gmra.mrb[16].mxu1 %v8456_v23 }
 0x8b2   : > { %6011 = vmatpush3.bf16.msra.mxu0 %v6010_v12 }
 0x8b3   : > { %6013 = vmatprep.subr.bf16.mxu0 %v6012_v31 }
 0x8b6   : > { %6015 = vmatpush3.bf16.msra.mxu0 %v6014_v44 }
 0x8b7   : > { %6017 = vmatprep.subr.bf16.mxu0 %v6016_v52 }
 0x8ba   : > { %6019 = vmatpush3.bf16.msra.mxu0 %v6018_v28 }
 0x8bb   : > { %6021 = vmatprep.subr.bf16.mxu0 %v6020_v63 }
 0x8be   : > { %6023 = vmatpush3.bf16.msra.mxu0 %v6022_v54 }
 0x8bf   : > { %6025 = vmatprep.subr.bf16.mxu0 %v6024_v3 }
 0x8c2   : > { %6027 = vmatpush3.bf16.msra.mxu0 %v6026_v4 }
 0x8c3   : > { %6029 = vmatprep.subr.bf16.mxu0 %v6028_v8 }
 0x8c6   : > { %6031 = vmatpush3.bf16.msra.mxu0 %v6030_v20 }
 0x8c7   : > { %6033 = vmatprep.subr.bf16.mxu0 %v6032_v25 }
 0x8ca   : > { %6035 = vmatpush3.bf16.msra.mxu0 %v6034_v47  ;;  %v4182_v47 = vld [vmem:[%s7869_s2] sm:$0xff] }
 0x8cb   : > { %6037 = vmatprep.subr.bf16.mxu0 %v6036_v0  ;;  %v4188_v0 = vld [vmem:[%s7869_s2 + $0x30] sm:$0xff] }
 0x8ce   : > { %6039 = vmatpush3.bf16.msra.mxu0 %v6038_v14  ;;  %v4193_v14 = vld [vmem:[%s7869_s2 + $0x58] sm:$0xff] }
 0x964   : > { %v3906_v15 = vpop.f32.mrb[14].mxu0  ;;  %v3977_v33 = vpop.f32.mrb[14].mxu1 }
 0x965   : > { %v6056_v51 = vadd.f32 %v3906_v15, %v8838_v62  ;;  %v3908_v35 = vpop.f32.mrb[15].mxu0  ;;  %v3979_v40 = vpop.f32.mrb[15].mxu1  ;;  %v6072_v31 = vadd.f32 %v3977_v33, %v8701_v34  ;;  %v4661_v33 = vld [vmem:[%s463_s30] ss:$0 sm:$0xff] }
 0x966   : > { %v6057_v56 = vadd.f32 %v3908_v35, %v8699_v6  ;;  %v6073_v13 = vadd.f32 %v3979_v40, %v8700_v27 }
 0x967   : > { %v4654_v58 = vmul.f32 -1.442695, %v6056_v51 }
 0x968   : > { %v4655_v12 = vmul.f32 -1.442695, %v6057_v56  ;;  %v4656_v36 = vmul.f32 -1.442695, %v6073_v13 }
 0x969   : > { %6463 = vpow2.f32 %v4654_v58 }
 0x96a   : > { %6465 = vpow2.f32 %v4655_v12 }
 0x96b   : > { %6467 = vpow2.f32 %v4656_v36 }
 0x96c   : > { %6469 = vtanh.f32 %v6072_v31 }
 0x973   : > { %v6464_v45 = vpop.eup %6463 }
 0x974   : > { %v6466_v49 = vpop.eup %6465  ;;  %v4135_v44 = vadd.f32 1.0, %v6464_v45 }
 0x975   : > { %v4141_v9 = vadd.f32 1.0, %v6466_v49  ;;  %v6468_v62 = vpop.eup %6467 }
 0x976   : > { %6471 = vrcp.f32 %v4135_v44  ;;  %v6470_v50 = vpop.eup %6469  ;;  %v4148_v26 = vadd.f32 1.0, %v6468_v62 }
 0x977   : > { %6473 = vrcp.f32 %v4141_v9 }
 0x978   : > { %6475 = vrcp.f32 %v4148_v26 }
 0x980   : > { %v6472_v6 = vpop.eup %6471 }
 0x981   : > { %v6474_v52 = vpop.eup %6473  ;;  %v4152_v24 = vmul.f32 %v6472_v6, %v6470_v50 }
 0x982   : > { %v4151_v28 = vmul.f32 %v6474_v52, %v8407_v5  ;;  %v6476_v3 = vpop.eup %6475 }
 0x984   : > { %v4153_v27 = vadd.f32 %v4152_v24, %v4151_v28  ;;  %v4052_v29 = vpop.f32.mrb[16].mxu0  ;;  %v4123_v11 = vpop.f32.mrb[16].mxu1 }
 0x985   : > { %v6074_v34 = vadd.f32 %v4052_v29, %v7855_v10  ;;  %v4054_v63 = vpop.f32.mrb[17].mxu0  ;;  %v4125_v57 = vpop.f32.mrb[17].mxu1  ;;  %v6090_v4 = vadd.f32 %v4123_v11, %v7872_v30 }
 0x986   : > { %6477 = vtanh.f32 %v4153_v27  ;;  %v6075_v53 = vadd.f32 %v4054_v63, %v7852_v7  ;;  %v6091_v55 = vadd.f32 %v4125_v57, %v7875_v37 }
 0x987   : > { %v4657_v54 = vmul.f32 -1.442695, %v6074_v34 }
 0x988   : > { %v4658_v19 = vmul.f32 -1.442695, %v6075_v53  ;;  %v4659_v16 = vmul.f32 -1.442695, %v6091_v55 }
 0x989   : > { %6479 = vpow2.f32 %v4657_v54 }
 0x98a   : > { %6481 = vpow2.f32 %v4658_v19 }
 0x98b   : > { %6483 = vpow2.f32 %v4659_v16 }
 0x98c   : > { %6485 = vtanh.f32 %v6090_v4 }
 0x990   : > { %v6478_v5 = vpop.eup %6477 }
 0x991   : > { %v4155_v46 = vmul.f32 %v6478_v5, %v6476_v3 }
 0x993   : > { %v6480_v39 = vpop.eup %6479  ;;  %4660 = vst [vmem:[%s7869_s2 + $0x70] sm:$0xff] %v4155_v46 }
 0x994   : > { %v6482_v10 = vpop.eup %6481  ;;  %v4159_v60 = vadd.f32 1.0, %v6480_v39 }
 0x995   : > { %v4165_v8 = vadd.f32 1.0, %v6482_v10  ;;  %v6484_v7 = vpop.eup %6483 }
 0x996   : > { %6487 = vrcp.f32 %v4159_v60  ;;  %v6486_v18 = vpop.eup %6485  ;;  %v4172_v42 = vadd.f32 1.0, %v6484_v7 }
 0x997   : > { %6489 = vrcp.f32 %v4165_v8 }
 0x998   : > { %6491 = vrcp.f32 %v4172_v42 }
 0x9a0   : > { %v6488_v37 = vpop.eup %6487 }
 0x9a1   : > { %v6490_v22 = vpop.eup %6489  ;;  %v4176_v20 = vmul.f32 %v6488_v37, %v6486_v18 }
 0x9a2   : > { %v4175_v30 = vmul.f32 %v6490_v22, %v8439_v21  ;;  %v6492_v25 = vpop.eup %6491  ;;  %v4186_v21 = vld [vmem:[%s7869_s2 + $0x20] sm:$0xff] }
 0x9a4   : > { %v4177_v61 = vadd.f32 %v4176_v20, %v4175_v30 }
 0x9a6   : > { %6493 = vtanh.f32 %v4177_v61 }
 0x9b0   : > { %v6494_v41 = vpop.eup %6493 }
 0x9b1   : > { %v4179_v43 = vmul.f32 %v6494_v41, %v6492_v25 }
 0x9b3   : > { %4181 = vst [vmem:[%s7869_s2 + $0x8] sm:$0xff] %v4179_v43  ;;  %4301 = vmatprep.mubr.f32.mxu0 %v4179_v43 }
 0x9b4   : > { %4302 = vmatmul.mubr.f32.vlgmr.msra.gmra.mrb[32].mxu0 %v4182_v47 }
 0x9b5   : > { %4306 = vmatprep.mubr.f32.mxu0 %v8456_v23  ;;  %v4195_v23 = vld [vmem:[%s7869_s2 + $0x68] sm:$0xff] }
 0x9b8   : > { %4307 = vmatmul.mubr.f32.gmra.mrb[34].mxu0 %v4184_v48 }
 0x9b9   : > { %4311 = vmatprep.mubr.f32.mxu0 %v8360_v38  ;;  %v4197_v38 = vld [vmem:[%s7869_s2 + $0x78] sm:$0xff] }
 0x9bc   : > { %4312 = vmatmul.mubr.f32.gmra.mrb[36].mxu0 %v4186_v21 }
 0x9bd   : > { %4316 = vmatprep.mubr.f32.mxu0 %v8839_v17 }
 0x9c0   : > { %4317 = vmatmul.mubr.f32.gmra.mrb[38].mxu0 %v4188_v0 }
 0x9c1   : > { %4321 = vmatprep.mubr.f32.mxu0 %v4191_v59 }
 0x9c4   : > { %4322 = vmatmul.mubr.f32.gmra.mrb[40].mxu0 %v8840_v1 }
 0x9c5   : > { %4326 = vmatprep.mubr.f32.mxu0 %v4193_v14 }
 0x9c8   : > { %4327 = vmatmul.mubr.f32.gmra.mrb[42].mxu0 %v8318_v32 }
 0x9c9   : > { %4331 = vmatprep.mubr.f32.mxu0 %v4195_v23 }
 0x9cc   : > { %4332 = vmatmul.mubr.f32.gmra.mrb[44].mxu0 %v8414_v2 }
 0x9cd   : > { %4336 = vmatprep.mubr.f32.mxu0 %v4197_v38 }
 0x9d0   : > { %4337 = vmatmul.mubr.f32.gmra.mrb[46].mxu0 %v4155_v46 }
 0xa87   : > { %v4704_v15 = vpop.f32.mrb[32].mxu0 }
 0xa88   : > { %v4705_v51 = vpop.f32.mrb[33].mxu0 }
 0xa89   : > { %v4706_v35 = vadd.f32 %v4705_v51, %v4704_v15 }
 0xa8b   : > { %v4304_v32 = vadd.f32 %v4706_v35, %v4661_v33  ;;  %v4707_v40 = vpop.f32.mrb[34].mxu0 }
 0xa8c   : > { %v4708_v2 = vpop.f32.mrb[35].mxu0 }
 0xa8d   : > { %4342 = vst [vmem:[%s8526_s19] sm:$0xff] %v4304_v32  ;;  %v4709_v56 = vadd.f32 %v4708_v2, %v4707_v40 }
 0xa8f   : > { %v4309_v58 = vadd.f32 %v4709_v56, %v4661_v33  ;;  %v4710_v12 = vpop.f32.mrb[36].mxu0 }
 0xa90   : > { %v4711_v13 = vpop.f32.mrb[37].mxu0 }
 0xa91   : > { %4343 = vst [vmem:[%s8526_s19 + $0x8] sm:$0xff] %v4309_v58  ;;  %v4712_v36 = vadd.f32 %v4711_v13, %v4710_v12 }
 0xa93   : > { %v4314_v31 = vadd.f32 %v4712_v36, %v4661_v33  ;;  %v4713_v45 = vpop.f32.mrb[38].mxu0 }
 0xa94   : > { %v4714_v49 = vpop.f32.mrb[39].mxu0 }
 0xa95   : > { %4344 = vst [vmem:[%s8526_s19 + $0x10] sm:$0xff] %v4314_v31  ;;  %v4715_v44 = vadd.f32 %v4714_v49, %v4713_v45 }
 0xa97   : > { %v4319_v9 = vadd.f32 %v4715_v44, %v4661_v33  ;;  %v4716_v62 = vpop.f32.mrb[40].mxu0 }
 0xa98   : > { %v4717_v50 = vpop.f32.mrb[41].mxu0 }
 0xa99   : > { %4345 = vst [vmem:[%s8526_s19 + $0x18] sm:$0xff] %v4319_v9  ;;  %v4718_v6 = vadd.f32 %v4717_v50, %v4716_v62 }
 0xa9b   : > { %v4324_v52 = vadd.f32 %v4718_v6, %v4661_v33  ;;  %v4719_v24 = vpop.f32.mrb[42].mxu0 }
 0xa9c   : > { %v4720_v26 = vpop.f32.mrb[43].mxu0 }
 0xa9d   : > { %4346 = vst [vmem:[%s8526_s19 + $0x20] sm:$0xff] %v4324_v52  ;;  %v4721_v28 = vadd.f32 %v4720_v26, %v4719_v24 }
 0xa9f   : > { %v4329_v27 = vadd.f32 %v4721_v28, %v4661_v33  ;;  %v4722_v29 = vpop.f32.mrb[44].mxu0 }
 0xaa0   : > { %v4723_v11 = vpop.f32.mrb[45].mxu0 }
 0xaa1   : > { %4347 = vst [vmem:[%s8526_s19 + $0x28] sm:$0xff] %v4329_v27  ;;  %v4724_v34 = vadd.f32 %v4723_v11, %v4722_v29 }
 0xaa3   : > { %v4334_v63 = vadd.f32 %v4724_v34, %v4661_v33  ;;  %v4725_v57 = vpop.f32.mrb[46].mxu0 }
 0xaa4   : > { %v4726_v53 = vpop.f32.mrb[47].mxu0 }
 0xaa5   : > { %4348 = vst [vmem:[%s8526_s19 + $0x30] sm:$0xff] %v4334_v63  ;;  %v4727_v54 = vadd.f32 %v4726_v53, %v4725_v57 }
 0xaa7   : > { %v4339_v19 = vadd.f32 %v4727_v54, %v4661_v33 }
 0xaa9   : > { %4349 = vst [vmem:[%s8526_s19 + $0x38] sm:$0xff] %v4339_v19 }
 0xaaa PF: > { %s8842_s30 = sld [smem:[#allocation17_spill]]  ;;  %s8843_s9 = sld [smem:[#allocation16_spill]] }
 0xaab   : > { %s8844_s29 = sld [smem:[#allocation18_spill]]  ;;  %s8845_s27 = smov %s6713_s28 }
 0xab0   : > { %p28_p0 = scmp.ge.s32.totalorder %s8842_s30, 4   ;;  %s8846_s28 = smov %s8843_s9 }
 0xab2   :  { %30 = sbr.rel (!%p28_p0) target bundleno = 14 (0xe), region = 171 }
 0xab9   :  { %4387 = vsyncpa [#allocation3], 1 }
 0xaba   :  { %4389 = vsyncpa [#allocation3 + $0x1], 1 }
 0xabb   :  { %4390 = vsyncpa [#allocation5], 1 }
 0xabc   :  { %4392 = vsyncpa [#allocation5 + $0x1], 1 }
 0xabd   :  { %4393 = vsyncpa [#allocation8], 1 }
 0xabe   :  { %4395 = vsyncpa [#allocation8 + $0x1], 1 }
 0xabf   :  { %4396 = vsyncpa [#allocation11], 1 }
 0xac0   :  { %4398 = vsyncpa [#allocation11 + $0x1], 1 }

</bundles_post_ra>
